<compile_context>
chip_gen: v5e
topology: v5e:2x2
jax: 0.10.0
libtpu: 0.0.40
codegen_flags: <defaults>
</compile_context>

<pallas_src>
import math
from functools import partial

import jax
import jax.numpy as jnp
from jax.experimental import pallas as pl
from jax.experimental.pallas import tpu as pltpu

# ---------------- model config (small, consistent with the module) -----------
D_MODEL = 32
NUM_HEADS = 4
HEAD_DIM = D_MODEL // NUM_HEADS
FFN_HIDDEN = 64
NUM_LAYERS = 2
MAX_SEQ_LEN = 8
VOCAB_SIZE = 16
BATCH = 2

EPS = 1e-5


def _layernorm(x, gamma, beta):
    # gamma/beta broadcast over rows; biased variance, like the reference.
    mean = jnp.mean(x, axis=-1, keepdims=True)
    var = jnp.mean((x - mean) ** 2, axis=-1, keepdims=True)
    inv = jax.lax.rsqrt(var + EPS)
    return (x - mean) * inv * gamma + beta


# ---------------- fused encoder-stack kernel ----------------------------------
def encoder_stack_kernel(x_ref, wq_ref, wk_ref, wv_ref, bq_ref, bk_ref, bv_ref,
                         wo_ref, bo_ref, g1_ref, be1_ref, w1_ref, bf1_ref,
                         w2_ref, bf2_ref, g2_ref, be2_ref, o_ref):
    S = MAX_SEQ_LEN
    scale = 1.0 / math.sqrt(HEAD_DIM)
    x = x_ref[...].astype(jnp.float32)                      # (B*S, D) resident in VMEM

    for li in range(NUM_LAYERS):                            # layers fused, fully unrolled
        # ---- multi-head self-attention (mask=None per reference forward) ----
        batch_rows = []
        for b in range(BATCH):                              # tiny, fully unrolled
            xb = x[b * S:(b + 1) * S, :]                    # (S, D) sublane-aligned static slice
            acc = jnp.zeros((S, D_MODEL), jnp.float32)
            for h in range(NUM_HEADS):                      # per-head weight tiles: no lane
                idx = li * NUM_HEADS + h                    # slicing / concat of values
                q = jnp.dot(xb, wq_ref[idx],
                            preferred_element_type=jnp.float32) + bq_ref[idx]
                k = jnp.dot(xb, wk_ref[idx],
                            preferred_element_type=jnp.float32) + bk_ref[idx]
                v = jnp.dot(xb, wv_ref[idx],
                            preferred_element_type=jnp.float32) + bv_ref[idx]
                s = jnp.dot(q, k.T, preferred_element_type=jnp.float32) * scale
                s = s - jnp.max(s, axis=-1, keepdims=True)
                p = jnp.exp(s)
                p = p * pl.reciprocal(jnp.sum(p, axis=-1, keepdims=True), approx=True)
                hv = jnp.dot(p, v, preferred_element_type=jnp.float32)       # (S, Dh)
                # concat(heads) @ Wo  ==  sum_h head_h @ Wo[h*Dh:(h+1)*Dh, :]
                acc = acc + jnp.dot(hv, wo_ref[idx],
                                    preferred_element_type=jnp.float32)      # (S, D)
            batch_rows.append(acc)
        attn = jnp.concatenate(batch_rows, axis=0) + bo_ref[li]              # (B*S, D)

        # dropout1 -> identity (inference); residual + LayerNorm1
        h1 = _layernorm(attn + x, g1_ref[li], be1_ref[li])

        # ---- position-wise feed-forward --------------------------------------
        f = jnp.dot(h1, w1_ref[li], preferred_element_type=jnp.float32) + bf1_ref[li]
        f = jnp.maximum(f, 0.0)                                              # ReLU
        f = jnp.dot(f, w2_ref[li], preferred_element_type=jnp.float32) + bf2_ref[li]

        # dropout2 -> identity; residual + LayerNorm2
        x = _layernorm(f + h1, g2_ref[li], be2_ref[li])

    o_ref[...] = x.astype(o_ref.dtype)


def fused_encoder_stack(x2d, sp):
    """x2d: (B*S, D) float32; sp: stacked/per-head parameter dict."""
    BS, D = x2d.shape
    full = lambda a: pl.BlockSpec(a.shape, lambda i: (0,) * a.ndim)
    args = (x2d, sp["wq"], sp["wk"], sp["wv"], sp["bq"], sp["bk"], sp["bv"],
            sp["wo"], sp["bo"], sp["g1"], sp["be1"], sp["w1"], sp["bf1"],
            sp["w2"], sp["bf2"], sp["g2"], sp["be2"])
    return pl.pallas_call(
        encoder_stack_kernel,
        out_shape=jax.ShapeDtypeStruct((BS, D), jnp.float32),
        grid=(1,),
        in_specs=[full(a) for a in args],
        out_specs=pl.BlockSpec((BS, D), lambda i: (0, 0)),
        compiler_params=pltpu.CompilerParams(dimension_semantics=("arbitrary",)),
    )(*args)


# ---------------- sentence embedding (glue: gather + sinusoidal PE) ----------
def positional_encoding(max_len, d_model):
    even_i = jnp.arange(0, d_model, 2, dtype=jnp.float32)
    denom = jnp.power(10000.0, even_i / d_model)
    pos = jnp.arange(max_len, dtype=jnp.float32)[:, None]
    even_pe = jnp.sin(pos / denom)
    odd_pe = jnp.cos(pos / denom)
    return jnp.stack([even_pe, odd_pe], axis=2).reshape(max_len, d_model)


@partial(jax.jit, static_argnames=("start_token", "end_token"))
def encoder_forward(token_ids, self_attention_mask, stacked_params,
                    start_token=True, end_token=True):
    # TODO(synk): string tokenization / START,END,PAD insertion of the original
    # SentenceEmbedding has no array equivalent; inputs are integer token ids.
    del self_attention_mask, start_token, end_token  # unused (mask=None in reference)
    B, S = token_ids.shape
    x = stacked_params["embedding"][token_ids]                 # (B, S, D) gather
    x = x + positional_encoding(S, D_MODEL)[None]
    x2d = x.reshape(B * S, D_MODEL)                            # free wrapper-side reshape
    y2d = fused_encoder_stack(x2d, stacked_params)
    return y2d.reshape(B, S, D_MODEL)


# ---------------- layout plumbing (done once, outside the kernel) ------------
def prepare_params(params):
    """De-interleave the reference Wqkv (D, 3D) [per-head q|k|v column blocks]
    into per-head contiguous weight tiles and stack all layers, so the whole
    encoder stack runs in a single pallas_call."""
    wqs, wks, wvs, bqs, bks, bvs, wos = [], [], [], [], [], [], []
    bos, g1s, be1s, w1s, bf1s, w2s, bf2s, g2s, be2s = ([] for _ in range(9))
    for p in params["layers"]:
        w = p["wqkv"].reshape(D_MODEL, NUM_HEADS, 3, HEAD_DIM)
        b = p["bqkv"].reshape(NUM_HEADS, 3, HEAD_DIM)
        wqs.append(jnp.transpose(w[:, :, 0, :], (1, 0, 2)))    # (H, D, Dh)
        wks.append(jnp.transpose(w[:, :, 1, :], (1, 0, 2)))
        wvs.append(jnp.transpose(w[:, :, 2, :], (1, 0, 2)))
        bqs.append(b[:, 0, :][:, None, :])                     # (H, 1, Dh)
        bks.append(b[:, 1, :][:, None, :])
        bvs.append(b[:, 2, :][:, None, :])
        wos.append(p["wo"].reshape(NUM_HEADS, HEAD_DIM, D_MODEL))  # (H, Dh, D)
        bos.append(p["bo"]); g1s.append(p["g1"]); be1s.append(p["be1"])
        w1s.append(p["w1"]); bf1s.append(p["bf1"])
        w2s.append(p["w2"]); bf2s.append(p["bf2"])
        g2s.append(p["g2"]); be2s.append(p["be2"])
    cat = lambda xs: jnp.concatenate(xs, axis=0)   # per-head tiles: (L*H, ...)
    stk = lambda xs: jnp.stack(xs, axis=0)         # per-layer tensors: (L, ...)
    return {
        "embedding": params["embedding"],
        "wq": cat(wqs), "wk": cat(wks), "wv": cat(wvs),
        "bq": cat(bqs), "bk": cat(bks), "bv": cat(bvs),
        "wo": cat(wos),
        "bo": stk(bos), "g1": stk(g1s), "be1": stk(be1s),
        "w1": stk(w1s), "bf1": stk(bf1s),
        "w2": stk(w2s), "bf2": stk(bf2s),
        "g2": stk(g2s), "be2": stk(be2s),
    }


# ---------------- deterministic parameter init (reference layout) ------------
def _linear_init(key, fan_in, shape):
    bound = 1.0 / math.sqrt(fan_in)
    return jax.random.uniform(key, shape, jnp.float32, -bound, bound)


def init_params(key):
    keys = jax.random.split(key, 1 + NUM_LAYERS)
    params = {"embedding": jax.random.normal(keys[0], (VOCAB_SIZE, D_MODEL),
                                             jnp.float32)}
    layers = []
    for li in range(NUM_LAYERS):
        k = jax.random.split(keys[1 + li], 8)
        layers.append({
            "wqkv": _linear_init(k[0], D_MODEL, (D_MODEL, 3 * D_MODEL)),
            "bqkv": _linear_init(k[1], D_MODEL, (1, 3 * D_MODEL)),
            "wo":   _linear_init(k[2], D_MODEL, (D_MODEL, D_MODEL)),
            "bo":   _linear_init(k[3], D_MODEL, (1, D_MODEL)),
            "g1":   jnp.ones((1, D_MODEL), jnp.float32),
            "be1":  jnp.zeros((1, D_MODEL), jnp.float32),
            "w1":   _linear_init(k[4], D_MODEL, (D_MODEL, FFN_HIDDEN)),
            "bf1":  _linear_init(k[5], D_MODEL, (1, FFN_HIDDEN)),
            "w2":   _linear_init(k[6], FFN_HIDDEN, (FFN_HIDDEN, D_MODEL)),
            "bf2":  _linear_init(k[7], FFN_HIDDEN, (1, D_MODEL)),
            "g2":   jnp.ones((1, D_MODEL), jnp.float32),
            "be2":  jnp.zeros((1, D_MODEL), jnp.float32),
        })
    params["layers"] = layers
    return params


# ---------------- pure-JAX reference (interleaved Wqkv layout) ---------------
def encoder_reference(token_ids, params):
    x = params["embedding"][token_ids]
    x = x + positional_encoding(token_ids.shape[1], D_MODEL)[None]
    B, S, _ = x.shape
    for p in params["layers"]:
        qkv = x @ p["wqkv"] + p["bqkv"]                               # (B,S,3D)
        qkv = qkv.reshape(B, S, NUM_HEADS, 3 * HEAD_DIM)
        q, k, v = jnp.split(qkv, 3, axis=-1)                          # (B,S,H,Dh)
        q = q.transpose(0, 2, 1, 3); k = k.transpose(0, 2, 1, 3); v = v.transpose(0, 2, 1, 3)
        s = jnp.einsum("bhqd,bhkd->bhqk", q, k) / math.sqrt(HEAD_DIM)
        pa = jax.nn.softmax(s, axis=-1)
        val = jnp.einsum("bhqk,bhkd->bhqd", pa, v)
        val = val.transpose(0, 2, 1, 3).reshape(B, S, D_MODEL)
        attn = val @ p["wo"] + p["bo"]
        h1 = _layernorm(attn + x, p["g1"], p["be1"])
        f = jnp.maximum(h1 @ p["w1"] + p["bf1"], 0.0)
        f = f @ p["w2"] + p["bf2"]
        x = _layernorm(f + h1, p["g2"], p["be2"])
    return x


if __name__ == "__main__":
    key = jax.random.PRNGKey(0)
    pkey, dkey = jax.random.split(key)
    params = init_params(pkey)
    stacked = prepare_params(params)

    token_ids = jax.random.randint(dkey, (BATCH, MAX_SEQ_LEN), 0, VOCAB_SIZE,
                                   dtype=jnp.int32)
    mask = jnp.zeros((BATCH, 1, MAX_SEQ_LEN, MAX_SEQ_LEN), jnp.float32)

    out = encoder_forward(token_ids, mask, stacked,
                          start_token=True, end_token=True)
    out = jax.block_until_ready(out)

    assert out.shape == (BATCH, MAX_SEQ_LEN, D_MODEL)
    assert bool(jnp.all(jnp.isfinite(out)))

    # numerical check vs. pure-JAX reference (loose tol: approx reciprocal in softmax)
    ref = encoder_reference(token_ids, params)
    assert bool(jnp.allclose(out, ref, atol=1e-2, rtol=1e-2))

    print("KERNEL_OK")
</pallas_src>

<mosaic_0001>
module attributes {stable_mosaic.version = 11 : i64} {
  func.func @encoder_stack_kernel(%arg0: i32, %arg1: memref<16x32xf32, #tpu.memory_space<vmem>>, %arg2: memref<8x32x8xf32, #tpu.memory_space<vmem>>, %arg3: memref<8x32x8xf32, #tpu.memory_space<vmem>>, %arg4: memref<8x32x8xf32, #tpu.memory_space<vmem>>, %arg5: memref<8x1x8xf32, #tpu.memory_space<vmem>>, %arg6: memref<8x1x8xf32, #tpu.memory_space<vmem>>, %arg7: memref<8x1x8xf32, #tpu.memory_space<vmem>>, %arg8: memref<8x8x32xf32, #tpu.memory_space<vmem>>, %arg9: memref<2x1x32xf32, #tpu.memory_space<vmem>>, %arg10: memref<2x1x32xf32, #tpu.memory_space<vmem>>, %arg11: memref<2x1x32xf32, #tpu.memory_space<vmem>>, %arg12: memref<2x32x64xf32, #tpu.memory_space<vmem>>, %arg13: memref<2x1x64xf32, #tpu.memory_space<vmem>>, %arg14: memref<2x64x32xf32, #tpu.memory_space<vmem>>, %arg15: memref<2x1x32xf32, #tpu.memory_space<vmem>>, %arg16: memref<2x1x32xf32, #tpu.memory_space<vmem>>, %arg17: memref<2x1x32xf32, #tpu.memory_space<vmem>>, %arg18: memref<16x32xf32, #tpu.memory_space<vmem>>) attributes {dimension_semantics = [#tpu.dimension_semantics<arbitrary>], iteration_bounds = array<i64: 1>, scalar_prefetch = 0 : i64, scratch_operands = 0 : i64, tpu.core_type = #tpu.core_type<tc>, window_params = [{pipeline_mode = #tpu.pipeline_mode<synchronous>, transform_indices = @transform_0, window_bounds = array<i64: 16, 32>}, {pipeline_mode = #tpu.pipeline_mode<synchronous>, transform_indices = @transform_1, window_bounds = array<i64: 8, 32, 8>}, {pipeline_mode = #tpu.pipeline_mode<synchronous>, transform_indices = @transform_2, window_bounds = array<i64: 8, 32, 8>}, {pipeline_mode = #tpu.pipeline_mode<synchronous>, transform_indices = @transform_3, window_bounds = array<i64: 8, 32, 8>}, {pipeline_mode = #tpu.pipeline_mode<synchronous>, transform_indices = @transform_4, window_bounds = array<i64: 8, 1, 8>}, {pipeline_mode = #tpu.pipeline_mode<synchronous>, transform_indices = @transform_5, window_bounds = array<i64: 8, 1, 8>}, {pipeline_mode = #tpu.pipeline_mode<synchronous>, transform_indices = @transform_6, window_bounds = array<i64: 8, 1, 8>}, {pipeline_mode = #tpu.pipeline_mode<synchronous>, transform_indices = @transform_7, window_bounds = array<i64: 8, 8, 32>}, {pipeline_mode = #tpu.pipeline_mode<synchronous>, transform_indices = @transform_8, window_bounds = array<i64: 2, 1, 32>}, {pipeline_mode = #tpu.pipeline_mode<synchronous>, transform_indices = @transform_9, window_bounds = array<i64: 2, 1, 32>}, {pipeline_mode = #tpu.pipeline_mode<synchronous>, transform_indices = @transform_10, window_bounds = array<i64: 2, 1, 32>}, {pipeline_mode = #tpu.pipeline_mode<synchronous>, transform_indices = @transform_11, window_bounds = array<i64: 2, 32, 64>}, {pipeline_mode = #tpu.pipeline_mode<synchronous>, transform_indices = @transform_12, window_bounds = array<i64: 2, 1, 64>}, {pipeline_mode = #tpu.pipeline_mode<synchronous>, transform_indices = @transform_13, window_bounds = array<i64: 2, 64, 32>}, {pipeline_mode = #tpu.pipeline_mode<synchronous>, transform_indices = @transform_14, window_bounds = array<i64: 2, 1, 32>}, {pipeline_mode = #tpu.pipeline_mode<synchronous>, transform_indices = @transform_15, window_bounds = array<i64: 2, 1, 32>}, {pipeline_mode = #tpu.pipeline_mode<synchronous>, transform_indices = @transform_16, window_bounds = array<i64: 2, 1, 32>}, {pipeline_mode = #tpu.pipeline_mode<synchronous>, transform_indices = @transform_17, window_bounds = array<i64: 16, 32>}]} {
    %c0 = arith.constant 0 : index
    %c0_0 = arith.constant 0 : index
    %0 = vector.load %arg1[%c0, %c0_0] : memref<16x32xf32, #tpu.memory_space<vmem>>, vector<16x32xf32>
    %1 = vector.extract_strided_slice %0 {offsets = [0, 0], sizes = [8, 32], strides = [1, 1]} : vector<16x32xf32> to vector<8x32xf32>
    %cst = arith.constant 0.000000e+00 : f32
    %2 = vector.broadcast %cst : f32 to vector<8x32xf32>
    %c0_1 = arith.constant 0 : index
    %c0_2 = arith.constant 0 : index
    %c0_3 = arith.constant 0 : index
    %3 = vector.load %arg2[%c0_1, %c0_2, %c0_3] : memref<8x32x8xf32, #tpu.memory_space<vmem>>, vector<1x32x8xf32>
    %4 = vector.shape_cast %3 : vector<1x32x8xf32> to vector<32x8xf32>
    %cst_4 = arith.constant dense<0.000000e+00> : vector<8x8xf32>
    %5 = tpu.matmul %1, %4, %cst_4 {dimension_numbers = #tpu.dot_dimension_numbers<[1], [0], [0], [1], [0, 0, 1, 1], [], []>} : vector<8x32xf32>, vector<32x8xf32>, vector<8x8xf32> -> vector<8x8xf32>
    %c0_5 = arith.constant 0 : index
    %c0_6 = arith.constant 0 : index
    %c0_7 = arith.constant 0 : index
    %6 = vector.load %arg5[%c0_5, %c0_6, %c0_7] : memref<8x1x8xf32, #tpu.memory_space<vmem>>, vector<1x1x8xf32>
    %7 = vector.shape_cast %6 : vector<1x1x8xf32> to vector<1x8xf32>
    %8 = vector.broadcast %7 : vector<1x8xf32> to vector<8x8xf32>
    %9 = arith.addf %5, %8 : vector<8x8xf32>
    %c0_8 = arith.constant 0 : index
    %c0_9 = arith.constant 0 : index
    %c0_10 = arith.constant 0 : index
    %10 = vector.load %arg3[%c0_8, %c0_9, %c0_10] : memref<8x32x8xf32, #tpu.memory_space<vmem>>, vector<1x32x8xf32>
    %11 = vector.shape_cast %10 : vector<1x32x8xf32> to vector<32x8xf32>
    %cst_11 = arith.constant dense<0.000000e+00> : vector<8x8xf32>
    %12 = tpu.matmul %1, %11, %cst_11 {dimension_numbers = #tpu.dot_dimension_numbers<[1], [0], [0], [1], [0, 0, 1, 1], [], []>} : vector<8x32xf32>, vector<32x8xf32>, vector<8x8xf32> -> vector<8x8xf32>
    %c0_12 = arith.constant 0 : index
    %c0_13 = arith.constant 0 : index
    %c0_14 = arith.constant 0 : index
    %13 = vector.load %arg6[%c0_12, %c0_13, %c0_14] : memref<8x1x8xf32, #tpu.memory_space<vmem>>, vector<1x1x8xf32>
    %14 = vector.shape_cast %13 : vector<1x1x8xf32> to vector<1x8xf32>
    %15 = vector.broadcast %14 : vector<1x8xf32> to vector<8x8xf32>
    %16 = arith.addf %12, %15 : vector<8x8xf32>
    %c0_15 = arith.constant 0 : index
    %c0_16 = arith.constant 0 : index
    %c0_17 = arith.constant 0 : index
    %17 = vector.load %arg4[%c0_15, %c0_16, %c0_17] : memref<8x32x8xf32, #tpu.memory_space<vmem>>, vector<1x32x8xf32>
    %18 = vector.shape_cast %17 : vector<1x32x8xf32> to vector<32x8xf32>
    %cst_18 = arith.constant dense<0.000000e+00> : vector<8x8xf32>
    %19 = tpu.matmul %1, %18, %cst_18 {dimension_numbers = #tpu.dot_dimension_numbers<[1], [0], [0], [1], [0, 0, 1, 1], [], []>} : vector<8x32xf32>, vector<32x8xf32>, vector<8x8xf32> -> vector<8x8xf32>
    %c0_19 = arith.constant 0 : index
    %c0_20 = arith.constant 0 : index
    %c0_21 = arith.constant 0 : index
    %20 = vector.load %arg7[%c0_19, %c0_20, %c0_21] : memref<8x1x8xf32, #tpu.memory_space<vmem>>, vector<1x1x8xf32>
    %21 = vector.shape_cast %20 : vector<1x1x8xf32> to vector<1x8xf32>
    %22 = vector.broadcast %21 : vector<1x8xf32> to vector<8x8xf32>
    %23 = arith.addf %19, %22 : vector<8x8xf32>
    %24 = tpu.transpose %16, [1, 0] : vector<8x8xf32> -> vector<8x8xf32>
    %cst_22 = arith.constant dense<0.000000e+00> : vector<8x8xf32>
    %25 = tpu.matmul %9, %24, %cst_22 {dimension_numbers = #tpu.dot_dimension_numbers<[1], [0], [0], [1], [0, 0, 1, 1], [], []>} : vector<8x8xf32>, vector<8x8xf32>, vector<8x8xf32> -> vector<8x8xf32>
    %cst_23 = arith.constant 0.353553385 : f32
    %26 = vector.broadcast %cst_23 : f32 to vector<8x8xf32>
    %27 = arith.mulf %25, %26 : vector<8x8xf32>
    %cst_24 = arith.constant dense<0xFF800000> : vector<8xf32>
    %28 = vector.multi_reduction <maximumf>, %27, %cst_24 [1] : vector<8x8xf32> to vector<8xf32>
    %29 = vector.shape_cast %28 : vector<8xf32> to vector<8x1xf32>
    %30 = vector.broadcast %29 : vector<8x1xf32> to vector<8x8xf32>
    %31 = arith.subf %27, %30 : vector<8x8xf32>
    %32 = math.exp %31 : vector<8x8xf32>
    %cst_25 = arith.constant dense<0.000000e+00> : vector<8xf32>
    %33 = vector.multi_reduction <add>, %32, %cst_25 [1] : vector<8x8xf32> to vector<8xf32>
    %34 = vector.shape_cast %33 : vector<8xf32> to vector<8x1xf32>
    %35 = tpu.reciprocal %34 {approx = true} : vector<8x1xf32> -> vector<8x1xf32>
    %36 = vector.broadcast %35 : vector<8x1xf32> to vector<8x8xf32>
    %37 = arith.mulf %32, %36 : vector<8x8xf32>
    %cst_26 = arith.constant dense<0.000000e+00> : vector<8x8xf32>
    %38 = tpu.matmul %37, %23, %cst_26 {dimension_numbers = #tpu.dot_dimension_numbers<[1], [0], [0], [1], [0, 0, 1, 1], [], []>} : vector<8x8xf32>, vector<8x8xf32>, vector<8x8xf32> -> vector<8x8xf32>
    %c0_27 = arith.constant 0 : index
    %c0_28 = arith.constant 0 : index
    %c0_29 = arith.constant 0 : index
    %39 = vector.load %arg8[%c0_27, %c0_28, %c0_29] : memref<8x8x32xf32, #tpu.memory_space<vmem>>, vector<1x8x32xf32>
    %40 = vector.shape_cast %39 : vector<1x8x32xf32> to vector<8x32xf32>
    %cst_30 = arith.constant dense<0.000000e+00> : vector<8x32xf32>
    %41 = tpu.matmul %38, %40, %cst_30 {dimension_numbers = #tpu.dot_dimension_numbers<[1], [0], [0], [1], [0, 0, 1, 1], [], []>} : vector<8x8xf32>, vector<8x32xf32>, vector<8x32xf32> -> vector<8x32xf32>
    %42 = arith.addf %2, %41 : vector<8x32xf32>
    %c1 = arith.constant 1 : index
    %c0_31 = arith.constant 0 : index
    %c0_32 = arith.constant 0 : index
    %43 = vector.load %arg2[%c1, %c0_31, %c0_32] : memref<8x32x8xf32, #tpu.memory_space<vmem>>, vector<1x32x8xf32>
    %44 = vector.shape_cast %43 : vector<1x32x8xf32> to vector<32x8xf32>
    %cst_33 = arith.constant dense<0.000000e+00> : vector<8x8xf32>
    %45 = tpu.matmul %1, %44, %cst_33 {dimension_numbers = #tpu.dot_dimension_numbers<[1], [0], [0], [1], [0, 0, 1, 1], [], []>} : vector<8x32xf32>, vector<32x8xf32>, vector<8x8xf32> -> vector<8x8xf32>
    %c1_34 = arith.constant 1 : index
    %c0_35 = arith.constant 0 : index
    %c0_36 = arith.constant 0 : index
    %46 = vector.load %arg5[%c1_34, %c0_35, %c0_36] : memref<8x1x8xf32, #tpu.memory_space<vmem>>, vector<1x1x8xf32>
    %47 = vector.shape_cast %46 : vector<1x1x8xf32> to vector<1x8xf32>
    %48 = vector.broadcast %47 : vector<1x8xf32> to vector<8x8xf32>
    %49 = arith.addf %45, %48 : vector<8x8xf32>
    %c1_37 = arith.constant 1 : index
    %c0_38 = arith.constant 0 : index
    %c0_39 = arith.constant 0 : index
    %50 = vector.load %arg3[%c1_37, %c0_38, %c0_39] : memref<8x32x8xf32, #tpu.memory_space<vmem>>, vector<1x32x8xf32>
    %51 = vector.shape_cast %50 : vector<1x32x8xf32> to vector<32x8xf32>
    %cst_40 = arith.constant dense<0.000000e+00> : vector<8x8xf32>
    %52 = tpu.matmul %1, %51, %cst_40 {dimension_numbers = #tpu.dot_dimension_numbers<[1], [0], [0], [1], [0, 0, 1, 1], [], []>} : vector<8x32xf32>, vector<32x8xf32>, vector<8x8xf32> -> vector<8x8xf32>
    %c1_41 = arith.constant 1 : index
    %c0_42 = arith.constant 0 : index
    %c0_43 = arith.constant 0 : index
    %53 = vector.load %arg6[%c1_41, %c0_42, %c0_43] : memref<8x1x8xf32, #tpu.memory_space<vmem>>, vector<1x1x8xf32>
    %54 = vector.shape_cast %53 : vector<1x1x8xf32> to vector<1x8xf32>
    %55 = vector.broadcast %54 : vector<1x8xf32> to vector<8x8xf32>
    %56 = arith.addf %52, %55 : vector<8x8xf32>
    %c1_44 = arith.constant 1 : index
    %c0_45 = arith.constant 0 : index
    %c0_46 = arith.constant 0 : index
    %57 = vector.load %arg4[%c1_44, %c0_45, %c0_46] : memref<8x32x8xf32, #tpu.memory_space<vmem>>, vector<1x32x8xf32>
    %58 = vector.shape_cast %57 : vector<1x32x8xf32> to vector<32x8xf32>
    %cst_47 = arith.constant dense<0.000000e+00> : vector<8x8xf32>
    %59 = tpu.matmul %1, %58, %cst_47 {dimension_numbers = #tpu.dot_dimension_numbers<[1], [0], [0], [1], [0, 0, 1, 1], [], []>} : vector<8x32xf32>, vector<32x8xf32>, vector<8x8xf32> -> vector<8x8xf32>
    %c1_48 = arith.constant 1 : index
    %c0_49 = arith.constant 0 : index
    %c0_50 = arith.constant 0 : index
    %60 = vector.load %arg7[%c1_48, %c0_49, %c0_50] : memref<8x1x8xf32, #tpu.memory_space<vmem>>, vector<1x1x8xf32>
    %61 = vector.shape_cast %60 : vector<1x1x8xf32> to vector<1x8xf32>
    %62 = vector.broadcast %61 : vector<1x8xf32> to vector<8x8xf32>
    %63 = arith.addf %59, %62 : vector<8x8xf32>
    %64 = tpu.transpose %56, [1, 0] : vector<8x8xf32> -> vector<8x8xf32>
    %cst_51 = arith.constant dense<0.000000e+00> : vector<8x8xf32>
    %65 = tpu.matmul %49, %64, %cst_51 {dimension_numbers = #tpu.dot_dimension_numbers<[1], [0], [0], [1], [0, 0, 1, 1], [], []>} : vector<8x8xf32>, vector<8x8xf32>, vector<8x8xf32> -> vector<8x8xf32>
    %cst_52 = arith.constant 0.353553385 : f32
    %66 = vector.broadcast %cst_52 : f32 to vector<8x8xf32>
    %67 = arith.mulf %65, %66 : vector<8x8xf32>
    %cst_53 = arith.constant dense<0xFF800000> : vector<8xf32>
    %68 = vector.multi_reduction <maximumf>, %67, %cst_53 [1] : vector<8x8xf32> to vector<8xf32>
    %69 = vector.shape_cast %68 : vector<8xf32> to vector<8x1xf32>
    %70 = vector.broadcast %69 : vector<8x1xf32> to vector<8x8xf32>
    %71 = arith.subf %67, %70 : vector<8x8xf32>
    %72 = math.exp %71 : vector<8x8xf32>
    %cst_54 = arith.constant dense<0.000000e+00> : vector<8xf32>
    %73 = vector.multi_reduction <add>, %72, %cst_54 [1] : vector<8x8xf32> to vector<8xf32>
    %74 = vector.shape_cast %73 : vector<8xf32> to vector<8x1xf32>
    %75 = tpu.reciprocal %74 {approx = true} : vector<8x1xf32> -> vector<8x1xf32>
    %76 = vector.broadcast %75 : vector<8x1xf32> to vector<8x8xf32>
    %77 = arith.mulf %72, %76 : vector<8x8xf32>
    %cst_55 = arith.constant dense<0.000000e+00> : vector<8x8xf32>
    %78 = tpu.matmul %77, %63, %cst_55 {dimension_numbers = #tpu.dot_dimension_numbers<[1], [0], [0], [1], [0, 0, 1, 1], [], []>} : vector<8x8xf32>, vector<8x8xf32>, vector<8x8xf32> -> vector<8x8xf32>
    %c1_56 = arith.constant 1 : index
    %c0_57 = arith.constant 0 : index
    %c0_58 = arith.constant 0 : index
    %79 = vector.load %arg8[%c1_56, %c0_57, %c0_58] : memref<8x8x32xf32, #tpu.memory_space<vmem>>, vector<1x8x32xf32>
    %80 = vector.shape_cast %79 : vector<1x8x32xf32> to vector<8x32xf32>
    %cst_59 = arith.constant dense<0.000000e+00> : vector<8x32xf32>
    %81 = tpu.matmul %78, %80, %cst_59 {dimension_numbers = #tpu.dot_dimension_numbers<[1], [0], [0], [1], [0, 0, 1, 1], [], []>} : vector<8x8xf32>, vector<8x32xf32>, vector<8x32xf32> -> vector<8x32xf32>
    %82 = arith.addf %42, %81 : vector<8x32xf32>
    %c2 = arith.constant 2 : index
    %c0_60 = arith.constant 0 : index
    %c0_61 = arith.constant 0 : index
    %83 = vector.load %arg2[%c2, %c0_60, %c0_61] : memref<8x32x8xf32, #tpu.memory_space<vmem>>, vector<1x32x8xf32>
    %84 = vector.shape_cast %83 : vector<1x32x8xf32> to vector<32x8xf32>
    %cst_62 = arith.constant dense<0.000000e+00> : vector<8x8xf32>
    %85 = tpu.matmul %1, %84, %cst_62 {dimension_numbers = #tpu.dot_dimension_numbers<[1], [0], [0], [1], [0, 0, 1, 1], [], []>} : vector<8x32xf32>, vector<32x8xf32>, vector<8x8xf32> -> vector<8x8xf32>
    %c2_63 = arith.constant 2 : index
    %c0_64 = arith.constant 0 : index
    %c0_65 = arith.constant 0 : index
    %86 = vector.load %arg5[%c2_63, %c0_64, %c0_65] : memref<8x1x8xf32, #tpu.memory_space<vmem>>, vector<1x1x8xf32>
    %87 = vector.shape_cast %86 : vector<1x1x8xf32> to vector<1x8xf32>
    %88 = vector.broadcast %87 : vector<1x8xf32> to vector<8x8xf32>
    %89 = arith.addf %85, %88 : vector<8x8xf32>
    %c2_66 = arith.constant 2 : index
    %c0_67 = arith.constant 0 : index
    %c0_68 = arith.constant 0 : index
    %90 = vector.load %arg3[%c2_66, %c0_67, %c0_68] : memref<8x32x8xf32, #tpu.memory_space<vmem>>, vector<1x32x8xf32>
    %91 = vector.shape_cast %90 : vector<1x32x8xf32> to vector<32x8xf32>
    %cst_69 = arith.constant dense<0.000000e+00> : vector<8x8xf32>
    %92 = tpu.matmul %1, %91, %cst_69 {dimension_numbers = #tpu.dot_dimension_numbers<[1], [0], [0], [1], [0, 0, 1, 1], [], []>} : vector<8x32xf32>, vector<32x8xf32>, vector<8x8xf32> -> vector<8x8xf32>
    %c2_70 = arith.constant 2 : index
    %c0_71 = arith.constant 0 : index
    %c0_72 = arith.constant 0 : index
    %93 = vector.load %arg6[%c2_70, %c0_71, %c0_72] : memref<8x1x8xf32, #tpu.memory_space<vmem>>, vector<1x1x8xf32>
    %94 = vector.shape_cast %93 : vector<1x1x8xf32> to vector<1x8xf32>
    %95 = vector.broadcast %94 : vector<1x8xf32> to vector<8x8xf32>
    %96 = arith.addf %92, %95 : vector<8x8xf32>
    %c2_73 = arith.constant 2 : index
    %c0_74 = arith.constant 0 : index
    %c0_75 = arith.constant 0 : index
    %97 = vector.load %arg4[%c2_73, %c0_74, %c0_75] : memref<8x32x8xf32, #tpu.memory_space<vmem>>, vector<1x32x8xf32>
    %98 = vector.shape_cast %97 : vector<1x32x8xf32> to vector<32x8xf32>
    %cst_76 = arith.constant dense<0.000000e+00> : vector<8x8xf32>
    %99 = tpu.matmul %1, %98, %cst_76 {dimension_numbers = #tpu.dot_dimension_numbers<[1], [0], [0], [1], [0, 0, 1, 1], [], []>} : vector<8x32xf32>, vector<32x8xf32>, vector<8x8xf32> -> vector<8x8xf32>
    %c2_77 = arith.constant 2 : index
    %c0_78 = arith.constant 0 : index
    %c0_79 = arith.constant 0 : index
    %100 = vector.load %arg7[%c2_77, %c0_78, %c0_79] : memref<8x1x8xf32, #tpu.memory_space<vmem>>, vector<1x1x8xf32>
    %101 = vector.shape_cast %100 : vector<1x1x8xf32> to vector<1x8xf32>
    %102 = vector.broadcast %101 : vector<1x8xf32> to vector<8x8xf32>
    %103 = arith.addf %99, %102 : vector<8x8xf32>
    %104 = tpu.transpose %96, [1, 0] : vector<8x8xf32> -> vector<8x8xf32>
    %cst_80 = arith.constant dense<0.000000e+00> : vector<8x8xf32>
    %105 = tpu.matmul %89, %104, %cst_80 {dimension_numbers = #tpu.dot_dimension_numbers<[1], [0], [0], [1], [0, 0, 1, 1], [], []>} : vector<8x8xf32>, vector<8x8xf32>, vector<8x8xf32> -> vector<8x8xf32>
    %cst_81 = arith.constant 0.353553385 : f32
    %106 = vector.broadcast %cst_81 : f32 to vector<8x8xf32>
    %107 = arith.mulf %105, %106 : vector<8x8xf32>
    %cst_82 = arith.constant dense<0xFF800000> : vector<8xf32>
    %108 = vector.multi_reduction <maximumf>, %107, %cst_82 [1] : vector<8x8xf32> to vector<8xf32>
    %109 = vector.shape_cast %108 : vector<8xf32> to vector<8x1xf32>
    %110 = vector.broadcast %109 : vector<8x1xf32> to vector<8x8xf32>
    %111 = arith.subf %107, %110 : vector<8x8xf32>
    %112 = math.exp %111 : vector<8x8xf32>
    %cst_83 = arith.constant dense<0.000000e+00> : vector<8xf32>
    %113 = vector.multi_reduction <add>, %112, %cst_83 [1] : vector<8x8xf32> to vector<8xf32>
    %114 = vector.shape_cast %113 : vector<8xf32> to vector<8x1xf32>
    %115 = tpu.reciprocal %114 {approx = true} : vector<8x1xf32> -> vector<8x1xf32>
    %116 = vector.broadcast %115 : vector<8x1xf32> to vector<8x8xf32>
    %117 = arith.mulf %112, %116 : vector<8x8xf32>
    %cst_84 = arith.constant dense<0.000000e+00> : vector<8x8xf32>
    %118 = tpu.matmul %117, %103, %cst_84 {dimension_numbers = #tpu.dot_dimension_numbers<[1], [0], [0], [1], [0, 0, 1, 1], [], []>} : vector<8x8xf32>, vector<8x8xf32>, vector<8x8xf32> -> vector<8x8xf32>
    %c2_85 = arith.constant 2 : index
    %c0_86 = arith.constant 0 : index
    %c0_87 = arith.constant 0 : index
    %119 = vector.load %arg8[%c2_85, %c0_86, %c0_87] : memref<8x8x32xf32, #tpu.memory_space<vmem>>, vector<1x8x32xf32>
    %120 = vector.shape_cast %119 : vector<1x8x32xf32> to vector<8x32xf32>
    %cst_88 = arith.constant dense<0.000000e+00> : vector<8x32xf32>
    %121 = tpu.matmul %118, %120, %cst_88 {dimension_numbers = #tpu.dot_dimension_numbers<[1], [0], [0], [1], [0, 0, 1, 1], [], []>} : vector<8x8xf32>, vector<8x32xf32>, vector<8x32xf32> -> vector<8x32xf32>
    %122 = arith.addf %82, %121 : vector<8x32xf32>
    %c3 = arith.constant 3 : index
    %c0_89 = arith.constant 0 : index
    %c0_90 = arith.constant 0 : index
    %123 = vector.load %arg2[%c3, %c0_89, %c0_90] : memref<8x32x8xf32, #tpu.memory_space<vmem>>, vector<1x32x8xf32>
    %124 = vector.shape_cast %123 : vector<1x32x8xf32> to vector<32x8xf32>
    %cst_91 = arith.constant dense<0.000000e+00> : vector<8x8xf32>
    %125 = tpu.matmul %1, %124, %cst_91 {dimension_numbers = #tpu.dot_dimension_numbers<[1], [0], [0], [1], [0, 0, 1, 1], [], []>} : vector<8x32xf32>, vector<32x8xf32>, vector<8x8xf32> -> vector<8x8xf32>
    %c3_92 = arith.constant 3 : index
    %c0_93 = arith.constant 0 : index
    %c0_94 = arith.constant 0 : index
    %126 = vector.load %arg5[%c3_92, %c0_93, %c0_94] : memref<8x1x8xf32, #tpu.memory_space<vmem>>, vector<1x1x8xf32>
    %127 = vector.shape_cast %126 : vector<1x1x8xf32> to vector<1x8xf32>
    %128 = vector.broadcast %127 : vector<1x8xf32> to vector<8x8xf32>
    %129 = arith.addf %125, %128 : vector<8x8xf32>
    %c3_95 = arith.constant 3 : index
    %c0_96 = arith.constant 0 : index
    %c0_97 = arith.constant 0 : index
    %130 = vector.load %arg3[%c3_95, %c0_96, %c0_97] : memref<8x32x8xf32, #tpu.memory_space<vmem>>, vector<1x32x8xf32>
    %131 = vector.shape_cast %130 : vector<1x32x8xf32> to vector<32x8xf32>
    %cst_98 = arith.constant dense<0.000000e+00> : vector<8x8xf32>
    %132 = tpu.matmul %1, %131, %cst_98 {dimension_numbers = #tpu.dot_dimension_numbers<[1], [0], [0], [1], [0, 0, 1, 1], [], []>} : vector<8x32xf32>, vector<32x8xf32>, vector<8x8xf32> -> vector<8x8xf32>
    %c3_99 = arith.constant 3 : index
    %c0_100 = arith.constant 0 : index
    %c0_101 = arith.constant 0 : index
    %133 = vector.load %arg6[%c3_99, %c0_100, %c0_101] : memref<8x1x8xf32, #tpu.memory_space<vmem>>, vector<1x1x8xf32>
    %134 = vector.shape_cast %133 : vector<1x1x8xf32> to vector<1x8xf32>
    %135 = vector.broadcast %134 : vector<1x8xf32> to vector<8x8xf32>
    %136 = arith.addf %132, %135 : vector<8x8xf32>
    %c3_102 = arith.constant 3 : index
    %c0_103 = arith.constant 0 : index
    %c0_104 = arith.constant 0 : index
    %137 = vector.load %arg4[%c3_102, %c0_103, %c0_104] : memref<8x32x8xf32, #tpu.memory_space<vmem>>, vector<1x32x8xf32>
    %138 = vector.shape_cast %137 : vector<1x32x8xf32> to vector<32x8xf32>
    %cst_105 = arith.constant dense<0.000000e+00> : vector<8x8xf32>
    %139 = tpu.matmul %1, %138, %cst_105 {dimension_numbers = #tpu.dot_dimension_numbers<[1], [0], [0], [1], [0, 0, 1, 1], [], []>} : vector<8x32xf32>, vector<32x8xf32>, vector<8x8xf32> -> vector<8x8xf32>
    %c3_106 = arith.constant 3 : index
    %c0_107 = arith.constant 0 : index
    %c0_108 = arith.constant 0 : index
    %140 = vector.load %arg7[%c3_106, %c0_107, %c0_108] : memref<8x1x8xf32, #tpu.memory_space<vmem>>, vector<1x1x8xf32>
    %141 = vector.shape_cast %140 : vector<1x1x8xf32> to vector<1x8xf32>
    %142 = vector.broadcast %141 : vector<1x8xf32> to vector<8x8xf32>
    %143 = arith.addf %139, %142 : vector<8x8xf32>
    %144 = tpu.transpose %136, [1, 0] : vector<8x8xf32> -> vector<8x8xf32>
    %cst_109 = arith.constant dense<0.000000e+00> : vector<8x8xf32>
    %145 = tpu.matmul %129, %144, %cst_109 {dimension_numbers = #tpu.dot_dimension_numbers<[1], [0], [0], [1], [0, 0, 1, 1], [], []>} : vector<8x8xf32>, vector<8x8xf32>, vector<8x8xf32> -> vector<8x8xf32>
    %cst_110 = arith.constant 0.353553385 : f32
    %146 = vector.broadcast %cst_110 : f32 to vector<8x8xf32>
    %147 = arith.mulf %145, %146 : vector<8x8xf32>
    %cst_111 = arith.constant dense<0xFF800000> : vector<8xf32>
    %148 = vector.multi_reduction <maximumf>, %147, %cst_111 [1] : vector<8x8xf32> to vector<8xf32>
    %149 = vector.shape_cast %148 : vector<8xf32> to vector<8x1xf32>
    %150 = vector.broadcast %149 : vector<8x1xf32> to vector<8x8xf32>
    %151 = arith.subf %147, %150 : vector<8x8xf32>
    %152 = math.exp %151 : vector<8x8xf32>
    %cst_112 = arith.constant dense<0.000000e+00> : vector<8xf32>
    %153 = vector.multi_reduction <add>, %152, %cst_112 [1] : vector<8x8xf32> to vector<8xf32>
    %154 = vector.shape_cast %153 : vector<8xf32> to vector<8x1xf32>
    %155 = tpu.reciprocal %154 {approx = true} : vector<8x1xf32> -> vector<8x1xf32>
    %156 = vector.broadcast %155 : vector<8x1xf32> to vector<8x8xf32>
    %157 = arith.mulf %152, %156 : vector<8x8xf32>
    %cst_113 = arith.constant dense<0.000000e+00> : vector<8x8xf32>
    %158 = tpu.matmul %157, %143, %cst_113 {dimension_numbers = #tpu.dot_dimension_numbers<[1], [0], [0], [1], [0, 0, 1, 1], [], []>} : vector<8x8xf32>, vector<8x8xf32>, vector<8x8xf32> -> vector<8x8xf32>
    %c3_114 = arith.constant 3 : index
    %c0_115 = arith.constant 0 : index
    %c0_116 = arith.constant 0 : index
    %159 = vector.load %arg8[%c3_114, %c0_115, %c0_116] : memref<8x8x32xf32, #tpu.memory_space<vmem>>, vector<1x8x32xf32>
    %160 = vector.shape_cast %159 : vector<1x8x32xf32> to vector<8x32xf32>
    %cst_117 = arith.constant dense<0.000000e+00> : vector<8x32xf32>
    %161 = tpu.matmul %158, %160, %cst_117 {dimension_numbers = #tpu.dot_dimension_numbers<[1], [0], [0], [1], [0, 0, 1, 1], [], []>} : vector<8x8xf32>, vector<8x32xf32>, vector<8x32xf32> -> vector<8x32xf32>
    %162 = arith.addf %122, %161 : vector<8x32xf32>
    %163 = vector.extract_strided_slice %0 {offsets = [8, 0], sizes = [8, 32], strides = [1, 1]} : vector<16x32xf32> to vector<8x32xf32>
    %cst_118 = arith.constant 0.000000e+00 : f32
    %164 = vector.broadcast %cst_118 : f32 to vector<8x32xf32>
    %c0_119 = arith.constant 0 : index
    %c0_120 = arith.constant 0 : index
    %c0_121 = arith.constant 0 : index
    %165 = vector.load %arg2[%c0_119, %c0_120, %c0_121] : memref<8x32x8xf32, #tpu.memory_space<vmem>>, vector<1x32x8xf32>
    %166 = vector.shape_cast %165 : vector<1x32x8xf32> to vector<32x8xf32>
    %cst_122 = arith.constant dense<0.000000e+00> : vector<8x8xf32>
    %167 = tpu.matmul %163, %166, %cst_122 {dimension_numbers = #tpu.dot_dimension_numbers<[1], [0], [0], [1], [0, 0, 1, 1], [], []>} : vector<8x32xf32>, vector<32x8xf32>, vector<8x8xf32> -> vector<8x8xf32>
    %c0_123 = arith.constant 0 : index
    %c0_124 = arith.constant 0 : index
    %c0_125 = arith.constant 0 : index
    %168 = vector.load %arg5[%c0_123, %c0_124, %c0_125] : memref<8x1x8xf32, #tpu.memory_space<vmem>>, vector<1x1x8xf32>
    %169 = vector.shape_cast %168 : vector<1x1x8xf32> to vector<1x8xf32>
    %170 = vector.broadcast %169 : vector<1x8xf32> to vector<8x8xf32>
    %171 = arith.addf %167, %170 : vector<8x8xf32>
    %c0_126 = arith.constant 0 : index
    %c0_127 = arith.constant 0 : index
    %c0_128 = arith.constant 0 : index
    %172 = vector.load %arg3[%c0_126, %c0_127, %c0_128] : memref<8x32x8xf32, #tpu.memory_space<vmem>>, vector<1x32x8xf32>
    %173 = vector.shape_cast %172 : vector<1x32x8xf32> to vector<32x8xf32>
    %cst_129 = arith.constant dense<0.000000e+00> : vector<8x8xf32>
    %174 = tpu.matmul %163, %173, %cst_129 {dimension_numbers = #tpu.dot_dimension_numbers<[1], [0], [0], [1], [0, 0, 1, 1], [], []>} : vector<8x32xf32>, vector<32x8xf32>, vector<8x8xf32> -> vector<8x8xf32>
    %c0_130 = arith.constant 0 : index
    %c0_131 = arith.constant 0 : index
    %c0_132 = arith.constant 0 : index
    %175 = vector.load %arg6[%c0_130, %c0_131, %c0_132] : memref<8x1x8xf32, #tpu.memory_space<vmem>>, vector<1x1x8xf32>
    %176 = vector.shape_cast %175 : vector<1x1x8xf32> to vector<1x8xf32>
    %177 = vector.broadcast %176 : vector<1x8xf32> to vector<8x8xf32>
    %178 = arith.addf %174, %177 : vector<8x8xf32>
    %c0_133 = arith.constant 0 : index
    %c0_134 = arith.constant 0 : index
    %c0_135 = arith.constant 0 : index
    %179 = vector.load %arg4[%c0_133, %c0_134, %c0_135] : memref<8x32x8xf32, #tpu.memory_space<vmem>>, vector<1x32x8xf32>
    %180 = vector.shape_cast %179 : vector<1x32x8xf32> to vector<32x8xf32>
    %cst_136 = arith.constant dense<0.000000e+00> : vector<8x8xf32>
    %181 = tpu.matmul %163, %180, %cst_136 {dimension_numbers = #tpu.dot_dimension_numbers<[1], [0], [0], [1], [0, 0, 1, 1], [], []>} : vector<8x32xf32>, vector<32x8xf32>, vector<8x8xf32> -> vector<8x8xf32>
    %c0_137 = arith.constant 0 : index
    %c0_138 = arith.constant 0 : index
    %c0_139 = arith.constant 0 : index
    %182 = vector.load %arg7[%c0_137, %c0_138, %c0_139] : memref<8x1x8xf32, #tpu.memory_space<vmem>>, vector<1x1x8xf32>
    %183 = vector.shape_cast %182 : vector<1x1x8xf32> to vector<1x8xf32>
    %184 = vector.broadcast %183 : vector<1x8xf32> to vector<8x8xf32>
    %185 = arith.addf %181, %184 : vector<8x8xf32>
    %186 = tpu.transpose %178, [1, 0] : vector<8x8xf32> -> vector<8x8xf32>
    %cst_140 = arith.constant dense<0.000000e+00> : vector<8x8xf32>
    %187 = tpu.matmul %171, %186, %cst_140 {dimension_numbers = #tpu.dot_dimension_numbers<[1], [0], [0], [1], [0, 0, 1, 1], [], []>} : vector<8x8xf32>, vector<8x8xf32>, vector<8x8xf32> -> vector<8x8xf32>
    %cst_141 = arith.constant 0.353553385 : f32
    %188 = vector.broadcast %cst_141 : f32 to vector<8x8xf32>
    %189 = arith.mulf %187, %188 : vector<8x8xf32>
    %cst_142 = arith.constant dense<0xFF800000> : vector<8xf32>
    %190 = vector.multi_reduction <maximumf>, %189, %cst_142 [1] : vector<8x8xf32> to vector<8xf32>
    %191 = vector.shape_cast %190 : vector<8xf32> to vector<8x1xf32>
    %192 = vector.broadcast %191 : vector<8x1xf32> to vector<8x8xf32>
    %193 = arith.subf %189, %192 : vector<8x8xf32>
    %194 = math.exp %193 : vector<8x8xf32>
    %cst_143 = arith.constant dense<0.000000e+00> : vector<8xf32>
    %195 = vector.multi_reduction <add>, %194, %cst_143 [1] : vector<8x8xf32> to vector<8xf32>
    %196 = vector.shape_cast %195 : vector<8xf32> to vector<8x1xf32>
    %197 = tpu.reciprocal %196 {approx = true} : vector<8x1xf32> -> vector<8x1xf32>
    %198 = vector.broadcast %197 : vector<8x1xf32> to vector<8x8xf32>
    %199 = arith.mulf %194, %198 : vector<8x8xf32>
    %cst_144 = arith.constant dense<0.000000e+00> : vector<8x8xf32>
    %200 = tpu.matmul %199, %185, %cst_144 {dimension_numbers = #tpu.dot_dimension_numbers<[1], [0], [0], [1], [0, 0, 1, 1], [], []>} : vector<8x8xf32>, vector<8x8xf32>, vector<8x8xf32> -> vector<8x8xf32>
    %c0_145 = arith.constant 0 : index
    %c0_146 = arith.constant 0 : index
    %c0_147 = arith.constant 0 : index
    %201 = vector.load %arg8[%c0_145, %c0_146, %c0_147] : memref<8x8x32xf32, #tpu.memory_space<vmem>>, vector<1x8x32xf32>
    %202 = vector.shape_cast %201 : vector<1x8x32xf32> to vector<8x32xf32>
    %cst_148 = arith.constant dense<0.000000e+00> : vector<8x32xf32>
    %203 = tpu.matmul %200, %202, %cst_148 {dimension_numbers = #tpu.dot_dimension_numbers<[1], [0], [0], [1], [0, 0, 1, 1], [], []>} : vector<8x8xf32>, vector<8x32xf32>, vector<8x32xf32> -> vector<8x32xf32>
    %204 = arith.addf %164, %203 : vector<8x32xf32>
    %c1_149 = arith.constant 1 : index
    %c0_150 = arith.constant 0 : index
    %c0_151 = arith.constant 0 : index
    %205 = vector.load %arg2[%c1_149, %c0_150, %c0_151] : memref<8x32x8xf32, #tpu.memory_space<vmem>>, vector<1x32x8xf32>
    %206 = vector.shape_cast %205 : vector<1x32x8xf32> to vector<32x8xf32>
    %cst_152 = arith.constant dense<0.000000e+00> : vector<8x8xf32>
    %207 = tpu.matmul %163, %206, %cst_152 {dimension_numbers = #tpu.dot_dimension_numbers<[1], [0], [0], [1], [0, 0, 1, 1], [], []>} : vector<8x32xf32>, vector<32x8xf32>, vector<8x8xf32> -> vector<8x8xf32>
    %c1_153 = arith.constant 1 : index
    %c0_154 = arith.constant 0 : index
    %c0_155 = arith.constant 0 : index
    %208 = vector.load %arg5[%c1_153, %c0_154, %c0_155] : memref<8x1x8xf32, #tpu.memory_space<vmem>>, vector<1x1x8xf32>
    %209 = vector.shape_cast %208 : vector<1x1x8xf32> to vector<1x8xf32>
    %210 = vector.broadcast %209 : vector<1x8xf32> to vector<8x8xf32>
    %211 = arith.addf %207, %210 : vector<8x8xf32>
    %c1_156 = arith.constant 1 : index
    %c0_157 = arith.constant 0 : index
    %c0_158 = arith.constant 0 : index
    %212 = vector.load %arg3[%c1_156, %c0_157, %c0_158] : memref<8x32x8xf32, #tpu.memory_space<vmem>>, vector<1x32x8xf32>
    %213 = vector.shape_cast %212 : vector<1x32x8xf32> to vector<32x8xf32>
    %cst_159 = arith.constant dense<0.000000e+00> : vector<8x8xf32>
    %214 = tpu.matmul %163, %213, %cst_159 {dimension_numbers = #tpu.dot_dimension_numbers<[1], [0], [0], [1], [0, 0, 1, 1], [], []>} : vector<8x32xf32>, vector<32x8xf32>, vector<8x8xf32> -> vector<8x8xf32>
    %c1_160 = arith.constant 1 : index
    %c0_161 = arith.constant 0 : index
    %c0_162 = arith.constant 0 : index
    %215 = vector.load %arg6[%c1_160, %c0_161, %c0_162] : memref<8x1x8xf32, #tpu.memory_space<vmem>>, vector<1x1x8xf32>
    %216 = vector.shape_cast %215 : vector<1x1x8xf32> to vector<1x8xf32>
    %217 = vector.broadcast %216 : vector<1x8xf32> to vector<8x8xf32>
    %218 = arith.addf %214, %217 : vector<8x8xf32>
    %c1_163 = arith.constant 1 : index
    %c0_164 = arith.constant 0 : index
    %c0_165 = arith.constant 0 : index
    %219 = vector.load %arg4[%c1_163, %c0_164, %c0_165] : memref<8x32x8xf32, #tpu.memory_space<vmem>>, vector<1x32x8xf32>
    %220 = vector.shape_cast %219 : vector<1x32x8xf32> to vector<32x8xf32>
    %cst_166 = arith.constant dense<0.000000e+00> : vector<8x8xf32>
    %221 = tpu.matmul %163, %220, %cst_166 {dimension_numbers = #tpu.dot_dimension_numbers<[1], [0], [0], [1], [0, 0, 1, 1], [], []>} : vector<8x32xf32>, vector<32x8xf32>, vector<8x8xf32> -> vector<8x8xf32>
    %c1_167 = arith.constant 1 : index
    %c0_168 = arith.constant 0 : index
    %c0_169 = arith.constant 0 : index
    %222 = vector.load %arg7[%c1_167, %c0_168, %c0_169] : memref<8x1x8xf32, #tpu.memory_space<vmem>>, vector<1x1x8xf32>
    %223 = vector.shape_cast %222 : vector<1x1x8xf32> to vector<1x8xf32>
    %224 = vector.broadcast %223 : vector<1x8xf32> to vector<8x8xf32>
    %225 = arith.addf %221, %224 : vector<8x8xf32>
    %226 = tpu.transpose %218, [1, 0] : vector<8x8xf32> -> vector<8x8xf32>
    %cst_170 = arith.constant dense<0.000000e+00> : vector<8x8xf32>
    %227 = tpu.matmul %211, %226, %cst_170 {dimension_numbers = #tpu.dot_dimension_numbers<[1], [0], [0], [1], [0, 0, 1, 1], [], []>} : vector<8x8xf32>, vector<8x8xf32>, vector<8x8xf32> -> vector<8x8xf32>
    %cst_171 = arith.constant 0.353553385 : f32
    %228 = vector.broadcast %cst_171 : f32 to vector<8x8xf32>
    %229 = arith.mulf %227, %228 : vector<8x8xf32>
    %cst_172 = arith.constant dense<0xFF800000> : vector<8xf32>
    %230 = vector.multi_reduction <maximumf>, %229, %cst_172 [1] : vector<8x8xf32> to vector<8xf32>
    %231 = vector.shape_cast %230 : vector<8xf32> to vector<8x1xf32>
    %232 = vector.broadcast %231 : vector<8x1xf32> to vector<8x8xf32>
    %233 = arith.subf %229, %232 : vector<8x8xf32>
    %234 = math.exp %233 : vector<8x8xf32>
    %cst_173 = arith.constant dense<0.000000e+00> : vector<8xf32>
    %235 = vector.multi_reduction <add>, %234, %cst_173 [1] : vector<8x8xf32> to vector<8xf32>
    %236 = vector.shape_cast %235 : vector<8xf32> to vector<8x1xf32>
    %237 = tpu.reciprocal %236 {approx = true} : vector<8x1xf32> -> vector<8x1xf32>
    %238 = vector.broadcast %237 : vector<8x1xf32> to vector<8x8xf32>
    %239 = arith.mulf %234, %238 : vector<8x8xf32>
    %cst_174 = arith.constant dense<0.000000e+00> : vector<8x8xf32>
    %240 = tpu.matmul %239, %225, %cst_174 {dimension_numbers = #tpu.dot_dimension_numbers<[1], [0], [0], [1], [0, 0, 1, 1], [], []>} : vector<8x8xf32>, vector<8x8xf32>, vector<8x8xf32> -> vector<8x8xf32>
    %c1_175 = arith.constant 1 : index
    %c0_176 = arith.constant 0 : index
    %c0_177 = arith.constant 0 : index
    %241 = vector.load %arg8[%c1_175, %c0_176, %c0_177] : memref<8x8x32xf32, #tpu.memory_space<vmem>>, vector<1x8x32xf32>
    %242 = vector.shape_cast %241 : vector<1x8x32xf32> to vector<8x32xf32>
    %cst_178 = arith.constant dense<0.000000e+00> : vector<8x32xf32>
    %243 = tpu.matmul %240, %242, %cst_178 {dimension_numbers = #tpu.dot_dimension_numbers<[1], [0], [0], [1], [0, 0, 1, 1], [], []>} : vector<8x8xf32>, vector<8x32xf32>, vector<8x32xf32> -> vector<8x32xf32>
    %244 = arith.addf %204, %243 : vector<8x32xf32>
    %c2_179 = arith.constant 2 : index
    %c0_180 = arith.constant 0 : index
    %c0_181 = arith.constant 0 : index
    %245 = vector.load %arg2[%c2_179, %c0_180, %c0_181] : memref<8x32x8xf32, #tpu.memory_space<vmem>>, vector<1x32x8xf32>
    %246 = vector.shape_cast %245 : vector<1x32x8xf32> to vector<32x8xf32>
    %cst_182 = arith.constant dense<0.000000e+00> : vector<8x8xf32>
    %247 = tpu.matmul %163, %246, %cst_182 {dimension_numbers = #tpu.dot_dimension_numbers<[1], [0], [0], [1], [0, 0, 1, 1], [], []>} : vector<8x32xf32>, vector<32x8xf32>, vector<8x8xf32> -> vector<8x8xf32>
    %c2_183 = arith.constant 2 : index
    %c0_184 = arith.constant 0 : index
    %c0_185 = arith.constant 0 : index
    %248 = vector.load %arg5[%c2_183, %c0_184, %c0_185] : memref<8x1x8xf32, #tpu.memory_space<vmem>>, vector<1x1x8xf32>
    %249 = vector.shape_cast %248 : vector<1x1x8xf32> to vector<1x8xf32>
    %250 = vector.broadcast %249 : vector<1x8xf32> to vector<8x8xf32>
    %251 = arith.addf %247, %250 : vector<8x8xf32>
    %c2_186 = arith.constant 2 : index
    %c0_187 = arith.constant 0 : index
    %c0_188 = arith.constant 0 : index
    %252 = vector.load %arg3[%c2_186, %c0_187, %c0_188] : memref<8x32x8xf32, #tpu.memory_space<vmem>>, vector<1x32x8xf32>
    %253 = vector.shape_cast %252 : vector<1x32x8xf32> to vector<32x8xf32>
    %cst_189 = arith.constant dense<0.000000e+00> : vector<8x8xf32>
    %254 = tpu.matmul %163, %253, %cst_189 {dimension_numbers = #tpu.dot_dimension_numbers<[1], [0], [0], [1], [0, 0, 1, 1], [], []>} : vector<8x32xf32>, vector<32x8xf32>, vector<8x8xf32> -> vector<8x8xf32>
    %c2_190 = arith.constant 2 : index
    %c0_191 = arith.constant 0 : index
    %c0_192 = arith.constant 0 : index
    %255 = vector.load %arg6[%c2_190, %c0_191, %c0_192] : memref<8x1x8xf32, #tpu.memory_space<vmem>>, vector<1x1x8xf32>
    %256 = vector.shape_cast %255 : vector<1x1x8xf32> to vector<1x8xf32>
    %257 = vector.broadcast %256 : vector<1x8xf32> to vector<8x8xf32>
    %258 = arith.addf %254, %257 : vector<8x8xf32>
    %c2_193 = arith.constant 2 : index
    %c0_194 = arith.constant 0 : index
    %c0_195 = arith.constant 0 : index
    %259 = vector.load %arg4[%c2_193, %c0_194, %c0_195] : memref<8x32x8xf32, #tpu.memory_space<vmem>>, vector<1x32x8xf32>
    %260 = vector.shape_cast %259 : vector<1x32x8xf32> to vector<32x8xf32>
    %cst_196 = arith.constant dense<0.000000e+00> : vector<8x8xf32>
    %261 = tpu.matmul %163, %260, %cst_196 {dimension_numbers = #tpu.dot_dimension_numbers<[1], [0], [0], [1], [0, 0, 1, 1], [], []>} : vector<8x32xf32>, vector<32x8xf32>, vector<8x8xf32> -> vector<8x8xf32>
    %c2_197 = arith.constant 2 : index
    %c0_198 = arith.constant 0 : index
    %c0_199 = arith.constant 0 : index
    %262 = vector.load %arg7[%c2_197, %c0_198, %c0_199] : memref<8x1x8xf32, #tpu.memory_space<vmem>>, vector<1x1x8xf32>
    %263 = vector.shape_cast %262 : vector<1x1x8xf32> to vector<1x8xf32>
    %264 = vector.broadcast %263 : vector<1x8xf32> to vector<8x8xf32>
    %265 = arith.addf %261, %264 : vector<8x8xf32>
    %266 = tpu.transpose %258, [1, 0] : vector<8x8xf32> -> vector<8x8xf32>
    %cst_200 = arith.constant dense<0.000000e+00> : vector<8x8xf32>
    %267 = tpu.matmul %251, %266, %cst_200 {dimension_numbers = #tpu.dot_dimension_numbers<[1], [0], [0], [1], [0, 0, 1, 1], [], []>} : vector<8x8xf32>, vector<8x8xf32>, vector<8x8xf32> -> vector<8x8xf32>
    %cst_201 = arith.constant 0.353553385 : f32
    %268 = vector.broadcast %cst_201 : f32 to vector<8x8xf32>
    %269 = arith.mulf %267, %268 : vector<8x8xf32>
    %cst_202 = arith.constant dense<0xFF800000> : vector<8xf32>
    %270 = vector.multi_reduction <maximumf>, %269, %cst_202 [1] : vector<8x8xf32> to vector<8xf32>
    %271 = vector.shape_cast %270 : vector<8xf32> to vector<8x1xf32>
    %272 = vector.broadcast %271 : vector<8x1xf32> to vector<8x8xf32>
    %273 = arith.subf %269, %272 : vector<8x8xf32>
    %274 = math.exp %273 : vector<8x8xf32>
    %cst_203 = arith.constant dense<0.000000e+00> : vector<8xf32>
    %275 = vector.multi_reduction <add>, %274, %cst_203 [1] : vector<8x8xf32> to vector<8xf32>
    %276 = vector.shape_cast %275 : vector<8xf32> to vector<8x1xf32>
    %277 = tpu.reciprocal %276 {approx = true} : vector<8x1xf32> -> vector<8x1xf32>
    %278 = vector.broadcast %277 : vector<8x1xf32> to vector<8x8xf32>
    %279 = arith.mulf %274, %278 : vector<8x8xf32>
    %cst_204 = arith.constant dense<0.000000e+00> : vector<8x8xf32>
    %280 = tpu.matmul %279, %265, %cst_204 {dimension_numbers = #tpu.dot_dimension_numbers<[1], [0], [0], [1], [0, 0, 1, 1], [], []>} : vector<8x8xf32>, vector<8x8xf32>, vector<8x8xf32> -> vector<8x8xf32>
    %c2_205 = arith.constant 2 : index
    %c0_206 = arith.constant 0 : index
    %c0_207 = arith.constant 0 : index
    %281 = vector.load %arg8[%c2_205, %c0_206, %c0_207] : memref<8x8x32xf32, #tpu.memory_space<vmem>>, vector<1x8x32xf32>
    %282 = vector.shape_cast %281 : vector<1x8x32xf32> to vector<8x32xf32>
    %cst_208 = arith.constant dense<0.000000e+00> : vector<8x32xf32>
    %283 = tpu.matmul %280, %282, %cst_208 {dimension_numbers = #tpu.dot_dimension_numbers<[1], [0], [0], [1], [0, 0, 1, 1], [], []>} : vector<8x8xf32>, vector<8x32xf32>, vector<8x32xf32> -> vector<8x32xf32>
    %284 = arith.addf %244, %283 : vector<8x32xf32>
    %c3_209 = arith.constant 3 : index
    %c0_210 = arith.constant 0 : index
    %c0_211 = arith.constant 0 : index
    %285 = vector.load %arg2[%c3_209, %c0_210, %c0_211] : memref<8x32x8xf32, #tpu.memory_space<vmem>>, vector<1x32x8xf32>
    %286 = vector.shape_cast %285 : vector<1x32x8xf32> to vector<32x8xf32>
    %cst_212 = arith.constant dense<0.000000e+00> : vector<8x8xf32>
    %287 = tpu.matmul %163, %286, %cst_212 {dimension_numbers = #tpu.dot_dimension_numbers<[1], [0], [0], [1], [0, 0, 1, 1], [], []>} : vector<8x32xf32>, vector<32x8xf32>, vector<8x8xf32> -> vector<8x8xf32>
    %c3_213 = arith.constant 3 : index
    %c0_214 = arith.constant 0 : index
    %c0_215 = arith.constant 0 : index
    %288 = vector.load %arg5[%c3_213, %c0_214, %c0_215] : memref<8x1x8xf32, #tpu.memory_space<vmem>>, vector<1x1x8xf32>
    %289 = vector.shape_cast %288 : vector<1x1x8xf32> to vector<1x8xf32>
    %290 = vector.broadcast %289 : vector<1x8xf32> to vector<8x8xf32>
    %291 = arith.addf %287, %290 : vector<8x8xf32>
    %c3_216 = arith.constant 3 : index
    %c0_217 = arith.constant 0 : index
    %c0_218 = arith.constant 0 : index
    %292 = vector.load %arg3[%c3_216, %c0_217, %c0_218] : memref<8x32x8xf32, #tpu.memory_space<vmem>>, vector<1x32x8xf32>
    %293 = vector.shape_cast %292 : vector<1x32x8xf32> to vector<32x8xf32>
    %cst_219 = arith.constant dense<0.000000e+00> : vector<8x8xf32>
    %294 = tpu.matmul %163, %293, %cst_219 {dimension_numbers = #tpu.dot_dimension_numbers<[1], [0], [0], [1], [0, 0, 1, 1], [], []>} : vector<8x32xf32>, vector<32x8xf32>, vector<8x8xf32> -> vector<8x8xf32>
    %c3_220 = arith.constant 3 : index
    %c0_221 = arith.constant 0 : index
    %c0_222 = arith.constant 0 : index
    %295 = vector.load %arg6[%c3_220, %c0_221, %c0_222] : memref<8x1x8xf32, #tpu.memory_space<vmem>>, vector<1x1x8xf32>
    %296 = vector.shape_cast %295 : vector<1x1x8xf32> to vector<1x8xf32>
    %297 = vector.broadcast %296 : vector<1x8xf32> to vector<8x8xf32>
    %298 = arith.addf %294, %297 : vector<8x8xf32>
    %c3_223 = arith.constant 3 : index
    %c0_224 = arith.constant 0 : index
    %c0_225 = arith.constant 0 : index
    %299 = vector.load %arg4[%c3_223, %c0_224, %c0_225] : memref<8x32x8xf32, #tpu.memory_space<vmem>>, vector<1x32x8xf32>
    %300 = vector.shape_cast %299 : vector<1x32x8xf32> to vector<32x8xf32>
    %cst_226 = arith.constant dense<0.000000e+00> : vector<8x8xf32>
    %301 = tpu.matmul %163, %300, %cst_226 {dimension_numbers = #tpu.dot_dimension_numbers<[1], [0], [0], [1], [0, 0, 1, 1], [], []>} : vector<8x32xf32>, vector<32x8xf32>, vector<8x8xf32> -> vector<8x8xf32>
    %c3_227 = arith.constant 3 : index
    %c0_228 = arith.constant 0 : index
    %c0_229 = arith.constant 0 : index
    %302 = vector.load %arg7[%c3_227, %c0_228, %c0_229] : memref<8x1x8xf32, #tpu.memory_space<vmem>>, vector<1x1x8xf32>
    %303 = vector.shape_cast %302 : vector<1x1x8xf32> to vector<1x8xf32>
    %304 = vector.broadcast %303 : vector<1x8xf32> to vector<8x8xf32>
    %305 = arith.addf %301, %304 : vector<8x8xf32>
    %306 = tpu.transpose %298, [1, 0] : vector<8x8xf32> -> vector<8x8xf32>
    %cst_230 = arith.constant dense<0.000000e+00> : vector<8x8xf32>
    %307 = tpu.matmul %291, %306, %cst_230 {dimension_numbers = #tpu.dot_dimension_numbers<[1], [0], [0], [1], [0, 0, 1, 1], [], []>} : vector<8x8xf32>, vector<8x8xf32>, vector<8x8xf32> -> vector<8x8xf32>
    %cst_231 = arith.constant 0.353553385 : f32
    %308 = vector.broadcast %cst_231 : f32 to vector<8x8xf32>
    %309 = arith.mulf %307, %308 : vector<8x8xf32>
    %cst_232 = arith.constant dense<0xFF800000> : vector<8xf32>
    %310 = vector.multi_reduction <maximumf>, %309, %cst_232 [1] : vector<8x8xf32> to vector<8xf32>
    %311 = vector.shape_cast %310 : vector<8xf32> to vector<8x1xf32>
    %312 = vector.broadcast %311 : vector<8x1xf32> to vector<8x8xf32>
    %313 = arith.subf %309, %312 : vector<8x8xf32>
    %314 = math.exp %313 : vector<8x8xf32>
    %cst_233 = arith.constant dense<0.000000e+00> : vector<8xf32>
    %315 = vector.multi_reduction <add>, %314, %cst_233 [1] : vector<8x8xf32> to vector<8xf32>
    %316 = vector.shape_cast %315 : vector<8xf32> to vector<8x1xf32>
    %317 = tpu.reciprocal %316 {approx = true} : vector<8x1xf32> -> vector<8x1xf32>
    %318 = vector.broadcast %317 : vector<8x1xf32> to vector<8x8xf32>
    %319 = arith.mulf %314, %318 : vector<8x8xf32>
    %cst_234 = arith.constant dense<0.000000e+00> : vector<8x8xf32>
    %320 = tpu.matmul %319, %305, %cst_234 {dimension_numbers = #tpu.dot_dimension_numbers<[1], [0], [0], [1], [0, 0, 1, 1], [], []>} : vector<8x8xf32>, vector<8x8xf32>, vector<8x8xf32> -> vector<8x8xf32>
    %c3_235 = arith.constant 3 : index
    %c0_236 = arith.constant 0 : index
    %c0_237 = arith.constant 0 : index
    %321 = vector.load %arg8[%c3_235, %c0_236, %c0_237] : memref<8x8x32xf32, #tpu.memory_space<vmem>>, vector<1x8x32xf32>
    %322 = vector.shape_cast %321 : vector<1x8x32xf32> to vector<8x32xf32>
    %cst_238 = arith.constant dense<0.000000e+00> : vector<8x32xf32>
    %323 = tpu.matmul %320, %322, %cst_238 {dimension_numbers = #tpu.dot_dimension_numbers<[1], [0], [0], [1], [0, 0, 1, 1], [], []>} : vector<8x8xf32>, vector<8x32xf32>, vector<8x32xf32> -> vector<8x32xf32>
    %324 = arith.addf %284, %323 : vector<8x32xf32>
    %325 = tpu.concatenate %162, %324 in 0 : vector<8x32xf32>, vector<8x32xf32> -> vector<16x32xf32>
    %c0_239 = arith.constant 0 : index
    %c0_240 = arith.constant 0 : index
    %c0_241 = arith.constant 0 : index
    %326 = vector.load %arg9[%c0_239, %c0_240, %c0_241] : memref<2x1x32xf32, #tpu.memory_space<vmem>>, vector<1x1x32xf32>
    %327 = vector.shape_cast %326 : vector<1x1x32xf32> to vector<1x32xf32>
    %328 = vector.broadcast %327 : vector<1x32xf32> to vector<16x32xf32>
    %329 = arith.addf %325, %328 : vector<16x32xf32>
    %330 = arith.addf %329, %0 : vector<16x32xf32>
    %c0_242 = arith.constant 0 : index
    %c0_243 = arith.constant 0 : index
    %c0_244 = arith.constant 0 : index
    %331 = vector.load %arg10[%c0_242, %c0_243, %c0_244] : memref<2x1x32xf32, #tpu.memory_space<vmem>>, vector<1x1x32xf32>
    %332 = vector.shape_cast %331 : vector<1x1x32xf32> to vector<1x32xf32>
    %c0_245 = arith.constant 0 : index
    %c0_246 = arith.constant 0 : index
    %c0_247 = arith.constant 0 : index
    %333 = vector.load %arg11[%c0_245, %c0_246, %c0_247] : memref<2x1x32xf32, #tpu.memory_space<vmem>>, vector<1x1x32xf32>
    %334 = vector.shape_cast %333 : vector<1x1x32xf32> to vector<1x32xf32>
    %cst_248 = arith.constant dense<0.000000e+00> : vector<16xf32>
    %335 = vector.multi_reduction <add>, %330, %cst_248 [1] : vector<16x32xf32> to vector<16xf32>
    %336 = vector.shape_cast %335 : vector<16xf32> to vector<16x1xf32>
    %cst_249 = arith.constant 3.200000e+01 : f32
    %337 = vector.broadcast %cst_249 : f32 to vector<16x1xf32>
    %338 = arith.divf %336, %337 : vector<16x1xf32>
    %339 = vector.broadcast %338 : vector<16x1xf32> to vector<16x32xf32>
    %340 = arith.subf %330, %339 : vector<16x32xf32>
    %341 = arith.mulf %340, %340 : vector<16x32xf32>
    %cst_250 = arith.constant dense<0.000000e+00> : vector<16xf32>
    %342 = vector.multi_reduction <add>, %341, %cst_250 [1] : vector<16x32xf32> to vector<16xf32>
    %343 = vector.shape_cast %342 : vector<16xf32> to vector<16x1xf32>
    %cst_251 = arith.constant 3.200000e+01 : f32
    %344 = vector.broadcast %cst_251 : f32 to vector<16x1xf32>
    %345 = arith.divf %343, %344 : vector<16x1xf32>
    %cst_252 = arith.constant 9.99999974E-6 : f32
    %346 = vector.broadcast %cst_252 : f32 to vector<16x1xf32>
    %347 = arith.addf %345, %346 : vector<16x1xf32>
    %348 = math.rsqrt %347 : vector<16x1xf32>
    %349 = vector.broadcast %338 : vector<16x1xf32> to vector<16x32xf32>
    %350 = arith.subf %330, %349 : vector<16x32xf32>
    %351 = vector.broadcast %348 : vector<16x1xf32> to vector<16x32xf32>
    %352 = arith.mulf %350, %351 : vector<16x32xf32>
    %353 = vector.broadcast %332 : vector<1x32xf32> to vector<16x32xf32>
    %354 = arith.mulf %352, %353 : vector<16x32xf32>
    %355 = vector.broadcast %334 : vector<1x32xf32> to vector<16x32xf32>
    %356 = arith.addf %354, %355 : vector<16x32xf32>
    %c0_253 = arith.constant 0 : index
    %c0_254 = arith.constant 0 : index
    %c0_255 = arith.constant 0 : index
    %357 = vector.load %arg12[%c0_253, %c0_254, %c0_255] : memref<2x32x64xf32, #tpu.memory_space<vmem>>, vector<1x32x64xf32>
    %358 = vector.shape_cast %357 : vector<1x32x64xf32> to vector<32x64xf32>
    %cst_256 = arith.constant dense<0.000000e+00> : vector<16x64xf32>
    %359 = tpu.matmul %356, %358, %cst_256 {dimension_numbers = #tpu.dot_dimension_numbers<[1], [0], [0], [1], [0, 0, 1, 1], [], []>} : vector<16x32xf32>, vector<32x64xf32>, vector<16x64xf32> -> vector<16x64xf32>
    %c0_257 = arith.constant 0 : index
    %c0_258 = arith.constant 0 : index
    %c0_259 = arith.constant 0 : index
    %360 = vector.load %arg13[%c0_257, %c0_258, %c0_259] : memref<2x1x64xf32, #tpu.memory_space<vmem>>, vector<1x1x64xf32>
    %361 = vector.shape_cast %360 : vector<1x1x64xf32> to vector<1x64xf32>
    %362 = vector.broadcast %361 : vector<1x64xf32> to vector<16x64xf32>
    %363 = arith.addf %359, %362 : vector<16x64xf32>
    %cst_260 = arith.constant 0.000000e+00 : f32
    %364 = vector.broadcast %cst_260 : f32 to vector<16x64xf32>
    %365 = arith.maximumf %363, %364 : vector<16x64xf32>
    %c0_261 = arith.constant 0 : index
    %c0_262 = arith.constant 0 : index
    %c0_263 = arith.constant 0 : index
    %366 = vector.load %arg14[%c0_261, %c0_262, %c0_263] : memref<2x64x32xf32, #tpu.memory_space<vmem>>, vector<1x64x32xf32>
    %367 = vector.shape_cast %366 : vector<1x64x32xf32> to vector<64x32xf32>
    %cst_264 = arith.constant dense<0.000000e+00> : vector<16x32xf32>
    %368 = tpu.matmul %365, %367, %cst_264 {dimension_numbers = #tpu.dot_dimension_numbers<[1], [0], [0], [1], [0, 0, 1, 1], [], []>} : vector<16x64xf32>, vector<64x32xf32>, vector<16x32xf32> -> vector<16x32xf32>
    %c0_265 = arith.constant 0 : index
    %c0_266 = arith.constant 0 : index
    %c0_267 = arith.constant 0 : index
    %369 = vector.load %arg15[%c0_265, %c0_266, %c0_267] : memref<2x1x32xf32, #tpu.memory_space<vmem>>, vector<1x1x32xf32>
    %370 = vector.shape_cast %369 : vector<1x1x32xf32> to vector<1x32xf32>
    %371 = vector.broadcast %370 : vector<1x32xf32> to vector<16x32xf32>
    %372 = arith.addf %368, %371 : vector<16x32xf32>
    %373 = arith.addf %372, %356 : vector<16x32xf32>
    %c0_268 = arith.constant 0 : index
    %c0_269 = arith.constant 0 : index
    %c0_270 = arith.constant 0 : index
    %374 = vector.load %arg16[%c0_268, %c0_269, %c0_270] : memref<2x1x32xf32, #tpu.memory_space<vmem>>, vector<1x1x32xf32>
    %375 = vector.shape_cast %374 : vector<1x1x32xf32> to vector<1x32xf32>
    %c0_271 = arith.constant 0 : index
    %c0_272 = arith.constant 0 : index
    %c0_273 = arith.constant 0 : index
    %376 = vector.load %arg17[%c0_271, %c0_272, %c0_273] : memref<2x1x32xf32, #tpu.memory_space<vmem>>, vector<1x1x32xf32>
    %377 = vector.shape_cast %376 : vector<1x1x32xf32> to vector<1x32xf32>
    %cst_274 = arith.constant dense<0.000000e+00> : vector<16xf32>
    %378 = vector.multi_reduction <add>, %373, %cst_274 [1] : vector<16x32xf32> to vector<16xf32>
    %379 = vector.shape_cast %378 : vector<16xf32> to vector<16x1xf32>
    %cst_275 = arith.constant 3.200000e+01 : f32
    %380 = vector.broadcast %cst_275 : f32 to vector<16x1xf32>
    %381 = arith.divf %379, %380 : vector<16x1xf32>
    %382 = vector.broadcast %381 : vector<16x1xf32> to vector<16x32xf32>
    %383 = arith.subf %373, %382 : vector<16x32xf32>
    %384 = arith.mulf %383, %383 : vector<16x32xf32>
    %cst_276 = arith.constant dense<0.000000e+00> : vector<16xf32>
    %385 = vector.multi_reduction <add>, %384, %cst_276 [1] : vector<16x32xf32> to vector<16xf32>
    %386 = vector.shape_cast %385 : vector<16xf32> to vector<16x1xf32>
    %cst_277 = arith.constant 3.200000e+01 : f32
    %387 = vector.broadcast %cst_277 : f32 to vector<16x1xf32>
    %388 = arith.divf %386, %387 : vector<16x1xf32>
    %cst_278 = arith.constant 9.99999974E-6 : f32
    %389 = vector.broadcast %cst_278 : f32 to vector<16x1xf32>
    %390 = arith.addf %388, %389 : vector<16x1xf32>
    %391 = math.rsqrt %390 : vector<16x1xf32>
    %392 = vector.broadcast %381 : vector<16x1xf32> to vector<16x32xf32>
    %393 = arith.subf %373, %392 : vector<16x32xf32>
    %394 = vector.broadcast %391 : vector<16x1xf32> to vector<16x32xf32>
    %395 = arith.mulf %393, %394 : vector<16x32xf32>
    %396 = vector.broadcast %375 : vector<1x32xf32> to vector<16x32xf32>
    %397 = arith.mulf %395, %396 : vector<16x32xf32>
    %398 = vector.broadcast %377 : vector<1x32xf32> to vector<16x32xf32>
    %399 = arith.addf %397, %398 : vector<16x32xf32>
    %400 = vector.extract_strided_slice %399 {offsets = [0, 0], sizes = [8, 32], strides = [1, 1]} : vector<16x32xf32> to vector<8x32xf32>
    %cst_279 = arith.constant 0.000000e+00 : f32
    %401 = vector.broadcast %cst_279 : f32 to vector<8x32xf32>
    %c4 = arith.constant 4 : index
    %c0_280 = arith.constant 0 : index
    %c0_281 = arith.constant 0 : index
    %402 = vector.load %arg2[%c4, %c0_280, %c0_281] : memref<8x32x8xf32, #tpu.memory_space<vmem>>, vector<1x32x8xf32>
    %403 = vector.shape_cast %402 : vector<1x32x8xf32> to vector<32x8xf32>
    %cst_282 = arith.constant dense<0.000000e+00> : vector<8x8xf32>
    %404 = tpu.matmul %400, %403, %cst_282 {dimension_numbers = #tpu.dot_dimension_numbers<[1], [0], [0], [1], [0, 0, 1, 1], [], []>} : vector<8x32xf32>, vector<32x8xf32>, vector<8x8xf32> -> vector<8x8xf32>
    %c4_283 = arith.constant 4 : index
    %c0_284 = arith.constant 0 : index
    %c0_285 = arith.constant 0 : index
    %405 = vector.load %arg5[%c4_283, %c0_284, %c0_285] : memref<8x1x8xf32, #tpu.memory_space<vmem>>, vector<1x1x8xf32>
    %406 = vector.shape_cast %405 : vector<1x1x8xf32> to vector<1x8xf32>
    %407 = vector.broadcast %406 : vector<1x8xf32> to vector<8x8xf32>
    %408 = arith.addf %404, %407 : vector<8x8xf32>
    %c4_286 = arith.constant 4 : index
    %c0_287 = arith.constant 0 : index
    %c0_288 = arith.constant 0 : index
    %409 = vector.load %arg3[%c4_286, %c0_287, %c0_288] : memref<8x32x8xf32, #tpu.memory_space<vmem>>, vector<1x32x8xf32>
    %410 = vector.shape_cast %409 : vector<1x32x8xf32> to vector<32x8xf32>
    %cst_289 = arith.constant dense<0.000000e+00> : vector<8x8xf32>
    %411 = tpu.matmul %400, %410, %cst_289 {dimension_numbers = #tpu.dot_dimension_numbers<[1], [0], [0], [1], [0, 0, 1, 1], [], []>} : vector<8x32xf32>, vector<32x8xf32>, vector<8x8xf32> -> vector<8x8xf32>
    %c4_290 = arith.constant 4 : index
    %c0_291 = arith.constant 0 : index
    %c0_292 = arith.constant 0 : index
    %412 = vector.load %arg6[%c4_290, %c0_291, %c0_292] : memref<8x1x8xf32, #tpu.memory_space<vmem>>, vector<1x1x8xf32>
    %413 = vector.shape_cast %412 : vector<1x1x8xf32> to vector<1x8xf32>
    %414 = vector.broadcast %413 : vector<1x8xf32> to vector<8x8xf32>
    %415 = arith.addf %411, %414 : vector<8x8xf32>
    %c4_293 = arith.constant 4 : index
    %c0_294 = arith.constant 0 : index
    %c0_295 = arith.constant 0 : index
    %416 = vector.load %arg4[%c4_293, %c0_294, %c0_295] : memref<8x32x8xf32, #tpu.memory_space<vmem>>, vector<1x32x8xf32>
    %417 = vector.shape_cast %416 : vector<1x32x8xf32> to vector<32x8xf32>
    %cst_296 = arith.constant dense<0.000000e+00> : vector<8x8xf32>
    %418 = tpu.matmul %400, %417, %cst_296 {dimension_numbers = #tpu.dot_dimension_numbers<[1], [0], [0], [1], [0, 0, 1, 1], [], []>} : vector<8x32xf32>, vector<32x8xf32>, vector<8x8xf32> -> vector<8x8xf32>
    %c4_297 = arith.constant 4 : index
    %c0_298 = arith.constant 0 : index
    %c0_299 = arith.constant 0 : index
    %419 = vector.load %arg7[%c4_297, %c0_298, %c0_299] : memref<8x1x8xf32, #tpu.memory_space<vmem>>, vector<1x1x8xf32>
    %420 = vector.shape_cast %419 : vector<1x1x8xf32> to vector<1x8xf32>
    %421 = vector.broadcast %420 : vector<1x8xf32> to vector<8x8xf32>
    %422 = arith.addf %418, %421 : vector<8x8xf32>
    %423 = tpu.transpose %415, [1, 0] : vector<8x8xf32> -> vector<8x8xf32>
    %cst_300 = arith.constant dense<0.000000e+00> : vector<8x8xf32>
    %424 = tpu.matmul %408, %423, %cst_300 {dimension_numbers = #tpu.dot_dimension_numbers<[1], [0], [0], [1], [0, 0, 1, 1], [], []>} : vector<8x8xf32>, vector<8x8xf32>, vector<8x8xf32> -> vector<8x8xf32>
    %cst_301 = arith.constant 0.353553385 : f32
    %425 = vector.broadcast %cst_301 : f32 to vector<8x8xf32>
    %426 = arith.mulf %424, %425 : vector<8x8xf32>
    %cst_302 = arith.constant dense<0xFF800000> : vector<8xf32>
    %427 = vector.multi_reduction <maximumf>, %426, %cst_302 [1] : vector<8x8xf32> to vector<8xf32>
    %428 = vector.shape_cast %427 : vector<8xf32> to vector<8x1xf32>
    %429 = vector.broadcast %428 : vector<8x1xf32> to vector<8x8xf32>
    %430 = arith.subf %426, %429 : vector<8x8xf32>
    %431 = math.exp %430 : vector<8x8xf32>
    %cst_303 = arith.constant dense<0.000000e+00> : vector<8xf32>
    %432 = vector.multi_reduction <add>, %431, %cst_303 [1] : vector<8x8xf32> to vector<8xf32>
    %433 = vector.shape_cast %432 : vector<8xf32> to vector<8x1xf32>
    %434 = tpu.reciprocal %433 {approx = true} : vector<8x1xf32> -> vector<8x1xf32>
    %435 = vector.broadcast %434 : vector<8x1xf32> to vector<8x8xf32>
    %436 = arith.mulf %431, %435 : vector<8x8xf32>
    %cst_304 = arith.constant dense<0.000000e+00> : vector<8x8xf32>
    %437 = tpu.matmul %436, %422, %cst_304 {dimension_numbers = #tpu.dot_dimension_numbers<[1], [0], [0], [1], [0, 0, 1, 1], [], []>} : vector<8x8xf32>, vector<8x8xf32>, vector<8x8xf32> -> vector<8x8xf32>
    %c4_305 = arith.constant 4 : index
    %c0_306 = arith.constant 0 : index
    %c0_307 = arith.constant 0 : index
    %438 = vector.load %arg8[%c4_305, %c0_306, %c0_307] : memref<8x8x32xf32, #tpu.memory_space<vmem>>, vector<1x8x32xf32>
    %439 = vector.shape_cast %438 : vector<1x8x32xf32> to vector<8x32xf32>
    %cst_308 = arith.constant dense<0.000000e+00> : vector<8x32xf32>
    %440 = tpu.matmul %437, %439, %cst_308 {dimension_numbers = #tpu.dot_dimension_numbers<[1], [0], [0], [1], [0, 0, 1, 1], [], []>} : vector<8x8xf32>, vector<8x32xf32>, vector<8x32xf32> -> vector<8x32xf32>
    %441 = arith.addf %401, %440 : vector<8x32xf32>
    %c5 = arith.constant 5 : index
    %c0_309 = arith.constant 0 : index
    %c0_310 = arith.constant 0 : index
    %442 = vector.load %arg2[%c5, %c0_309, %c0_310] : memref<8x32x8xf32, #tpu.memory_space<vmem>>, vector<1x32x8xf32>
    %443 = vector.shape_cast %442 : vector<1x32x8xf32> to vector<32x8xf32>
    %cst_311 = arith.constant dense<0.000000e+00> : vector<8x8xf32>
    %444 = tpu.matmul %400, %443, %cst_311 {dimension_numbers = #tpu.dot_dimension_numbers<[1], [0], [0], [1], [0, 0, 1, 1], [], []>} : vector<8x32xf32>, vector<32x8xf32>, vector<8x8xf32> -> vector<8x8xf32>
    %c5_312 = arith.constant 5 : index
    %c0_313 = arith.constant 0 : index
    %c0_314 = arith.constant 0 : index
    %445 = vector.load %arg5[%c5_312, %c0_313, %c0_314] : memref<8x1x8xf32, #tpu.memory_space<vmem>>, vector<1x1x8xf32>
    %446 = vector.shape_cast %445 : vector<1x1x8xf32> to vector<1x8xf32>
    %447 = vector.broadcast %446 : vector<1x8xf32> to vector<8x8xf32>
    %448 = arith.addf %444, %447 : vector<8x8xf32>
    %c5_315 = arith.constant 5 : index
    %c0_316 = arith.constant 0 : index
    %c0_317 = arith.constant 0 : index
    %449 = vector.load %arg3[%c5_315, %c0_316, %c0_317] : memref<8x32x8xf32, #tpu.memory_space<vmem>>, vector<1x32x8xf32>
    %450 = vector.shape_cast %449 : vector<1x32x8xf32> to vector<32x8xf32>
    %cst_318 = arith.constant dense<0.000000e+00> : vector<8x8xf32>
    %451 = tpu.matmul %400, %450, %cst_318 {dimension_numbers = #tpu.dot_dimension_numbers<[1], [0], [0], [1], [0, 0, 1, 1], [], []>} : vector<8x32xf32>, vector<32x8xf32>, vector<8x8xf32> -> vector<8x8xf32>
    %c5_319 = arith.constant 5 : index
    %c0_320 = arith.constant 0 : index
    %c0_321 = arith.constant 0 : index
    %452 = vector.load %arg6[%c5_319, %c0_320, %c0_321] : memref<8x1x8xf32, #tpu.memory_space<vmem>>, vector<1x1x8xf32>
    %453 = vector.shape_cast %452 : vector<1x1x8xf32> to vector<1x8xf32>
    %454 = vector.broadcast %453 : vector<1x8xf32> to vector<8x8xf32>
    %455 = arith.addf %451, %454 : vector<8x8xf32>
    %c5_322 = arith.constant 5 : index
    %c0_323 = arith.constant 0 : index
    %c0_324 = arith.constant 0 : index
    %456 = vector.load %arg4[%c5_322, %c0_323, %c0_324] : memref<8x32x8xf32, #tpu.memory_space<vmem>>, vector<1x32x8xf32>
    %457 = vector.shape_cast %456 : vector<1x32x8xf32> to vector<32x8xf32>
    %cst_325 = arith.constant dense<0.000000e+00> : vector<8x8xf32>
    %458 = tpu.matmul %400, %457, %cst_325 {dimension_numbers = #tpu.dot_dimension_numbers<[1], [0], [0], [1], [0, 0, 1, 1], [], []>} : vector<8x32xf32>, vector<32x8xf32>, vector<8x8xf32> -> vector<8x8xf32>
    %c5_326 = arith.constant 5 : index
    %c0_327 = arith.constant 0 : index
    %c0_328 = arith.constant 0 : index
    %459 = vector.load %arg7[%c5_326, %c0_327, %c0_328] : memref<8x1x8xf32, #tpu.memory_space<vmem>>, vector<1x1x8xf32>
    %460 = vector.shape_cast %459 : vector<1x1x8xf32> to vector<1x8xf32>
    %461 = vector.broadcast %460 : vector<1x8xf32> to vector<8x8xf32>
    %462 = arith.addf %458, %461 : vector<8x8xf32>
    %463 = tpu.transpose %455, [1, 0] : vector<8x8xf32> -> vector<8x8xf32>
    %cst_329 = arith.constant dense<0.000000e+00> : vector<8x8xf32>
    %464 = tpu.matmul %448, %463, %cst_329 {dimension_numbers = #tpu.dot_dimension_numbers<[1], [0], [0], [1], [0, 0, 1, 1], [], []>} : vector<8x8xf32>, vector<8x8xf32>, vector<8x8xf32> -> vector<8x8xf32>
    %cst_330 = arith.constant 0.353553385 : f32
    %465 = vector.broadcast %cst_330 : f32 to vector<8x8xf32>
    %466 = arith.mulf %464, %465 : vector<8x8xf32>
    %cst_331 = arith.constant dense<0xFF800000> : vector<8xf32>
    %467 = vector.multi_reduction <maximumf>, %466, %cst_331 [1] : vector<8x8xf32> to vector<8xf32>
    %468 = vector.shape_cast %467 : vector<8xf32> to vector<8x1xf32>
    %469 = vector.broadcast %468 : vector<8x1xf32> to vector<8x8xf32>
    %470 = arith.subf %466, %469 : vector<8x8xf32>
    %471 = math.exp %470 : vector<8x8xf32>
    %cst_332 = arith.constant dense<0.000000e+00> : vector<8xf32>
    %472 = vector.multi_reduction <add>, %471, %cst_332 [1] : vector<8x8xf32> to vector<8xf32>
    %473 = vector.shape_cast %472 : vector<8xf32> to vector<8x1xf32>
    %474 = tpu.reciprocal %473 {approx = true} : vector<8x1xf32> -> vector<8x1xf32>
    %475 = vector.broadcast %474 : vector<8x1xf32> to vector<8x8xf32>
    %476 = arith.mulf %471, %475 : vector<8x8xf32>
    %cst_333 = arith.constant dense<0.000000e+00> : vector<8x8xf32>
    %477 = tpu.matmul %476, %462, %cst_333 {dimension_numbers = #tpu.dot_dimension_numbers<[1], [0], [0], [1], [0, 0, 1, 1], [], []>} : vector<8x8xf32>, vector<8x8xf32>, vector<8x8xf32> -> vector<8x8xf32>
    %c5_334 = arith.constant 5 : index
    %c0_335 = arith.constant 0 : index
    %c0_336 = arith.constant 0 : index
    %478 = vector.load %arg8[%c5_334, %c0_335, %c0_336] : memref<8x8x32xf32, #tpu.memory_space<vmem>>, vector<1x8x32xf32>
    %479 = vector.shape_cast %478 : vector<1x8x32xf32> to vector<8x32xf32>
    %cst_337 = arith.constant dense<0.000000e+00> : vector<8x32xf32>
    %480 = tpu.matmul %477, %479, %cst_337 {dimension_numbers = #tpu.dot_dimension_numbers<[1], [0], [0], [1], [0, 0, 1, 1], [], []>} : vector<8x8xf32>, vector<8x32xf32>, vector<8x32xf32> -> vector<8x32xf32>
    %481 = arith.addf %441, %480 : vector<8x32xf32>
    %c6 = arith.constant 6 : index
    %c0_338 = arith.constant 0 : index
    %c0_339 = arith.constant 0 : index
    %482 = vector.load %arg2[%c6, %c0_338, %c0_339] : memref<8x32x8xf32, #tpu.memory_space<vmem>>, vector<1x32x8xf32>
    %483 = vector.shape_cast %482 : vector<1x32x8xf32> to vector<32x8xf32>
    %cst_340 = arith.constant dense<0.000000e+00> : vector<8x8xf32>
    %484 = tpu.matmul %400, %483, %cst_340 {dimension_numbers = #tpu.dot_dimension_numbers<[1], [0], [0], [1], [0, 0, 1, 1], [], []>} : vector<8x32xf32>, vector<32x8xf32>, vector<8x8xf32> -> vector<8x8xf32>
    %c6_341 = arith.constant 6 : index
    %c0_342 = arith.constant 0 : index
    %c0_343 = arith.constant 0 : index
    %485 = vector.load %arg5[%c6_341, %c0_342, %c0_343] : memref<8x1x8xf32, #tpu.memory_space<vmem>>, vector<1x1x8xf32>
    %486 = vector.shape_cast %485 : vector<1x1x8xf32> to vector<1x8xf32>
    %487 = vector.broadcast %486 : vector<1x8xf32> to vector<8x8xf32>
    %488 = arith.addf %484, %487 : vector<8x8xf32>
    %c6_344 = arith.constant 6 : index
    %c0_345 = arith.constant 0 : index
    %c0_346 = arith.constant 0 : index
    %489 = vector.load %arg3[%c6_344, %c0_345, %c0_346] : memref<8x32x8xf32, #tpu.memory_space<vmem>>, vector<1x32x8xf32>
    %490 = vector.shape_cast %489 : vector<1x32x8xf32> to vector<32x8xf32>
    %cst_347 = arith.constant dense<0.000000e+00> : vector<8x8xf32>
    %491 = tpu.matmul %400, %490, %cst_347 {dimension_numbers = #tpu.dot_dimension_numbers<[1], [0], [0], [1], [0, 0, 1, 1], [], []>} : vector<8x32xf32>, vector<32x8xf32>, vector<8x8xf32> -> vector<8x8xf32>
    %c6_348 = arith.constant 6 : index
    %c0_349 = arith.constant 0 : index
    %c0_350 = arith.constant 0 : index
    %492 = vector.load %arg6[%c6_348, %c0_349, %c0_350] : memref<8x1x8xf32, #tpu.memory_space<vmem>>, vector<1x1x8xf32>
    %493 = vector.shape_cast %492 : vector<1x1x8xf32> to vector<1x8xf32>
    %494 = vector.broadcast %493 : vector<1x8xf32> to vector<8x8xf32>
    %495 = arith.addf %491, %494 : vector<8x8xf32>
    %c6_351 = arith.constant 6 : index
    %c0_352 = arith.constant 0 : index
    %c0_353 = arith.constant 0 : index
    %496 = vector.load %arg4[%c6_351, %c0_352, %c0_353] : memref<8x32x8xf32, #tpu.memory_space<vmem>>, vector<1x32x8xf32>
    %497 = vector.shape_cast %496 : vector<1x32x8xf32> to vector<32x8xf32>
    %cst_354 = arith.constant dense<0.000000e+00> : vector<8x8xf32>
    %498 = tpu.matmul %400, %497, %cst_354 {dimension_numbers = #tpu.dot_dimension_numbers<[1], [0], [0], [1], [0, 0, 1, 1], [], []>} : vector<8x32xf32>, vector<32x8xf32>, vector<8x8xf32> -> vector<8x8xf32>
    %c6_355 = arith.constant 6 : index
    %c0_356 = arith.constant 0 : index
    %c0_357 = arith.constant 0 : index
    %499 = vector.load %arg7[%c6_355, %c0_356, %c0_357] : memref<8x1x8xf32, #tpu.memory_space<vmem>>, vector<1x1x8xf32>
    %500 = vector.shape_cast %499 : vector<1x1x8xf32> to vector<1x8xf32>
    %501 = vector.broadcast %500 : vector<1x8xf32> to vector<8x8xf32>
    %502 = arith.addf %498, %501 : vector<8x8xf32>
    %503 = tpu.transpose %495, [1, 0] : vector<8x8xf32> -> vector<8x8xf32>
    %cst_358 = arith.constant dense<0.000000e+00> : vector<8x8xf32>
    %504 = tpu.matmul %488, %503, %cst_358 {dimension_numbers = #tpu.dot_dimension_numbers<[1], [0], [0], [1], [0, 0, 1, 1], [], []>} : vector<8x8xf32>, vector<8x8xf32>, vector<8x8xf32> -> vector<8x8xf32>
    %cst_359 = arith.constant 0.353553385 : f32
    %505 = vector.broadcast %cst_359 : f32 to vector<8x8xf32>
    %506 = arith.mulf %504, %505 : vector<8x8xf32>
    %cst_360 = arith.constant dense<0xFF800000> : vector<8xf32>
    %507 = vector.multi_reduction <maximumf>, %506, %cst_360 [1] : vector<8x8xf32> to vector<8xf32>
    %508 = vector.shape_cast %507 : vector<8xf32> to vector<8x1xf32>
    %509 = vector.broadcast %508 : vector<8x1xf32> to vector<8x8xf32>
    %510 = arith.subf %506, %509 : vector<8x8xf32>
    %511 = math.exp %510 : vector<8x8xf32>
    %cst_361 = arith.constant dense<0.000000e+00> : vector<8xf32>
    %512 = vector.multi_reduction <add>, %511, %cst_361 [1] : vector<8x8xf32> to vector<8xf32>
    %513 = vector.shape_cast %512 : vector<8xf32> to vector<8x1xf32>
    %514 = tpu.reciprocal %513 {approx = true} : vector<8x1xf32> -> vector<8x1xf32>
    %515 = vector.broadcast %514 : vector<8x1xf32> to vector<8x8xf32>
    %516 = arith.mulf %511, %515 : vector<8x8xf32>
    %cst_362 = arith.constant dense<0.000000e+00> : vector<8x8xf32>
    %517 = tpu.matmul %516, %502, %cst_362 {dimension_numbers = #tpu.dot_dimension_numbers<[1], [0], [0], [1], [0, 0, 1, 1], [], []>} : vector<8x8xf32>, vector<8x8xf32>, vector<8x8xf32> -> vector<8x8xf32>
    %c6_363 = arith.constant 6 : index
    %c0_364 = arith.constant 0 : index
    %c0_365 = arith.constant 0 : index
    %518 = vector.load %arg8[%c6_363, %c0_364, %c0_365] : memref<8x8x32xf32, #tpu.memory_space<vmem>>, vector<1x8x32xf32>
    %519 = vector.shape_cast %518 : vector<1x8x32xf32> to vector<8x32xf32>
    %cst_366 = arith.constant dense<0.000000e+00> : vector<8x32xf32>
    %520 = tpu.matmul %517, %519, %cst_366 {dimension_numbers = #tpu.dot_dimension_numbers<[1], [0], [0], [1], [0, 0, 1, 1], [], []>} : vector<8x8xf32>, vector<8x32xf32>, vector<8x32xf32> -> vector<8x32xf32>
    %521 = arith.addf %481, %520 : vector<8x32xf32>
    %c7 = arith.constant 7 : index
    %c0_367 = arith.constant 0 : index
    %c0_368 = arith.constant 0 : index
    %522 = vector.load %arg2[%c7, %c0_367, %c0_368] : memref<8x32x8xf32, #tpu.memory_space<vmem>>, vector<1x32x8xf32>
    %523 = vector.shape_cast %522 : vector<1x32x8xf32> to vector<32x8xf32>
    %cst_369 = arith.constant dense<0.000000e+00> : vector<8x8xf32>
    %524 = tpu.matmul %400, %523, %cst_369 {dimension_numbers = #tpu.dot_dimension_numbers<[1], [0], [0], [1], [0, 0, 1, 1], [], []>} : vector<8x32xf32>, vector<32x8xf32>, vector<8x8xf32> -> vector<8x8xf32>
    %c7_370 = arith.constant 7 : index
    %c0_371 = arith.constant 0 : index
    %c0_372 = arith.constant 0 : index
    %525 = vector.load %arg5[%c7_370, %c0_371, %c0_372] : memref<8x1x8xf32, #tpu.memory_space<vmem>>, vector<1x1x8xf32>
    %526 = vector.shape_cast %525 : vector<1x1x8xf32> to vector<1x8xf32>
    %527 = vector.broadcast %526 : vector<1x8xf32> to vector<8x8xf32>
    %528 = arith.addf %524, %527 : vector<8x8xf32>
    %c7_373 = arith.constant 7 : index
    %c0_374 = arith.constant 0 : index
    %c0_375 = arith.constant 0 : index
    %529 = vector.load %arg3[%c7_373, %c0_374, %c0_375] : memref<8x32x8xf32, #tpu.memory_space<vmem>>, vector<1x32x8xf32>
    %530 = vector.shape_cast %529 : vector<1x32x8xf32> to vector<32x8xf32>
    %cst_376 = arith.constant dense<0.000000e+00> : vector<8x8xf32>
    %531 = tpu.matmul %400, %530, %cst_376 {dimension_numbers = #tpu.dot_dimension_numbers<[1], [0], [0], [1], [0, 0, 1, 1], [], []>} : vector<8x32xf32>, vector<32x8xf32>, vector<8x8xf32> -> vector<8x8xf32>
    %c7_377 = arith.constant 7 : index
    %c0_378 = arith.constant 0 : index
    %c0_379 = arith.constant 0 : index
    %532 = vector.load %arg6[%c7_377, %c0_378, %c0_379] : memref<8x1x8xf32, #tpu.memory_space<vmem>>, vector<1x1x8xf32>
    %533 = vector.shape_cast %532 : vector<1x1x8xf32> to vector<1x8xf32>
    %534 = vector.broadcast %533 : vector<1x8xf32> to vector<8x8xf32>
    %535 = arith.addf %531, %534 : vector<8x8xf32>
    %c7_380 = arith.constant 7 : index
    %c0_381 = arith.constant 0 : index
    %c0_382 = arith.constant 0 : index
    %536 = vector.load %arg4[%c7_380, %c0_381, %c0_382] : memref<8x32x8xf32, #tpu.memory_space<vmem>>, vector<1x32x8xf32>
    %537 = vector.shape_cast %536 : vector<1x32x8xf32> to vector<32x8xf32>
    %cst_383 = arith.constant dense<0.000000e+00> : vector<8x8xf32>
    %538 = tpu.matmul %400, %537, %cst_383 {dimension_numbers = #tpu.dot_dimension_numbers<[1], [0], [0], [1], [0, 0, 1, 1], [], []>} : vector<8x32xf32>, vector<32x8xf32>, vector<8x8xf32> -> vector<8x8xf32>
    %c7_384 = arith.constant 7 : index
    %c0_385 = arith.constant 0 : index
    %c0_386 = arith.constant 0 : index
    %539 = vector.load %arg7[%c7_384, %c0_385, %c0_386] : memref<8x1x8xf32, #tpu.memory_space<vmem>>, vector<1x1x8xf32>
    %540 = vector.shape_cast %539 : vector<1x1x8xf32> to vector<1x8xf32>
    %541 = vector.broadcast %540 : vector<1x8xf32> to vector<8x8xf32>
    %542 = arith.addf %538, %541 : vector<8x8xf32>
    %543 = tpu.transpose %535, [1, 0] : vector<8x8xf32> -> vector<8x8xf32>
    %cst_387 = arith.constant dense<0.000000e+00> : vector<8x8xf32>
    %544 = tpu.matmul %528, %543, %cst_387 {dimension_numbers = #tpu.dot_dimension_numbers<[1], [0], [0], [1], [0, 0, 1, 1], [], []>} : vector<8x8xf32>, vector<8x8xf32>, vector<8x8xf32> -> vector<8x8xf32>
    %cst_388 = arith.constant 0.353553385 : f32
    %545 = vector.broadcast %cst_388 : f32 to vector<8x8xf32>
    %546 = arith.mulf %544, %545 : vector<8x8xf32>
    %cst_389 = arith.constant dense<0xFF800000> : vector<8xf32>
    %547 = vector.multi_reduction <maximumf>, %546, %cst_389 [1] : vector<8x8xf32> to vector<8xf32>
    %548 = vector.shape_cast %547 : vector<8xf32> to vector<8x1xf32>
    %549 = vector.broadcast %548 : vector<8x1xf32> to vector<8x8xf32>
    %550 = arith.subf %546, %549 : vector<8x8xf32>
    %551 = math.exp %550 : vector<8x8xf32>
    %cst_390 = arith.constant dense<0.000000e+00> : vector<8xf32>
    %552 = vector.multi_reduction <add>, %551, %cst_390 [1] : vector<8x8xf32> to vector<8xf32>
    %553 = vector.shape_cast %552 : vector<8xf32> to vector<8x1xf32>
    %554 = tpu.reciprocal %553 {approx = true} : vector<8x1xf32> -> vector<8x1xf32>
    %555 = vector.broadcast %554 : vector<8x1xf32> to vector<8x8xf32>
    %556 = arith.mulf %551, %555 : vector<8x8xf32>
    %cst_391 = arith.constant dense<0.000000e+00> : vector<8x8xf32>
    %557 = tpu.matmul %556, %542, %cst_391 {dimension_numbers = #tpu.dot_dimension_numbers<[1], [0], [0], [1], [0, 0, 1, 1], [], []>} : vector<8x8xf32>, vector<8x8xf32>, vector<8x8xf32> -> vector<8x8xf32>
    %c7_392 = arith.constant 7 : index
    %c0_393 = arith.constant 0 : index
    %c0_394 = arith.constant 0 : index
    %558 = vector.load %arg8[%c7_392, %c0_393, %c0_394] : memref<8x8x32xf32, #tpu.memory_space<vmem>>, vector<1x8x32xf32>
    %559 = vector.shape_cast %558 : vector<1x8x32xf32> to vector<8x32xf32>
    %cst_395 = arith.constant dense<0.000000e+00> : vector<8x32xf32>
    %560 = tpu.matmul %557, %559, %cst_395 {dimension_numbers = #tpu.dot_dimension_numbers<[1], [0], [0], [1], [0, 0, 1, 1], [], []>} : vector<8x8xf32>, vector<8x32xf32>, vector<8x32xf32> -> vector<8x32xf32>
    %561 = arith.addf %521, %560 : vector<8x32xf32>
    %562 = vector.extract_strided_slice %399 {offsets = [8, 0], sizes = [8, 32], strides = [1, 1]} : vector<16x32xf32> to vector<8x32xf32>
    %cst_396 = arith.constant 0.000000e+00 : f32
    %563 = vector.broadcast %cst_396 : f32 to vector<8x32xf32>
    %c4_397 = arith.constant 4 : index
    %c0_398 = arith.constant 0 : index
    %c0_399 = arith.constant 0 : index
    %564 = vector.load %arg2[%c4_397, %c0_398, %c0_399] : memref<8x32x8xf32, #tpu.memory_space<vmem>>, vector<1x32x8xf32>
    %565 = vector.shape_cast %564 : vector<1x32x8xf32> to vector<32x8xf32>
    %cst_400 = arith.constant dense<0.000000e+00> : vector<8x8xf32>
    %566 = tpu.matmul %562, %565, %cst_400 {dimension_numbers = #tpu.dot_dimension_numbers<[1], [0], [0], [1], [0, 0, 1, 1], [], []>} : vector<8x32xf32>, vector<32x8xf32>, vector<8x8xf32> -> vector<8x8xf32>
    %c4_401 = arith.constant 4 : index
    %c0_402 = arith.constant 0 : index
    %c0_403 = arith.constant 0 : index
    %567 = vector.load %arg5[%c4_401, %c0_402, %c0_403] : memref<8x1x8xf32, #tpu.memory_space<vmem>>, vector<1x1x8xf32>
    %568 = vector.shape_cast %567 : vector<1x1x8xf32> to vector<1x8xf32>
    %569 = vector.broadcast %568 : vector<1x8xf32> to vector<8x8xf32>
    %570 = arith.addf %566, %569 : vector<8x8xf32>
    %c4_404 = arith.constant 4 : index
    %c0_405 = arith.constant 0 : index
    %c0_406 = arith.constant 0 : index
    %571 = vector.load %arg3[%c4_404, %c0_405, %c0_406] : memref<8x32x8xf32, #tpu.memory_space<vmem>>, vector<1x32x8xf32>
    %572 = vector.shape_cast %571 : vector<1x32x8xf32> to vector<32x8xf32>
    %cst_407 = arith.constant dense<0.000000e+00> : vector<8x8xf32>
    %573 = tpu.matmul %562, %572, %cst_407 {dimension_numbers = #tpu.dot_dimension_numbers<[1], [0], [0], [1], [0, 0, 1, 1], [], []>} : vector<8x32xf32>, vector<32x8xf32>, vector<8x8xf32> -> vector<8x8xf32>
    %c4_408 = arith.constant 4 : index
    %c0_409 = arith.constant 0 : index
    %c0_410 = arith.constant 0 : index
    %574 = vector.load %arg6[%c4_408, %c0_409, %c0_410] : memref<8x1x8xf32, #tpu.memory_space<vmem>>, vector<1x1x8xf32>
    %575 = vector.shape_cast %574 : vector<1x1x8xf32> to vector<1x8xf32>
    %576 = vector.broadcast %575 : vector<1x8xf32> to vector<8x8xf32>
    %577 = arith.addf %573, %576 : vector<8x8xf32>
    %c4_411 = arith.constant 4 : index
    %c0_412 = arith.constant 0 : index
    %c0_413 = arith.constant 0 : index
    %578 = vector.load %arg4[%c4_411, %c0_412, %c0_413] : memref<8x32x8xf32, #tpu.memory_space<vmem>>, vector<1x32x8xf32>
    %579 = vector.shape_cast %578 : vector<1x32x8xf32> to vector<32x8xf32>
    %cst_414 = arith.constant dense<0.000000e+00> : vector<8x8xf32>
    %580 = tpu.matmul %562, %579, %cst_414 {dimension_numbers = #tpu.dot_dimension_numbers<[1], [0], [0], [1], [0, 0, 1, 1], [], []>} : vector<8x32xf32>, vector<32x8xf32>, vector<8x8xf32> -> vector<8x8xf32>
    %c4_415 = arith.constant 4 : index
    %c0_416 = arith.constant 0 : index
    %c0_417 = arith.constant 0 : index
    %581 = vector.load %arg7[%c4_415, %c0_416, %c0_417] : memref<8x1x8xf32, #tpu.memory_space<vmem>>, vector<1x1x8xf32>
    %582 = vector.shape_cast %581 : vector<1x1x8xf32> to vector<1x8xf32>
    %583 = vector.broadcast %582 : vector<1x8xf32> to vector<8x8xf32>
    %584 = arith.addf %580, %583 : vector<8x8xf32>
    %585 = tpu.transpose %577, [1, 0] : vector<8x8xf32> -> vector<8x8xf32>
    %cst_418 = arith.constant dense<0.000000e+00> : vector<8x8xf32>
    %586 = tpu.matmul %570, %585, %cst_418 {dimension_numbers = #tpu.dot_dimension_numbers<[1], [0], [0], [1], [0, 0, 1, 1], [], []>} : vector<8x8xf32>, vector<8x8xf32>, vector<8x8xf32> -> vector<8x8xf32>
    %cst_419 = arith.constant 0.353553385 : f32
    %587 = vector.broadcast %cst_419 : f32 to vector<8x8xf32>
    %588 = arith.mulf %586, %587 : vector<8x8xf32>
    %cst_420 = arith.constant dense<0xFF800000> : vector<8xf32>
    %589 = vector.multi_reduction <maximumf>, %588, %cst_420 [1] : vector<8x8xf32> to vector<8xf32>
    %590 = vector.shape_cast %589 : vector<8xf32> to vector<8x1xf32>
    %591 = vector.broadcast %590 : vector<8x1xf32> to vector<8x8xf32>
    %592 = arith.subf %588, %591 : vector<8x8xf32>
    %593 = math.exp %592 : vector<8x8xf32>
    %cst_421 = arith.constant dense<0.000000e+00> : vector<8xf32>
    %594 = vector.multi_reduction <add>, %593, %cst_421 [1] : vector<8x8xf32> to vector<8xf32>
    %595 = vector.shape_cast %594 : vector<8xf32> to vector<8x1xf32>
    %596 = tpu.reciprocal %595 {approx = true} : vector<8x1xf32> -> vector<8x1xf32>
    %597 = vector.broadcast %596 : vector<8x1xf32> to vector<8x8xf32>
    %598 = arith.mulf %593, %597 : vector<8x8xf32>
    %cst_422 = arith.constant dense<0.000000e+00> : vector<8x8xf32>
    %599 = tpu.matmul %598, %584, %cst_422 {dimension_numbers = #tpu.dot_dimension_numbers<[1], [0], [0], [1], [0, 0, 1, 1], [], []>} : vector<8x8xf32>, vector<8x8xf32>, vector<8x8xf32> -> vector<8x8xf32>
    %c4_423 = arith.constant 4 : index
    %c0_424 = arith.constant 0 : index
    %c0_425 = arith.constant 0 : index
    %600 = vector.load %arg8[%c4_423, %c0_424, %c0_425] : memref<8x8x32xf32, #tpu.memory_space<vmem>>, vector<1x8x32xf32>
    %601 = vector.shape_cast %600 : vector<1x8x32xf32> to vector<8x32xf32>
    %cst_426 = arith.constant dense<0.000000e+00> : vector<8x32xf32>
    %602 = tpu.matmul %599, %601, %cst_426 {dimension_numbers = #tpu.dot_dimension_numbers<[1], [0], [0], [1], [0, 0, 1, 1], [], []>} : vector<8x8xf32>, vector<8x32xf32>, vector<8x32xf32> -> vector<8x32xf32>
    %603 = arith.addf %563, %602 : vector<8x32xf32>
    %c5_427 = arith.constant 5 : index
    %c0_428 = arith.constant 0 : index
    %c0_429 = arith.constant 0 : index
    %604 = vector.load %arg2[%c5_427, %c0_428, %c0_429] : memref<8x32x8xf32, #tpu.memory_space<vmem>>, vector<1x32x8xf32>
    %605 = vector.shape_cast %604 : vector<1x32x8xf32> to vector<32x8xf32>
    %cst_430 = arith.constant dense<0.000000e+00> : vector<8x8xf32>
    %606 = tpu.matmul %562, %605, %cst_430 {dimension_numbers = #tpu.dot_dimension_numbers<[1], [0], [0], [1], [0, 0, 1, 1], [], []>} : vector<8x32xf32>, vector<32x8xf32>, vector<8x8xf32> -> vector<8x8xf32>
    %c5_431 = arith.constant 5 : index
    %c0_432 = arith.constant 0 : index
    %c0_433 = arith.constant 0 : index
    %607 = vector.load %arg5[%c5_431, %c0_432, %c0_433] : memref<8x1x8xf32, #tpu.memory_space<vmem>>, vector<1x1x8xf32>
    %608 = vector.shape_cast %607 : vector<1x1x8xf32> to vector<1x8xf32>
    %609 = vector.broadcast %608 : vector<1x8xf32> to vector<8x8xf32>
    %610 = arith.addf %606, %609 : vector<8x8xf32>
    %c5_434 = arith.constant 5 : index
    %c0_435 = arith.constant 0 : index
    %c0_436 = arith.constant 0 : index
    %611 = vector.load %arg3[%c5_434, %c0_435, %c0_436] : memref<8x32x8xf32, #tpu.memory_space<vmem>>, vector<1x32x8xf32>
    %612 = vector.shape_cast %611 : vector<1x32x8xf32> to vector<32x8xf32>
    %cst_437 = arith.constant dense<0.000000e+00> : vector<8x8xf32>
    %613 = tpu.matmul %562, %612, %cst_437 {dimension_numbers = #tpu.dot_dimension_numbers<[1], [0], [0], [1], [0, 0, 1, 1], [], []>} : vector<8x32xf32>, vector<32x8xf32>, vector<8x8xf32> -> vector<8x8xf32>
    %c5_438 = arith.constant 5 : index
    %c0_439 = arith.constant 0 : index
    %c0_440 = arith.constant 0 : index
    %614 = vector.load %arg6[%c5_438, %c0_439, %c0_440] : memref<8x1x8xf32, #tpu.memory_space<vmem>>, vector<1x1x8xf32>
    %615 = vector.shape_cast %614 : vector<1x1x8xf32> to vector<1x8xf32>
    %616 = vector.broadcast %615 : vector<1x8xf32> to vector<8x8xf32>
    %617 = arith.addf %613, %616 : vector<8x8xf32>
    %c5_441 = arith.constant 5 : index
    %c0_442 = arith.constant 0 : index
    %c0_443 = arith.constant 0 : index
    %618 = vector.load %arg4[%c5_441, %c0_442, %c0_443] : memref<8x32x8xf32, #tpu.memory_space<vmem>>, vector<1x32x8xf32>
    %619 = vector.shape_cast %618 : vector<1x32x8xf32> to vector<32x8xf32>
    %cst_444 = arith.constant dense<0.000000e+00> : vector<8x8xf32>
    %620 = tpu.matmul %562, %619, %cst_444 {dimension_numbers = #tpu.dot_dimension_numbers<[1], [0], [0], [1], [0, 0, 1, 1], [], []>} : vector<8x32xf32>, vector<32x8xf32>, vector<8x8xf32> -> vector<8x8xf32>
    %c5_445 = arith.constant 5 : index
    %c0_446 = arith.constant 0 : index
    %c0_447 = arith.constant 0 : index
    %621 = vector.load %arg7[%c5_445, %c0_446, %c0_447] : memref<8x1x8xf32, #tpu.memory_space<vmem>>, vector<1x1x8xf32>
    %622 = vector.shape_cast %621 : vector<1x1x8xf32> to vector<1x8xf32>
    %623 = vector.broadcast %622 : vector<1x8xf32> to vector<8x8xf32>
    %624 = arith.addf %620, %623 : vector<8x8xf32>
    %625 = tpu.transpose %617, [1, 0] : vector<8x8xf32> -> vector<8x8xf32>
    %cst_448 = arith.constant dense<0.000000e+00> : vector<8x8xf32>
    %626 = tpu.matmul %610, %625, %cst_448 {dimension_numbers = #tpu.dot_dimension_numbers<[1], [0], [0], [1], [0, 0, 1, 1], [], []>} : vector<8x8xf32>, vector<8x8xf32>, vector<8x8xf32> -> vector<8x8xf32>
    %cst_449 = arith.constant 0.353553385 : f32
    %627 = vector.broadcast %cst_449 : f32 to vector<8x8xf32>
    %628 = arith.mulf %626, %627 : vector<8x8xf32>
    %cst_450 = arith.constant dense<0xFF800000> : vector<8xf32>
    %629 = vector.multi_reduction <maximumf>, %628, %cst_450 [1] : vector<8x8xf32> to vector<8xf32>
    %630 = vector.shape_cast %629 : vector<8xf32> to vector<8x1xf32>
    %631 = vector.broadcast %630 : vector<8x1xf32> to vector<8x8xf32>
    %632 = arith.subf %628, %631 : vector<8x8xf32>
    %633 = math.exp %632 : vector<8x8xf32>
    %cst_451 = arith.constant dense<0.000000e+00> : vector<8xf32>
    %634 = vector.multi_reduction <add>, %633, %cst_451 [1] : vector<8x8xf32> to vector<8xf32>
    %635 = vector.shape_cast %634 : vector<8xf32> to vector<8x1xf32>
    %636 = tpu.reciprocal %635 {approx = true} : vector<8x1xf32> -> vector<8x1xf32>
    %637 = vector.broadcast %636 : vector<8x1xf32> to vector<8x8xf32>
    %638 = arith.mulf %633, %637 : vector<8x8xf32>
    %cst_452 = arith.constant dense<0.000000e+00> : vector<8x8xf32>
    %639 = tpu.matmul %638, %624, %cst_452 {dimension_numbers = #tpu.dot_dimension_numbers<[1], [0], [0], [1], [0, 0, 1, 1], [], []>} : vector<8x8xf32>, vector<8x8xf32>, vector<8x8xf32> -> vector<8x8xf32>
    %c5_453 = arith.constant 5 : index
    %c0_454 = arith.constant 0 : index
    %c0_455 = arith.constant 0 : index
    %640 = vector.load %arg8[%c5_453, %c0_454, %c0_455] : memref<8x8x32xf32, #tpu.memory_space<vmem>>, vector<1x8x32xf32>
    %641 = vector.shape_cast %640 : vector<1x8x32xf32> to vector<8x32xf32>
    %cst_456 = arith.constant dense<0.000000e+00> : vector<8x32xf32>
    %642 = tpu.matmul %639, %641, %cst_456 {dimension_numbers = #tpu.dot_dimension_numbers<[1], [0], [0], [1], [0, 0, 1, 1], [], []>} : vector<8x8xf32>, vector<8x32xf32>, vector<8x32xf32> -> vector<8x32xf32>
    %643 = arith.addf %603, %642 : vector<8x32xf32>
    %c6_457 = arith.constant 6 : index
    %c0_458 = arith.constant 0 : index
    %c0_459 = arith.constant 0 : index
    %644 = vector.load %arg2[%c6_457, %c0_458, %c0_459] : memref<8x32x8xf32, #tpu.memory_space<vmem>>, vector<1x32x8xf32>
    %645 = vector.shape_cast %644 : vector<1x32x8xf32> to vector<32x8xf32>
    %cst_460 = arith.constant dense<0.000000e+00> : vector<8x8xf32>
    %646 = tpu.matmul %562, %645, %cst_460 {dimension_numbers = #tpu.dot_dimension_numbers<[1], [0], [0], [1], [0, 0, 1, 1], [], []>} : vector<8x32xf32>, vector<32x8xf32>, vector<8x8xf32> -> vector<8x8xf32>
    %c6_461 = arith.constant 6 : index
    %c0_462 = arith.constant 0 : index
    %c0_463 = arith.constant 0 : index
    %647 = vector.load %arg5[%c6_461, %c0_462, %c0_463] : memref<8x1x8xf32, #tpu.memory_space<vmem>>, vector<1x1x8xf32>
    %648 = vector.shape_cast %647 : vector<1x1x8xf32> to vector<1x8xf32>
    %649 = vector.broadcast %648 : vector<1x8xf32> to vector<8x8xf32>
    %650 = arith.addf %646, %649 : vector<8x8xf32>
    %c6_464 = arith.constant 6 : index
    %c0_465 = arith.constant 0 : index
    %c0_466 = arith.constant 0 : index
    %651 = vector.load %arg3[%c6_464, %c0_465, %c0_466] : memref<8x32x8xf32, #tpu.memory_space<vmem>>, vector<1x32x8xf32>
    %652 = vector.shape_cast %651 : vector<1x32x8xf32> to vector<32x8xf32>
    %cst_467 = arith.constant dense<0.000000e+00> : vector<8x8xf32>
    %653 = tpu.matmul %562, %652, %cst_467 {dimension_numbers = #tpu.dot_dimension_numbers<[1], [0], [0], [1], [0, 0, 1, 1], [], []>} : vector<8x32xf32>, vector<32x8xf32>, vector<8x8xf32> -> vector<8x8xf32>
    %c6_468 = arith.constant 6 : index
    %c0_469 = arith.constant 0 : index
    %c0_470 = arith.constant 0 : index
    %654 = vector.load %arg6[%c6_468, %c0_469, %c0_470] : memref<8x1x8xf32, #tpu.memory_space<vmem>>, vector<1x1x8xf32>
    %655 = vector.shape_cast %654 : vector<1x1x8xf32> to vector<1x8xf32>
    %656 = vector.broadcast %655 : vector<1x8xf32> to vector<8x8xf32>
    %657 = arith.addf %653, %656 : vector<8x8xf32>
    %c6_471 = arith.constant 6 : index
    %c0_472 = arith.constant 0 : index
    %c0_473 = arith.constant 0 : index
    %658 = vector.load %arg4[%c6_471, %c0_472, %c0_473] : memref<8x32x8xf32, #tpu.memory_space<vmem>>, vector<1x32x8xf32>
    %659 = vector.shape_cast %658 : vector<1x32x8xf32> to vector<32x8xf32>
    %cst_474 = arith.constant dense<0.000000e+00> : vector<8x8xf32>
    %660 = tpu.matmul %562, %659, %cst_474 {dimension_numbers = #tpu.dot_dimension_numbers<[1], [0], [0], [1], [0, 0, 1, 1], [], []>} : vector<8x32xf32>, vector<32x8xf32>, vector<8x8xf32> -> vector<8x8xf32>
    %c6_475 = arith.constant 6 : index
    %c0_476 = arith.constant 0 : index
    %c0_477 = arith.constant 0 : index
    %661 = vector.load %arg7[%c6_475, %c0_476, %c0_477] : memref<8x1x8xf32, #tpu.memory_space<vmem>>, vector<1x1x8xf32>
    %662 = vector.shape_cast %661 : vector<1x1x8xf32> to vector<1x8xf32>
    %663 = vector.broadcast %662 : vector<1x8xf32> to vector<8x8xf32>
    %664 = arith.addf %660, %663 : vector<8x8xf32>
    %665 = tpu.transpose %657, [1, 0] : vector<8x8xf32> -> vector<8x8xf32>
    %cst_478 = arith.constant dense<0.000000e+00> : vector<8x8xf32>
    %666 = tpu.matmul %650, %665, %cst_478 {dimension_numbers = #tpu.dot_dimension_numbers<[1], [0], [0], [1], [0, 0, 1, 1], [], []>} : vector<8x8xf32>, vector<8x8xf32>, vector<8x8xf32> -> vector<8x8xf32>
    %cst_479 = arith.constant 0.353553385 : f32
    %667 = vector.broadcast %cst_479 : f32 to vector<8x8xf32>
    %668 = arith.mulf %666, %667 : vector<8x8xf32>
    %cst_480 = arith.constant dense<0xFF800000> : vector<8xf32>
    %669 = vector.multi_reduction <maximumf>, %668, %cst_480 [1] : vector<8x8xf32> to vector<8xf32>
    %670 = vector.shape_cast %669 : vector<8xf32> to vector<8x1xf32>
    %671 = vector.broadcast %670 : vector<8x1xf32> to vector<8x8xf32>
    %672 = arith.subf %668, %671 : vector<8x8xf32>
    %673 = math.exp %672 : vector<8x8xf32>
    %cst_481 = arith.constant dense<0.000000e+00> : vector<8xf32>
    %674 = vector.multi_reduction <add>, %673, %cst_481 [1] : vector<8x8xf32> to vector<8xf32>
    %675 = vector.shape_cast %674 : vector<8xf32> to vector<8x1xf32>
    %676 = tpu.reciprocal %675 {approx = true} : vector<8x1xf32> -> vector<8x1xf32>
    %677 = vector.broadcast %676 : vector<8x1xf32> to vector<8x8xf32>
    %678 = arith.mulf %673, %677 : vector<8x8xf32>
    %cst_482 = arith.constant dense<0.000000e+00> : vector<8x8xf32>
    %679 = tpu.matmul %678, %664, %cst_482 {dimension_numbers = #tpu.dot_dimension_numbers<[1], [0], [0], [1], [0, 0, 1, 1], [], []>} : vector<8x8xf32>, vector<8x8xf32>, vector<8x8xf32> -> vector<8x8xf32>
    %c6_483 = arith.constant 6 : index
    %c0_484 = arith.constant 0 : index
    %c0_485 = arith.constant 0 : index
    %680 = vector.load %arg8[%c6_483, %c0_484, %c0_485] : memref<8x8x32xf32, #tpu.memory_space<vmem>>, vector<1x8x32xf32>
    %681 = vector.shape_cast %680 : vector<1x8x32xf32> to vector<8x32xf32>
    %cst_486 = arith.constant dense<0.000000e+00> : vector<8x32xf32>
    %682 = tpu.matmul %679, %681, %cst_486 {dimension_numbers = #tpu.dot_dimension_numbers<[1], [0], [0], [1], [0, 0, 1, 1], [], []>} : vector<8x8xf32>, vector<8x32xf32>, vector<8x32xf32> -> vector<8x32xf32>
    %683 = arith.addf %643, %682 : vector<8x32xf32>
    %c7_487 = arith.constant 7 : index
    %c0_488 = arith.constant 0 : index
    %c0_489 = arith.constant 0 : index
    %684 = vector.load %arg2[%c7_487, %c0_488, %c0_489] : memref<8x32x8xf32, #tpu.memory_space<vmem>>, vector<1x32x8xf32>
    %685 = vector.shape_cast %684 : vector<1x32x8xf32> to vector<32x8xf32>
    %cst_490 = arith.constant dense<0.000000e+00> : vector<8x8xf32>
    %686 = tpu.matmul %562, %685, %cst_490 {dimension_numbers = #tpu.dot_dimension_numbers<[1], [0], [0], [1], [0, 0, 1, 1], [], []>} : vector<8x32xf32>, vector<32x8xf32>, vector<8x8xf32> -> vector<8x8xf32>
    %c7_491 = arith.constant 7 : index
    %c0_492 = arith.constant 0 : index
    %c0_493 = arith.constant 0 : index
    %687 = vector.load %arg5[%c7_491, %c0_492, %c0_493] : memref<8x1x8xf32, #tpu.memory_space<vmem>>, vector<1x1x8xf32>
    %688 = vector.shape_cast %687 : vector<1x1x8xf32> to vector<1x8xf32>
    %689 = vector.broadcast %688 : vector<1x8xf32> to vector<8x8xf32>
    %690 = arith.addf %686, %689 : vector<8x8xf32>
    %c7_494 = arith.constant 7 : index
    %c0_495 = arith.constant 0 : index
    %c0_496 = arith.constant 0 : index
    %691 = vector.load %arg3[%c7_494, %c0_495, %c0_496] : memref<8x32x8xf32, #tpu.memory_space<vmem>>, vector<1x32x8xf32>
    %692 = vector.shape_cast %691 : vector<1x32x8xf32> to vector<32x8xf32>
    %cst_497 = arith.constant dense<0.000000e+00> : vector<8x8xf32>
    %693 = tpu.matmul %562, %692, %cst_497 {dimension_numbers = #tpu.dot_dimension_numbers<[1], [0], [0], [1], [0, 0, 1, 1], [], []>} : vector<8x32xf32>, vector<32x8xf32>, vector<8x8xf32> -> vector<8x8xf32>
    %c7_498 = arith.constant 7 : index
    %c0_499 = arith.constant 0 : index
    %c0_500 = arith.constant 0 : index
    %694 = vector.load %arg6[%c7_498, %c0_499, %c0_500] : memref<8x1x8xf32, #tpu.memory_space<vmem>>, vector<1x1x8xf32>
    %695 = vector.shape_cast %694 : vector<1x1x8xf32> to vector<1x8xf32>
    %696 = vector.broadcast %695 : vector<1x8xf32> to vector<8x8xf32>
    %697 = arith.addf %693, %696 : vector<8x8xf32>
    %c7_501 = arith.constant 7 : index
    %c0_502 = arith.constant 0 : index
    %c0_503 = arith.constant 0 : index
    %698 = vector.load %arg4[%c7_501, %c0_502, %c0_503] : memref<8x32x8xf32, #tpu.memory_space<vmem>>, vector<1x32x8xf32>
    %699 = vector.shape_cast %698 : vector<1x32x8xf32> to vector<32x8xf32>
    %cst_504 = arith.constant dense<0.000000e+00> : vector<8x8xf32>
    %700 = tpu.matmul %562, %699, %cst_504 {dimension_numbers = #tpu.dot_dimension_numbers<[1], [0], [0], [1], [0, 0, 1, 1], [], []>} : vector<8x32xf32>, vector<32x8xf32>, vector<8x8xf32> -> vector<8x8xf32>
    %c7_505 = arith.constant 7 : index
    %c0_506 = arith.constant 0 : index
    %c0_507 = arith.constant 0 : index
    %701 = vector.load %arg7[%c7_505, %c0_506, %c0_507] : memref<8x1x8xf32, #tpu.memory_space<vmem>>, vector<1x1x8xf32>
    %702 = vector.shape_cast %701 : vector<1x1x8xf32> to vector<1x8xf32>
    %703 = vector.broadcast %702 : vector<1x8xf32> to vector<8x8xf32>
    %704 = arith.addf %700, %703 : vector<8x8xf32>
    %705 = tpu.transpose %697, [1, 0] : vector<8x8xf32> -> vector<8x8xf32>
    %cst_508 = arith.constant dense<0.000000e+00> : vector<8x8xf32>
    %706 = tpu.matmul %690, %705, %cst_508 {dimension_numbers = #tpu.dot_dimension_numbers<[1], [0], [0], [1], [0, 0, 1, 1], [], []>} : vector<8x8xf32>, vector<8x8xf32>, vector<8x8xf32> -> vector<8x8xf32>
    %cst_509 = arith.constant 0.353553385 : f32
    %707 = vector.broadcast %cst_509 : f32 to vector<8x8xf32>
    %708 = arith.mulf %706, %707 : vector<8x8xf32>
    %cst_510 = arith.constant dense<0xFF800000> : vector<8xf32>
    %709 = vector.multi_reduction <maximumf>, %708, %cst_510 [1] : vector<8x8xf32> to vector<8xf32>
    %710 = vector.shape_cast %709 : vector<8xf32> to vector<8x1xf32>
    %711 = vector.broadcast %710 : vector<8x1xf32> to vector<8x8xf32>
    %712 = arith.subf %708, %711 : vector<8x8xf32>
    %713 = math.exp %712 : vector<8x8xf32>
    %cst_511 = arith.constant dense<0.000000e+00> : vector<8xf32>
    %714 = vector.multi_reduction <add>, %713, %cst_511 [1] : vector<8x8xf32> to vector<8xf32>
    %715 = vector.shape_cast %714 : vector<8xf32> to vector<8x1xf32>
    %716 = tpu.reciprocal %715 {approx = true} : vector<8x1xf32> -> vector<8x1xf32>
    %717 = vector.broadcast %716 : vector<8x1xf32> to vector<8x8xf32>
    %718 = arith.mulf %713, %717 : vector<8x8xf32>
    %cst_512 = arith.constant dense<0.000000e+00> : vector<8x8xf32>
    %719 = tpu.matmul %718, %704, %cst_512 {dimension_numbers = #tpu.dot_dimension_numbers<[1], [0], [0], [1], [0, 0, 1, 1], [], []>} : vector<8x8xf32>, vector<8x8xf32>, vector<8x8xf32> -> vector<8x8xf32>
    %c7_513 = arith.constant 7 : index
    %c0_514 = arith.constant 0 : index
    %c0_515 = arith.constant 0 : index
    %720 = vector.load %arg8[%c7_513, %c0_514, %c0_515] : memref<8x8x32xf32, #tpu.memory_space<vmem>>, vector<1x8x32xf32>
    %721 = vector.shape_cast %720 : vector<1x8x32xf32> to vector<8x32xf32>
    %cst_516 = arith.constant dense<0.000000e+00> : vector<8x32xf32>
    %722 = tpu.matmul %719, %721, %cst_516 {dimension_numbers = #tpu.dot_dimension_numbers<[1], [0], [0], [1], [0, 0, 1, 1], [], []>} : vector<8x8xf32>, vector<8x32xf32>, vector<8x32xf32> -> vector<8x32xf32>
    %723 = arith.addf %683, %722 : vector<8x32xf32>
    %724 = tpu.concatenate %561, %723 in 0 : vector<8x32xf32>, vector<8x32xf32> -> vector<16x32xf32>
    %c1_517 = arith.constant 1 : index
    %c0_518 = arith.constant 0 : index
    %c0_519 = arith.constant 0 : index
    %725 = vector.load %arg9[%c1_517, %c0_518, %c0_519] : memref<2x1x32xf32, #tpu.memory_space<vmem>>, vector<1x1x32xf32>
    %726 = vector.shape_cast %725 : vector<1x1x32xf32> to vector<1x32xf32>
    %727 = vector.broadcast %726 : vector<1x32xf32> to vector<16x32xf32>
    %728 = arith.addf %724, %727 : vector<16x32xf32>
    %729 = arith.addf %728, %399 : vector<16x32xf32>
    %c1_520 = arith.constant 1 : index
    %c0_521 = arith.constant 0 : index
    %c0_522 = arith.constant 0 : index
    %730 = vector.load %arg10[%c1_520, %c0_521, %c0_522] : memref<2x1x32xf32, #tpu.memory_space<vmem>>, vector<1x1x32xf32>
    %731 = vector.shape_cast %730 : vector<1x1x32xf32> to vector<1x32xf32>
    %c1_523 = arith.constant 1 : index
    %c0_524 = arith.constant 0 : index
    %c0_525 = arith.constant 0 : index
    %732 = vector.load %arg11[%c1_523, %c0_524, %c0_525] : memref<2x1x32xf32, #tpu.memory_space<vmem>>, vector<1x1x32xf32>
    %733 = vector.shape_cast %732 : vector<1x1x32xf32> to vector<1x32xf32>
    %cst_526 = arith.constant dense<0.000000e+00> : vector<16xf32>
    %734 = vector.multi_reduction <add>, %729, %cst_526 [1] : vector<16x32xf32> to vector<16xf32>
    %735 = vector.shape_cast %734 : vector<16xf32> to vector<16x1xf32>
    %cst_527 = arith.constant 3.200000e+01 : f32
    %736 = vector.broadcast %cst_527 : f32 to vector<16x1xf32>
    %737 = arith.divf %735, %736 : vector<16x1xf32>
    %738 = vector.broadcast %737 : vector<16x1xf32> to vector<16x32xf32>
    %739 = arith.subf %729, %738 : vector<16x32xf32>
    %740 = arith.mulf %739, %739 : vector<16x32xf32>
    %cst_528 = arith.constant dense<0.000000e+00> : vector<16xf32>
    %741 = vector.multi_reduction <add>, %740, %cst_528 [1] : vector<16x32xf32> to vector<16xf32>
    %742 = vector.shape_cast %741 : vector<16xf32> to vector<16x1xf32>
    %cst_529 = arith.constant 3.200000e+01 : f32
    %743 = vector.broadcast %cst_529 : f32 to vector<16x1xf32>
    %744 = arith.divf %742, %743 : vector<16x1xf32>
    %cst_530 = arith.constant 9.99999974E-6 : f32
    %745 = vector.broadcast %cst_530 : f32 to vector<16x1xf32>
    %746 = arith.addf %744, %745 : vector<16x1xf32>
    %747 = math.rsqrt %746 : vector<16x1xf32>
    %748 = vector.broadcast %737 : vector<16x1xf32> to vector<16x32xf32>
    %749 = arith.subf %729, %748 : vector<16x32xf32>
    %750 = vector.broadcast %747 : vector<16x1xf32> to vector<16x32xf32>
    %751 = arith.mulf %749, %750 : vector<16x32xf32>
    %752 = vector.broadcast %731 : vector<1x32xf32> to vector<16x32xf32>
    %753 = arith.mulf %751, %752 : vector<16x32xf32>
    %754 = vector.broadcast %733 : vector<1x32xf32> to vector<16x32xf32>
    %755 = arith.addf %753, %754 : vector<16x32xf32>
    %c1_531 = arith.constant 1 : index
    %c0_532 = arith.constant 0 : index
    %c0_533 = arith.constant 0 : index
    %756 = vector.load %arg12[%c1_531, %c0_532, %c0_533] : memref<2x32x64xf32, #tpu.memory_space<vmem>>, vector<1x32x64xf32>
    %757 = vector.shape_cast %756 : vector<1x32x64xf32> to vector<32x64xf32>
    %cst_534 = arith.constant dense<0.000000e+00> : vector<16x64xf32>
    %758 = tpu.matmul %755, %757, %cst_534 {dimension_numbers = #tpu.dot_dimension_numbers<[1], [0], [0], [1], [0, 0, 1, 1], [], []>} : vector<16x32xf32>, vector<32x64xf32>, vector<16x64xf32> -> vector<16x64xf32>
    %c1_535 = arith.constant 1 : index
    %c0_536 = arith.constant 0 : index
    %c0_537 = arith.constant 0 : index
    %759 = vector.load %arg13[%c1_535, %c0_536, %c0_537] : memref<2x1x64xf32, #tpu.memory_space<vmem>>, vector<1x1x64xf32>
    %760 = vector.shape_cast %759 : vector<1x1x64xf32> to vector<1x64xf32>
    %761 = vector.broadcast %760 : vector<1x64xf32> to vector<16x64xf32>
    %762 = arith.addf %758, %761 : vector<16x64xf32>
    %cst_538 = arith.constant 0.000000e+00 : f32
    %763 = vector.broadcast %cst_538 : f32 to vector<16x64xf32>
    %764 = arith.maximumf %762, %763 : vector<16x64xf32>
    %c1_539 = arith.constant 1 : index
    %c0_540 = arith.constant 0 : index
    %c0_541 = arith.constant 0 : index
    %765 = vector.load %arg14[%c1_539, %c0_540, %c0_541] : memref<2x64x32xf32, #tpu.memory_space<vmem>>, vector<1x64x32xf32>
    %766 = vector.shape_cast %765 : vector<1x64x32xf32> to vector<64x32xf32>
    %cst_542 = arith.constant dense<0.000000e+00> : vector<16x32xf32>
    %767 = tpu.matmul %764, %766, %cst_542 {dimension_numbers = #tpu.dot_dimension_numbers<[1], [0], [0], [1], [0, 0, 1, 1], [], []>} : vector<16x64xf32>, vector<64x32xf32>, vector<16x32xf32> -> vector<16x32xf32>
    %c1_543 = arith.constant 1 : index
    %c0_544 = arith.constant 0 : index
    %c0_545 = arith.constant 0 : index
    %768 = vector.load %arg15[%c1_543, %c0_544, %c0_545] : memref<2x1x32xf32, #tpu.memory_space<vmem>>, vector<1x1x32xf32>
    %769 = vector.shape_cast %768 : vector<1x1x32xf32> to vector<1x32xf32>
    %770 = vector.broadcast %769 : vector<1x32xf32> to vector<16x32xf32>
    %771 = arith.addf %767, %770 : vector<16x32xf32>
    %772 = arith.addf %771, %755 : vector<16x32xf32>
    %c1_546 = arith.constant 1 : index
    %c0_547 = arith.constant 0 : index
    %c0_548 = arith.constant 0 : index
    %773 = vector.load %arg16[%c1_546, %c0_547, %c0_548] : memref<2x1x32xf32, #tpu.memory_space<vmem>>, vector<1x1x32xf32>
    %774 = vector.shape_cast %773 : vector<1x1x32xf32> to vector<1x32xf32>
    %c1_549 = arith.constant 1 : index
    %c0_550 = arith.constant 0 : index
    %c0_551 = arith.constant 0 : index
    %775 = vector.load %arg17[%c1_549, %c0_550, %c0_551] : memref<2x1x32xf32, #tpu.memory_space<vmem>>, vector<1x1x32xf32>
    %776 = vector.shape_cast %775 : vector<1x1x32xf32> to vector<1x32xf32>
    %cst_552 = arith.constant dense<0.000000e+00> : vector<16xf32>
    %777 = vector.multi_reduction <add>, %772, %cst_552 [1] : vector<16x32xf32> to vector<16xf32>
    %778 = vector.shape_cast %777 : vector<16xf32> to vector<16x1xf32>
    %cst_553 = arith.constant 3.200000e+01 : f32
    %779 = vector.broadcast %cst_553 : f32 to vector<16x1xf32>
    %780 = arith.divf %778, %779 : vector<16x1xf32>
    %781 = vector.broadcast %780 : vector<16x1xf32> to vector<16x32xf32>
    %782 = arith.subf %772, %781 : vector<16x32xf32>
    %783 = arith.mulf %782, %782 : vector<16x32xf32>
    %cst_554 = arith.constant dense<0.000000e+00> : vector<16xf32>
    %784 = vector.multi_reduction <add>, %783, %cst_554 [1] : vector<16x32xf32> to vector<16xf32>
    %785 = vector.shape_cast %784 : vector<16xf32> to vector<16x1xf32>
    %cst_555 = arith.constant 3.200000e+01 : f32
    %786 = vector.broadcast %cst_555 : f32 to vector<16x1xf32>
    %787 = arith.divf %785, %786 : vector<16x1xf32>
    %cst_556 = arith.constant 9.99999974E-6 : f32
    %788 = vector.broadcast %cst_556 : f32 to vector<16x1xf32>
    %789 = arith.addf %787, %788 : vector<16x1xf32>
    %790 = math.rsqrt %789 : vector<16x1xf32>
    %791 = vector.broadcast %780 : vector<16x1xf32> to vector<16x32xf32>
    %792 = arith.subf %772, %791 : vector<16x32xf32>
    %793 = vector.broadcast %790 : vector<16x1xf32> to vector<16x32xf32>
    %794 = arith.mulf %792, %793 : vector<16x32xf32>
    %795 = vector.broadcast %774 : vector<1x32xf32> to vector<16x32xf32>
    %796 = arith.mulf %794, %795 : vector<16x32xf32>
    %797 = vector.broadcast %776 : vector<1x32xf32> to vector<16x32xf32>
    %798 = arith.addf %796, %797 : vector<16x32xf32>
    %c0_557 = arith.constant 0 : index
    %c0_558 = arith.constant 0 : index
    %799 = vector.load %arg18[%c0_557, %c0_558] : memref<16x32xf32, #tpu.memory_space<vmem>>, vector<16x32xf32>
    tpu.vector_store %arg18[%c0_557, %c0_558], %798 {strides = array<i32>} : memref<16x32xf32, #tpu.memory_space<vmem>>, vector<16x32xf32>,
    return
  }
  func.func @transform_0(%arg0: i32) -> (i32, i32) {
    %c0_i32 = arith.constant 0 : i32
    %c0_i32_0 = arith.constant 0 : i32
    %c0_i32_1 = arith.constant 0 : i32
    return %c0_i32, %c0_i32_0 : i32, i32
  }
  func.func @transform_1(%arg0: i32) -> (i32, i32, i32) {
    %c0_i32 = arith.constant 0 : i32
    %c0_i32_0 = arith.constant 0 : i32
    %c0_i32_1 = arith.constant 0 : i32
    %c0_i32_2 = arith.constant 0 : i32
    return %c0_i32, %c0_i32_0, %c0_i32_1 : i32, i32, i32
  }
  func.func @transform_2(%arg0: i32) -> (i32, i32, i32) {
    %c0_i32 = arith.constant 0 : i32
    %c0_i32_0 = arith.constant 0 : i32
    %c0_i32_1 = arith.constant 0 : i32
    %c0_i32_2 = arith.constant 0 : i32
    return %c0_i32, %c0_i32_0, %c0_i32_1 : i32, i32, i32
  }
  func.func @transform_3(%arg0: i32) -> (i32, i32, i32) {
    %c0_i32 = arith.constant 0 : i32
    %c0_i32_0 = arith.constant 0 : i32
    %c0_i32_1 = arith.constant 0 : i32
    %c0_i32_2 = arith.constant 0 : i32
    return %c0_i32, %c0_i32_0, %c0_i32_1 : i32, i32, i32
  }
  func.func @transform_4(%arg0: i32) -> (i32, i32, i32) {
    %c0_i32 = arith.constant 0 : i32
    %c0_i32_0 = arith.constant 0 : i32
    %c0_i32_1 = arith.constant 0 : i32
    %c0_i32_2 = arith.constant 0 : i32
    return %c0_i32, %c0_i32_0, %c0_i32_1 : i32, i32, i32
  }
  func.func @transform_5(%arg0: i32) -> (i32, i32, i32) {
    %c0_i32 = arith.constant 0 : i32
    %c0_i32_0 = arith.constant 0 : i32
    %c0_i32_1 = arith.constant 0 : i32
    %c0_i32_2 = arith.constant 0 : i32
    return %c0_i32, %c0_i32_0, %c0_i32_1 : i32, i32, i32
  }
  func.func @transform_6(%arg0: i32) -> (i32, i32, i32) {
    %c0_i32 = arith.constant 0 : i32
    %c0_i32_0 = arith.constant 0 : i32
    %c0_i32_1 = arith.constant 0 : i32
    %c0_i32_2 = arith.constant 0 : i32
    return %c0_i32, %c0_i32_0, %c0_i32_1 : i32, i32, i32
  }
  func.func @transform_7(%arg0: i32) -> (i32, i32, i32) {
    %c0_i32 = arith.constant 0 : i32
    %c0_i32_0 = arith.constant 0 : i32
    %c0_i32_1 = arith.constant 0 : i32
    %c0_i32_2 = arith.constant 0 : i32
    return %c0_i32, %c0_i32_0, %c0_i32_1 : i32, i32, i32
  }
  func.func @transform_8(%arg0: i32) -> (i32, i32, i32) {
    %c0_i32 = arith.constant 0 : i32
    %c0_i32_0 = arith.constant 0 : i32
    %c0_i32_1 = arith.constant 0 : i32
    %c0_i32_2 = arith.constant 0 : i32
    return %c0_i32, %c0_i32_0, %c0_i32_1 : i32, i32, i32
  }
  func.func @transform_9(%arg0: i32) -> (i32, i32, i32) {
    %c0_i32 = arith.constant 0 : i32
    %c0_i32_0 = arith.constant 0 : i32
    %c0_i32_1 = arith.constant 0 : i32
    %c0_i32_2 = arith.constant 0 : i32
    return %c0_i32, %c0_i32_0, %c0_i32_1 : i32, i32, i32
  }
  func.func @transform_10(%arg0: i32) -> (i32, i32, i32) {
    %c0_i32 = arith.constant 0 : i32
    %c0_i32_0 = arith.constant 0 : i32
    %c0_i32_1 = arith.constant 0 : i32
    %c0_i32_2 = arith.constant 0 : i32
    return %c0_i32, %c0_i32_0, %c0_i32_1 : i32, i32, i32
  }
  func.func @transform_11(%arg0: i32) -> (i32, i32, i32) {
    %c0_i32 = arith.constant 0 : i32
    %c0_i32_0 = arith.constant 0 : i32
    %c0_i32_1 = arith.constant 0 : i32
    %c0_i32_2 = arith.constant 0 : i32
    return %c0_i32, %c0_i32_0, %c0_i32_1 : i32, i32, i32
  }
  func.func @transform_12(%arg0: i32) -> (i32, i32, i32) {
    %c0_i32 = arith.constant 0 : i32
    %c0_i32_0 = arith.constant 0 : i32
    %c0_i32_1 = arith.constant 0 : i32
    %c0_i32_2 = arith.constant 0 : i32
    return %c0_i32, %c0_i32_0, %c0_i32_1 : i32, i32, i32
  }
  func.func @transform_13(%arg0: i32) -> (i32, i32, i32) {
    %c0_i32 = arith.constant 0 : i32
    %c0_i32_0 = arith.constant 0 : i32
    %c0_i32_1 = arith.constant 0 : i32
    %c0_i32_2 = arith.constant 0 : i32
    return %c0_i32, %c0_i32_0, %c0_i32_1 : i32, i32, i32
  }
  func.func @transform_14(%arg0: i32) -> (i32, i32, i32) {
    %c0_i32 = arith.constant 0 : i32
    %c0_i32_0 = arith.constant 0 : i32
    %c0_i32_1 = arith.constant 0 : i32
    %c0_i32_2 = arith.constant 0 : i32
    return %c0_i32, %c0_i32_0, %c0_i32_1 : i32, i32, i32
  }
  func.func @transform_15(%arg0: i32) -> (i32, i32, i32) {
    %c0_i32 = arith.constant 0 : i32
    %c0_i32_0 = arith.constant 0 : i32
    %c0_i32_1 = arith.constant 0 : i32
    %c0_i32_2 = arith.constant 0 : i32
    return %c0_i32, %c0_i32_0, %c0_i32_1 : i32, i32, i32
  }
  func.func @transform_16(%arg0: i32) -> (i32, i32, i32) {
    %c0_i32 = arith.constant 0 : i32
    %c0_i32_0 = arith.constant 0 : i32
    %c0_i32_1 = arith.constant 0 : i32
    %c0_i32_2 = arith.constant 0 : i32
    return %c0_i32, %c0_i32_0, %c0_i32_1 : i32, i32, i32
  }
  func.func @transform_17(%arg0: i32) -> (i32, i32) {
    %c0_i32 = arith.constant 0 : i32
    %c0_i32_0 = arith.constant 0 : i32
    %c0_i32_1 = arith.constant 0 : i32
    return %c0_i32, %c0_i32_0 : i32, i32
  }
}

</mosaic_0001>

<bundles_post_ra>
// kernel: encoder_forward.1
= control target key start
LH: loop header
LB: loop body
LE: loop exit
PB: predicated region body
PF: predicated region fallthrough
CT: control target
= control target key end

     0   :  { %s4906_s0 = inlined_call_operand.vmem [shape: f32[16,32], index: 0, kind: input, shape index: {}]   ;;  %s4907_s1 = inlined_call_operand.vmem [shape: f32[8,32,8], index: 1, kind: input, shape index: {}]   ;;  %s4908_s2 = inlined_call_operand.vmem [shape: f32[8,32,8], index: 2, kind: input, shape index: {}]   ;;  %s4909_s3 = inlined_call_operand.vmem [shape: f32[8,32,8], index: 3, kind: input, shape index: {}]   ;;  %s4910_s4 = inlined_call_operand.vmem [shape: f32[8,1,8], index: 4, kind: input, shape index: {}]   ;;  %s4911_s5 = inlined_call_operand.vmem [shape: f32[8,1,8], index: 5, kind: input, shape index: {}]   ;;  %s4912_s6 = inlined_call_operand.vmem [shape: f32[8,1,8], index: 6, kind: input, shape index: {}]   ;;  %s4913_s7 = inlined_call_operand.vmem [shape: f32[8,8,32], index: 7, kind: input, shape index: {}]   ;;  %s4914_s8 = inlined_call_operand.vmem [shape: f32[2,1,32], index: 8, kind: input, shape index: {}]   ;;  %s4915_s9 = inlined_call_operand.vmem [shape: f32[2,1,32], index: 9, kind: input, shape index: {}]   ;;  %s4916_s10 = inlined_call_operand.vmem [shape: f32[2,1,32], index: 10, kind: input, shape index: {}]   ;;  %s4917_s11 = inlined_call_operand.vmem [shape: f32[2,32,64], index: 11, kind: input, shape index: {}]   ;;  %s4918_s12 = inlined_call_operand.vmem [shape: f32[2,1,64], index: 12, kind: input, shape index: {}]   ;;  %s4919_s13 = inlined_call_operand.vmem [shape: f32[2,64,32], index: 13, kind: input, shape index: {}]   ;;  %s4920_s14 = inlined_call_operand.vmem [shape: f32[2,1,32], index: 14, kind: input, shape index: {}]   ;;  %s4921_s15 = inlined_call_operand.vmem [shape: f32[2,1,32], index: 15, kind: input, shape index: {}]   ;;  %s4922_s16 = inlined_call_operand.vmem [shape: f32[2,1,32], index: 16, kind: input, shape index: {}]   ;;  %s4923_s17 = inlined_call_operand.hbm [shape: f32[16,32], index: 17, kind: output, shape index: {}]  }
   0x1   :  { %4941 = sst [smem:[#allocation17_spill]] %s4906_s0 }
   0x2   :  { %4942 = sst [smem:[#allocation18_spill]] %s4907_s1 }
   0x3   :  { %v3573_v0 = vld [vmem:[%s4908_s2 + $0x18] sm:$0xff]  ;;  %v3578_v1 = vld [vmem:[%s4908_s2 + $0x10] sm:$0xff]  ;;  %v3584_v2 = vld [vmem:[%s4908_s2 + $0x8] sm:$0xff]  ;;  %s4943_s18 = sld [smem:[#allocation18_spill]]  ;;  %vm67_vm0 = vcmask 261120  }
   0x4   :  { %111 = vmatpush.msra.mxu2 %v3573_v0  ;;  %v3594_v4 = vld [vmem:[%s4908_s2] sm:$0xff]  ;;  %s4944_s26 = sld [smem:[#allocation17_spill]] }
   0x6   :  { %112 = vmatpush.msra.mxu2 %v3578_v1 }
   0x8   :  { %113 = vmatpush.msra.mxu2 %v3584_v2 }
   0x9   :  { %v3589_v3 = vld [vmem:[%s4943_s18 + $0x18] sm:$0xff]  ;;  %v3600_v5 = vld [vmem:[%s4943_s18 + $0x10] sm:$0xff]  ;;  %v3605_v6 = vld [vmem:[%s4943_s18 + $0x8] sm:$0xff] }
   0xa   :  { %83 = vmatpush.msra.mxu0 %v3589_v3  ;;  %v3611_v7 = vld [vmem:[%s4944_s26] sm:$0xff]  ;;  %114 = vmatpush.msra.mxu2 %v3594_v4 }
   0xb   :  { %v3616_v8 = vld [vmem:[%s4943_s18] sm:$0xff]  ;;  %3076 = vmatmul.msk.f32.vlgmr.msra.gmra.mxu2 %vm67_vm0, %v3611_v7 }
   0xc   :  { %84 = vmatpush.msra.mxu0 %v3600_v5 }
   0xe   :  { %85 = vmatpush.msra.mxu0 %v3605_v6 }
  0x10   :  { %86 = vmatpush.msra.mxu0 %v3616_v8 }
  0x11   :  { %3075 = vmatmul.msk.f32.vlgmr.msra.gmra.mxu0 %vm67_vm0, %v3611_v7 }
  0x12   :  { %22 = vsyncpa [#allocation3], 0  ;;  %v3630_v9 = vld [vmem:[%s4911_s5] ss:$0 sm:$0xff]  ;;  %vm147_vm1 = vcmask 64512   ;;  %v3644_v15 = vld [vmem:[%s4909_s3 + $0x18] sm:$0xff] }
  0x13   :  { %v3635_v10 = vld [vmem:[%s4910_s4] ss:$0 sm:$0xff]  ;;  %v3649_v16 = vld [vmem:[%s4909_s3 + $0x10] sm:$0xff]  ;;  %139 = vmatpush.msrb.mxu2 %v3644_v15  ;;  %v3655_v17 = vld [vmem:[%s4909_s3 + $0x8] sm:$0xff]  ;;  %vm1466_vm6 = vcmask 523264   ;;  %s3063_s23 = sshll.u32 %s4923_s17, 4  ;;  %s3064_s23 = int_to_ptr.hbm [resolvable:$true] %s3063_s23 }
  0x14   :  { %v3661_v18 = vld [vmem:[%s4909_s3] sm:$0xff]  ;;  %v3678_v30 = vld [vmem:[%s4943_s18 + $0x38] sm:$0xff]  ;;  %v3683_v31 = vld [vmem:[%s4943_s18 + $0x30] sm:$0xff]  ;;  %s3478_s24 = smov 128  }
  0x15   :  { %140 = vmatpush.msrb.mxu2 %v3649_v16  ;;  %v3672_v28 = vld [vmem:[%s4912_s6] ss:$0 sm:$0xff]  ;;  %v3688_v32 = vld [vmem:[%s4908_s2 + $0x38] sm:$0xff]  ;;  %v3695_v33 = vld [vmem:[%s4908_s2 + $0x30] sm:$0xff] }
  0x16   :  { %262 = vmatpush.msra.mxu1 %v3688_v32  ;;  %v3700_v34 = vld [vmem:[%s4943_s18 + $0x28] sm:$0xff]  ;;  %v3707_v35 = vld [vmem:[%s4943_s18 + $0x20] sm:$0xff]  ;;  %v3725_v38 = vld [vmem:[%s4909_s3 + $0x38] sm:$0xff] }
  0x17   :  { %141 = vmatpush.msrb.mxu2 %v3655_v17  ;;  %v3714_v36 = vld [vmem:[%s4908_s2 + $0x28] sm:$0xff]  ;;  %v3720_v37 = vld [vmem:[%s4908_s2 + $0x20] sm:$0xff]  ;;  %v3730_v39 = vld [vmem:[%s4909_s3 + $0x30] sm:$0xff] }
  0x18   :  { %263 = vmatpush.msra.mxu1 %v3695_v33  ;;  %v3737_v40 = vld [vmem:[%s4909_s3 + $0x28] sm:$0xff]  ;;  %v3745_v41 = vld [vmem:[%s4909_s3 + $0x20] sm:$0xff] }
  0x19   :  { %142 = vmatpush.msrb.mxu2 %v3661_v18  ;;  %v3757_v45 = vld [vmem:[%s4913_s7] sm:$0xff] }
  0x1a   :  { %3077 = vmatmul.msk.f32.vlgmr.msrb.gmra.mxu2 %vm67_vm0, %v3611_v7  ;;  %264 = vmatpush.msra.mxu1 %v3714_v36  ;;  %v3763_v46 = vld [vmem:[%s4911_s5 + $0x1] ss:$0 sm:$0xff] }
  0x1b   :  { %292 = vmatpush.msra.mxu2 %v3725_v38  ;;  %v3770_v49 = vld [vmem:[%s4912_s6 + $0x1] ss:$0 sm:$0xff] }
  0x1c   :  { %265 = vmatpush.msra.mxu1 %v3720_v37  ;;  %v3777_v53 = vld [vmem:[%s4910_s4 + $0x1] ss:$0 sm:$0xff] }
  0x1d   :  { %3092 = vmatmul.msk.f32.vlgmr.msra.gmra.mxu1 %vm67_vm0, %v3611_v7  ;;  %293 = vmatpush.msra.mxu2 %v3730_v39 }
  0x1f   :  { %294 = vmatpush.msra.mxu2 %v3737_v40 }
  0x21   :  { %295 = vmatpush.msra.mxu2 %v3745_v41 }
  0x22   :  { %3098 = vmatmul.msk.f32.vlgmr.msra.gmra.mxu2 %vm67_vm0, %v3611_v7 }
  0x23   :  { %404 = vmatpush.msrb.mxu2 %v3757_v45 }
  0x8e   :  { %v88_v11 = vpop.f32.mrf.mxu0  ;;  %v116_v12 = vpop.f32.mrf.mxu2 }
  0x8f   :  { %v117_v13 = vadd.f32 %v3630_v9, %v116_v12  ;;  %v89_v14 = vadd.f32 %v3635_v10, %v88_v11  ;;  %v3786_v11 = vld [vmem:[%s4943_s18 + $0x58] sm:$0xff]  ;;  %v3792_v12 = vld [vmem:[%s4943_s18 + $0x50] sm:$0xff] }
  0x91   :  { %3078 = vmatpush.xpose.msk.msra.mxu3 %vm147_vm1, %v117_v13  ;;  %v3798_v13 = vld [vmem:[%s4908_s2 + $0x58] sm:$0xff] }
  0x94   :  { %3079 = vmatmul.msk.f32.vlgmr.msra.gmra.mxu3 %vm147_vm1, %v89_v14  ;;  %v3803_v14 = vld [vmem:[%s4943_s18 + $0x48] sm:$0xff] }
  0x9a   :  { %v267_v47 = vpop.f32.mrf.mxu1 }
  0x9b   :  { %v268_v48 = vadd.f32 %v3763_v46, %v267_v47 }
  0x9d   :  { %v144_v27 = vpop.f32.mrf.mxu2 }
  0x9e   :  { %v145_v29 = vadd.f32 %v3672_v28, %v144_v27 }
  0xa0   :  { %204 = vmatpush.msrb.mxu3 %v145_v29  ;;  %v3846_v29 = vld [vmem:[%s4911_s5 + $0x2] ss:$0 sm:$0xff] }
  0xa2   :  { %232 = vmatpush.msra.mxu3 %v3678_v30 }
  0xa4   :  { %233 = vmatpush.msra.mxu3 %v3683_v31 }
  0xa5   :  { %v297_v50 = vpop.f32.mrf.mxu2 }
  0xa6   :  { %234 = vmatpush.msra.mxu3 %v3700_v34  ;;  %v298_v51 = vadd.f32 %v3770_v49, %v297_v50  ;;  %v3860_v50 = vld [vmem:[%s4909_s3 + $0x58] sm:$0xff] }
  0xa8   :  { %235 = vmatpush.msra.mxu3 %v3707_v35  ;;  %356 = vmatpush.msrb.mxu0 %v298_v51 }
  0xaa   :  { %461 = vmatpush.msra.mxu0 %v3798_v13 }
 0x117   :  { %v171_v19 = vpop.f32.mrf.mxu3 }
 0x118   :  { %v174_v20 = vmul.f32 0.35355338, %v171_v19  ;;  %v3808_v19 = vld [vmem:[%s4908_s2 + $0x50] sm:$0xff] }
 0x119   :  { %462 = vmatpush.msra.mxu0 %v3808_v19 }
 0x11a   :  { %v175_v21 = vsel %vm147_vm1, %v174_v20, -inf }
 0x11b   :  { %176 = vmax.xlane.f32.xlu0 %v175_v21  ;;  %v3820_v21 = vld [vmem:[%s4908_s2 + $0x48] sm:$0xff] }
 0x11c   :  { %463 = vmatpush.msra.mxu0 %v3820_v21 }
 0x18e   :  { %v177_v22 = vpop.xlane.xlu0 %176 }
 0x18f   :  { %v178_v23 = vsub.f32 %v174_v20, %v177_v22  ;;  %v3814_v20 = vld [vmem:[%s4943_s18 + $0x40] sm:$0xff] }
 0x190   :  { %v3827_v22 = vld [vmem:[%s4908_s2 + $0x40] sm:$0xff] }
 0x191   :  { %v179_v24 = vmul.f32 1.442695, %v178_v23  ;;  %464 = vmatpush.msra.mxu0 %v3827_v22 }
 0x193   :  { %3368 = vpow2.f32 %v179_v24 }
 0x199   :  { %v3369_v25 = vpop.eup %3368 }
 0x19a   :  { %v181_v26 = vsel %vm147_vm1, %v3369_v25, 0.0 }
 0x19b   :  { %182 = vadd.xlane.f32.xlu0 %v181_v26  ;;  %v3839_v26 = vld [vmem:[%s4913_s7 + $0x8] sm:$0xff] }
 0x19c   :  { %381 = vmatpush.msrb.mxu1 %v3839_v26 }
 0x19e   :  { %491 = vmatpush.msra.mxu1 %v3860_v50 }
 0x20e   :  { %v183_v42 = vpop.xlane.xlu0 %182 }
 0x20f   :  { %3370 = vrcp.f32 %v183_v42  ;;  %v3851_v42 = vld [vmem:[%s4910_s4 + $0x2] ss:$0 sm:$0xff] }
 0x215   :  { %v3371_v43 = vpop.eup %3370 }
 0x216   :  { %v185_v44 = vmul.f32 %v3371_v43, %v3369_v25 }
 0x218   :  { %3080 = vmatmul.msk.f32.vlgmr.msrb.gmra.mxu3 %vm147_vm1, %v185_v44 }
 0x219   :  { %3099 = vmatpush.xpose.msk.msrb.mxu3 %vm147_vm1, %v268_v48 }
 0x220   :  { %3086 = vmatmul.msk.f32.vlgmr.msra.gmra.mxu3 %vm67_vm0, %v3611_v7 }
 0x221   :  { %431 = vmatpush.msra.mxu3 %v3786_v11 }
 0x223   :  { %432 = vmatpush.msra.mxu3 %v3792_v12 }
 0x225   :  { %433 = vmatpush.msra.mxu3 %v3803_v14 }
 0x227   :  { %434 = vmatpush.msra.mxu3 %v3814_v20 }
 0x29b   :  { %v206_v52 = vpop.f32.mrf.mxu3 }
 0x29c   :  { %3104 = vmatmul.msk.f32.vlgmr.msrb.gmra.mxu2 %vm147_vm1, %v206_v52 }
 0x2a3   :  { %v237_v54 = vpop.f32.mrf.mxu3 }
 0x2a4   :  { %v238_v55 = vadd.f32 %v3777_v53, %v237_v54 }
 0x2a6   :  { %3100 = vmatmul.msk.f32.vlgmr.msrb.gmra.mxu3 %vm147_vm1, %v238_v55 }
 0x2ae   :  { %3110 = vmatmul.msk.f32.vlgmr.msra.gmra.mxu3 %vm67_vm0, %v3611_v7 }
 0x31f   :  { %v3863_v51 = vpop.f32.mrf.mxu2 }
 0x329   :  { %v323_v56 = vpop.f32.mrf.mxu3 }
 0x32a   :  { %v326_v57 = vmul.f32 0.35355338, %v323_v56  ;;  %v3869_v56 = vld [vmem:[%s4909_s3 + $0x50] sm:$0xff] }
 0x32b   :  { %492 = vmatpush.msra.mxu1 %v3869_v56 }
 0x32c   :  { %v327_v58 = vsel %vm147_vm1, %v326_v57, -inf }
 0x32d   :  { %328 = vmax.xlane.f32.xlu1 %v327_v58  ;;  %v3880_v58 = vld [vmem:[%s4909_s3 + $0x40] sm:$0xff] }
 0x331   :  { %v436_v43 = vpop.f32.mrf.mxu3 }
 0x332   :  { %v437_v48 = vadd.f32 %v3851_v42, %v436_v43 }
 0x3a0   :  { %v329_v59 = vpop.xlane.xlu1 %328 }
 0x3a1   :  { %v330_v60 = vsub.f32 %v326_v57, %v329_v59  ;;  %v3875_v57 = vld [vmem:[%s4909_s3 + $0x48] sm:$0xff] }
 0x3a2   :  { %493 = vmatpush.msra.mxu1 %v3875_v57 }
 0x3a3   :  { %v331_v61 = vmul.f32 1.442695, %v330_v60 }
 0x3a4   :  { %494 = vmatpush.msra.mxu1 %v3880_v58 }
 0x3a5   :  { %3372 = vpow2.f32 %v331_v61 }
 0x3ab   :  { %v3373_v62 = vpop.eup %3372 }
 0x3ac   :  { %v333_v63 = vsel %vm147_vm1, %v3373_v62, 0.0 }
 0x3ad   :  { %334 = vadd.xlane.f32.xlu1 %v333_v63 }
 0x420   :  { %v335_v23 = vpop.xlane.xlu1 %334 }
 0x421   :  { %3374 = vrcp.f32 %v335_v23 }
 0x427   :  { %v3375_v24 = vpop.eup %3374 }
 0x428   :  { %v337_v25 = vmul.f32 %v3375_v24, %v3373_v62  ;;  %v3890_v24 = vld [vmem:[%s4912_s6 + $0x2] ss:$0 sm:$0xff] }
 0x429   :  { %4945 = vst [vmem:[#allocation5_spill] sm:$0xff] %v3890_v24 }
 0x42a   :  { %3101 = vmatmul.msk.f32.vlgmr.msrb.gmra.mxu0 %vm147_vm1, %v337_v25  ;;  %v3895_v25 = vld [vmem:[%s4908_s2 + $0x78] sm:$0xff] }
 0x432   :  { %3116 = vmatmul.msk.f32.vlgmr.msra.gmra.mxu0 %vm67_vm0, %v3611_v7 }
 0x4a7   :  { %v358_v27 = vpop.f32.mrf.mxu0 }
 0x4a8   :  { %3103 = vmatmul.msk.f32.vlgmr.msrb.gmra.mxu1 %vm147_vm1, %v358_v27 }
 0x4af   :  { %v466_v44 = vpop.f32.mrf.mxu0 }
 0x4b0   :  { %v467_v47 = vadd.f32 %v3846_v29, %v466_v44  ;;  %3122 = vmatmul.msk.f32.vlgmr.msra.gmra.mxu1 %vm67_vm0, %v3611_v7  ;;  %v3902_v44 = vld [vmem:[%s4908_s2 + $0x70] sm:$0xff] }
 0x4b2   :  { %3123 = vmatpush.xpose.msk.msra.mxu2 %vm147_vm1, %v467_v47  ;;  %v3908_v47 = vld [vmem:[%s4908_s2 + $0x68] sm:$0xff] }
 0x4b3   :  { %4946 = vst [vmem:[#allocation6_spill] sm:$0xff] %v3908_v47 }
 0x4b5   :  { %3124 = vmatmul.msk.f32.vlgmr.msra.gmra.mxu2 %vm147_vm1, %v437_v48  ;;  %v3914_v48 = vld [vmem:[%s4908_s2 + $0x60] sm:$0xff] }
 0x4b6   :  { %638 = vmatpush.msrb.mxu2 %v3895_v25  ;;  %4947 = vst [vmem:[#allocation7_spill] sm:$0xff] %v3914_v48 }
 0x4b8   :  { %639 = vmatpush.msrb.mxu2 %v3902_v44 }
 0x4ba   :  { %640 = vmatpush.msrb.mxu2 %v3908_v47 }
 0x4bc   :  { %641 = vmatpush.msrb.mxu2 %v3914_v48 }
 0x4bd   :  { %3139 = vmatmul.msk.f32.vlgmr.msrb.gmra.mxu2 %vm67_vm0, %v3611_v7 }
 0x525   :  { %v383_v23 = vpop.f32.mrf.mxu1 }
 0x52d   :  { %v496_v27 = vpop.f32.mrf.mxu1 }
 0x52e   :  { %v497_v43 = vadd.f32 %v3890_v24, %v496_v27 }
 0x530   :  { %555 = vmatpush.msrb.mxu3 %v497_v43  ;;  %v3955_v43 = vld [vmem:[%s4911_s5 + $0x3] ss:$0 sm:$0xff] }
 0x538   :  { %v522_v52 = vpop.f32.mrf.mxu2 }
 0x539   :  { %v525_v54 = vmul.f32 0.35355338, %v522_v52  ;;  %v3919_v52 = vld [vmem:[%s4943_s18 + $0x78] sm:$0xff] }
 0x53a   :  { %608 = vmatpush.msrb.mxu1 %v3919_v52 }
 0x53b   :  { %v526_v55 = vsel %vm147_vm1, %v525_v54, -inf }
 0x53c   :  { %527 = vmax.xlane.f32.xlu2 %v526_v55  ;;  %v3930_v55 = vld [vmem:[%s4913_s7 + $0x10] sm:$0xff] }
 0x53d   :  { %580 = vmatpush.msrb.mxu0 %v3930_v55 }
 0x540   :  { %v643_v24 = vpop.f32.mrf.mxu2 }
 0x541   :  { %v644_v48 = vadd.f32 %v3955_v43, %v643_v24 }
 0x543   :  { %3146 = vmatpush.xpose.msk.msra.mxu0 %vm147_vm1, %v644_v48 }
 0x5af   :  { %v528_v59 = vpop.xlane.xlu2 %527 }
 0x5b0   :  { %v529_v60 = vsub.f32 %v525_v54, %v528_v59  ;;  %v3924_v54 = vld [vmem:[%s4943_s18 + $0x70] sm:$0xff]  ;;  %v3936_v59 = vld [vmem:[%s4943_s18 + $0x68] sm:$0xff] }
 0x5b1   :  { %609 = vmatpush.msrb.mxu1 %v3924_v54 }
 0x5b2   :  { %v530_v61 = vmul.f32 1.442695, %v529_v60  ;;  %v3945_v60 = vld [vmem:[%s4943_s18 + $0x60] sm:$0xff] }
 0x5b3   :  { %610 = vmatpush.msrb.mxu1 %v3936_v59 }
 0x5b4   :  { %3376 = vpow2.f32 %v530_v61 }
 0x5b5   :  { %611 = vmatpush.msrb.mxu1 %v3945_v60 }
 0x5b6   :  { %3133 = vmatmul.msk.f32.vlgmr.msrb.gmra.mxu1 %vm67_vm0, %v3611_v7 }
 0x5ba   :  { %v3377_v62 = vpop.eup %3376 }
 0x5bb   :  { %v532_v63 = vsel %vm147_vm1, %v3377_v62, 0.0 }
 0x5bc   :  { %533 = vadd.xlane.f32.xlu2 %v532_v63 }
 0x62f   :  { %v534_v61 = vpop.xlane.xlu2 %533 }
 0x630   :  { %3378 = vrcp.f32 %v534_v61  ;;  %v3963_v61 = vld [vmem:[%s4910_s4 + $0x3] ss:$0 sm:$0xff] }
 0x636   :  { %v3379_v63 = vpop.eup %3378 }
 0x637   :  { %v536_v27 = vmul.f32 %v3379_v63, %v3377_v62  ;;  %v613_v62 = vpop.f32.mrf.mxu1 }
 0x638   :  { %v614_v63 = vadd.f32 %v3963_v61, %v613_v62 }
 0x639   :  { %3125 = vmatmul.msk.f32.vlgmr.msrb.gmra.mxu3 %vm147_vm1, %v536_v27 }
 0x6bc   :  { %v557_v47 = vpop.f32.mrf.mxu3 }
 0x6bd   :  { %3127 = vmatmul.msk.f32.vlgmr.msrb.gmra.mxu0 %vm147_vm1, %v557_v47 }
 0x6be   :  { %798 = vmatpush.msrb.mxu0 %v3573_v0  ;;  %v3978_v0 = vld [vmem:[%s4909_s3 + $0x78] sm:$0xff] }
 0x6bf   :  { %668 = vmatpush.msra.mxu3 %v3978_v0 }
 0x6c0   :  { %799 = vmatpush.msrb.mxu0 %v3578_v1  ;;  %v3983_v1 = vld [vmem:[%s4909_s3 + $0x70] sm:$0xff] }
 0x6c1   :  { %669 = vmatpush.msra.mxu3 %v3983_v1 }
 0x6c2   :  { %800 = vmatpush.msrb.mxu0 %v3584_v2  ;;  %v3989_v2 = vld [vmem:[%s4909_s3 + $0x68] sm:$0xff] }
 0x6c3   :  { %670 = vmatpush.msra.mxu3 %v3989_v2 }
 0x6c4   :  { %801 = vmatpush.msrb.mxu0 %v3594_v4  ;;  %v3995_v4 = vld [vmem:[%s4909_s3 + $0x60] sm:$0xff] }
 0x6c5   :  { %3147 = vmatmul.msk.f32.vlgmr.msra.gmra.mxu0 %vm147_vm1, %v614_v63  ;;  %671 = vmatpush.msra.mxu3 %v3995_v4  ;;  %v4026_v63 = vld [vmem:[%s4913_s7 + $0x18] sm:$0xff] }
 0x6c6   :  { %899 = vmatpush.msra.mxu0 %v3678_v30  ;;  %3145 = vmatmul.msk.f32.vlgmr.msra.gmra.mxu3 %vm67_vm0, %v3611_v7  ;;  %v407_v30 = vadd.f32 %v3863_v51, %v383_v23  ;;  %v4017_v23 = vld [vmem:[%s4944_s26 + $0x8] sm:$0xff] }
 0x6c7   :  { %778 = vmatpush.msrb.mxu3 %v3589_v3  ;;  %757 = vmatpush.msra.mxu2 %v4026_v63 }
 0x6c8   :  { %900 = vmatpush.msra.mxu0 %v3683_v31 }
 0x6c9   :  { %779 = vmatpush.msrb.mxu3 %v3600_v5 }
 0x6ca   :  { %901 = vmatpush.msra.mxu0 %v3700_v34 }
 0x6cb   :  { %780 = vmatpush.msrb.mxu3 %v3605_v6  ;;  %v4011_v6 = vld [vmem:[%s4912_s6 + $0x3] ss:$0 sm:$0xff] }
 0x6cc   :  { %902 = vmatpush.msra.mxu0 %v3707_v35 }
 0x6cd   :  { %781 = vmatpush.msrb.mxu3 %v3616_v8  ;;  %3152 = vmatmul.msk.f32.vlgmr.msrb.gmra.mxu0 %vm67_vm0, %v4017_v23 }
 0x6ce   :  { %3151 = vmatmul.msk.f32.vlgmr.msrb.gmra.mxu3 %vm67_vm0, %v4017_v23 }
 0x6d5   :  { %3157 = vmatmul.msk.f32.vlgmr.msra.gmra.mxu0 %vm67_vm0, %v4017_v23 }
 0x73a   :  { %v582_v31 = vpop.f32.mrf.mxu0 }
 0x73b   :  { %v585_v34 = vadd.f32 %v582_v31, %v407_v30 }
 0x742   :  { %v699_v35 = vpop.f32.mrf.mxu0 }
 0x743   :  { %v702_v24 = vmul.f32 0.35355338, %v699_v35 }
 0x745   :  { %v703_v47 = vsel %vm147_vm1, %v702_v24, -inf }
 0x746   :  { %704 = vmax.xlane.f32.xlu0 %v703_v47 }
 0x749   :  { %v673_v8 = vpop.f32.mrf.mxu3 }
 0x74a   :  { %v674_v51 = vadd.f32 %v4011_v6, %v673_v8 }
 0x74c   :  { %732 = vmatpush.msra.mxu1 %v674_v51 }
 0x74e   :  { %818 = vmatpush.msrb.mxu1 %v3644_v15  ;;  %v803_v15 = vpop.f32.mrf.mxu0 }
 0x750   :  { %819 = vmatpush.msrb.mxu1 %v3649_v16  ;;  %v804_v16 = vadd.f32 %v3630_v9, %v803_v15 }
 0x752   :  { %820 = vmatpush.msrb.mxu1 %v3655_v17  ;;  %3154 = vmatpush.xpose.msk.msrb.mxu2 %vm147_vm1, %v804_v16 }
 0x754   :  { %821 = vmatpush.msrb.mxu1 %v3661_v18  ;;  %v783_v18 = vpop.f32.mrf.mxu3 }
 0x756   :  { %v904_v47 = vpop.f32.mrf.mxu0 }
 0x7b9   :  { %v705_v48 = vpop.xlane.xlu0 %704 }
 0x7ba   :  { %v706_v27 = vsub.f32 %v702_v24, %v705_v48  ;;  %v905_v48 = vadd.f32 %v3777_v53, %v904_v47 }
 0x7bc   :  { %v707_v62 = vmul.f32 1.442695, %v706_v27 }
 0x7be   :  { %3380 = vpow2.f32 %v707_v62 }
 0x7c4   :  { %v3381_v3 = vpop.eup %3380 }
 0x7c5   :  { %v709_v5 = vsel %vm147_vm1, %v3381_v3, 0.0 }
 0x7c6   :  { %710 = vadd.xlane.f32.xlu1 %v709_v5 }
 0x839   :  { %v711_v30 = vpop.xlane.xlu1 %710 }
 0x83a   :  { %3382 = vrcp.f32 %v711_v30 }
 0x840   :  { %v3383_v31 = vpop.eup %3382 }
 0x841   :  { %v713_v35 = vmul.f32 %v3383_v31, %v3381_v3 }
 0x843   :  { %3148 = vmatmul.msk.f32.vlgmr.msra.gmra.mxu1 %vm147_vm1, %v713_v35 }
 0x844   :  { %919 = vmatpush.msra.mxu1 %v3688_v32  ;;  %v784_v32 = vadd.f32 %v3635_v10, %v783_v18 }
 0x846   :  { %920 = vmatpush.msra.mxu1 %v3695_v33 }
 0x848   :  { %921 = vmatpush.msra.mxu1 %v3714_v36 }
 0x84a   :  { %922 = vmatpush.msra.mxu1 %v3720_v37 }
 0x84b   :  { %3153 = vmatmul.msk.f32.vlgmr.msrb.gmra.mxu1 %vm67_vm0, %v4017_v23 }
 0x84c   :  { %1026 = vmatpush.msrb.mxu1 %v3839_v26 }
 0x853   :  { %3158 = vmatmul.msk.f32.vlgmr.msra.gmra.mxu1 %vm67_vm0, %v4017_v23 }
 0x854   :  { %1106 = vmatpush.msra.mxu1 %v3860_v50 }
 0x856   :  { %1107 = vmatpush.msra.mxu1 %v3869_v56 }
 0x858   :  { %1108 = vmatpush.msra.mxu1 %v3875_v57 }
 0x85a   :  { %1109 = vmatpush.msra.mxu1 %v3880_v58 }
 0x8c0   :  { %v734_v17 = vpop.f32.mrf.mxu1 }
 0x8c1   :  { %3150 = vmatmul.msk.f32.vlgmr.msra.gmra.mxu2 %vm147_vm1, %v734_v17 }
 0x8c2   :  { %939 = vmatpush.msra.mxu2 %v3725_v38 }
 0x8c4   :  { %940 = vmatpush.msra.mxu2 %v3730_v39 }
 0x8c6   :  { %941 = vmatpush.msra.mxu2 %v3737_v40 }
 0x8c8   :  { %942 = vmatpush.msra.mxu2 %v3745_v41  ;;  %v823_v50 = vpop.f32.mrf.mxu1 }
 0x8c9   :  { %3155 = vmatmul.msk.f32.vlgmr.msrb.gmra.mxu2 %vm147_vm1, %v784_v32 }
 0x8ca   :  { %1049 = vmatpush.msrb.mxu2 %v3757_v45  ;;  %v824_v45 = vadd.f32 %v3672_v28, %v823_v50 }
 0x8cc   :  { %882 = vmatpush.msra.mxu3 %v824_v45 }
 0x8d0   :  { %v924_v56 = vpop.f32.mrf.mxu1 }
 0x8d1   :  { %3159 = vmatmul.msk.f32.vlgmr.msra.gmra.mxu2 %vm67_vm0, %v4017_v23  ;;  %v925_v57 = vadd.f32 %v3763_v46, %v924_v56  ;;  %v4950_v56 = vld [vmem:[#allocation5_spill] sm:$0xff] }
 0x8d3   :  { %3160 = vmatpush.xpose.msk.msrb.mxu3 %vm147_vm1, %v925_v57 }
 0x944   :  { %v759_v9 = vpop.f32.mrf.mxu2 }
 0x945   :  { %v762_v33 = vadd.f32 %v759_v9, %v585_v34 }
 0x94c   :  { %v849_v36 = vpop.f32.mrf.mxu2 }
 0x94d   :  { %v852_v37 = vmul.f32 0.35355338, %v849_v36 }
 0x94f   :  { %v853_v38 = vsel %vm147_vm1, %v852_v37, -inf }
 0x950   :  { %854 = vmax.xlane.f32.xlu2 %v853_v38 }
 0x954   :  { %v944_v28 = vpop.f32.mrf.mxu2 }
 0x955   :  { %v945_v46 = vadd.f32 %v3770_v49, %v944_v28 }
 0x957   :  { %1003 = vmatpush.msrb.mxu0 %v945_v46 }
 0x959   :  { %1086 = vmatpush.msra.mxu0 %v3798_v13  ;;  %v4085_v13 = vld [vmem:[%s4914_s8] ss:$0 sm:$0xff] }
 0x95b   :  { %1087 = vmatpush.msra.mxu0 %v3808_v19 }
 0x95d   :  { %1088 = vmatpush.msra.mxu0 %v3820_v21  ;;  %v1348_v21 = vadd.f32 %v4085_v13, %v762_v33 }
 0x95f   :  { %1089 = vmatpush.msra.mxu0 %v3827_v22  ;;  %v1350_v62 = vadd.f32 %v1348_v21, %v3611_v7  ;;  %v4155_v21 = vld [vmem:[%s4916_s10] ss:$0 sm:$0xff] }
 0x961   :  { %v1354_v3 = vsel %vm67_vm0, %v1350_v62, 0.0 }
 0x9c3   :  { %v855_v39 = vpop.xlane.xlu2 %854 }
 0x9c4   :  { %v856_v10 = vsub.f32 %v852_v37, %v855_v39 }
 0x9c6   :  { %v857_v26 = vmul.f32 1.442695, %v856_v10 }
 0x9c8   :  { %3384 = vpow2.f32 %v857_v26 }
 0x9ce   :  { %v3385_v40 = vpop.eup %3384 }
 0x9cf   :  { %v859_v41 = vsel %vm147_vm1, %v3385_v40, 0.0 }
 0x9d0   :  { %860 = vadd.xlane.f32.xlu0 %v859_v41 }
 0xa43   :  { %v861_v58 = vpop.xlane.xlu0 %860 }
 0xa44   :  { %3386 = vrcp.f32 %v861_v58 }
 0xa4a   :  { %v3387_v34 = vpop.eup %3386 }
 0xa4b   :  { %v863_v24 = vmul.f32 %v3387_v34, %v3385_v40 }
 0xa4d   :  { %3156 = vmatmul.msk.f32.vlgmr.msra.gmra.mxu3 %vm147_vm1, %v863_v24 }
 0xa4e   :  { %1066 = vmatpush.msra.mxu3 %v3786_v11 }
 0xa50   :  { %1067 = vmatpush.msra.mxu3 %v3792_v12 }
 0xa52   :  { %1068 = vmatpush.msra.mxu3 %v3803_v14 }
 0xa54   :  { %1069 = vmatpush.msra.mxu3 %v3814_v20 }
 0xa55   :  { %3161 = vmatmul.msk.f32.vlgmr.msrb.gmra.mxu3 %vm147_vm1, %v905_v48 }
 0xa5d   :  { %3165 = vmatmul.msk.f32.vlgmr.msra.gmra.mxu3 %vm67_vm0, %v4017_v23 }
 0xad0   :  { %v884_v53 = vpop.f32.mrf.mxu3 }
 0xad1   :  { %3164 = vmatmul.msk.f32.vlgmr.msrb.gmra.mxu2 %vm147_vm1, %v884_v53 }
 0xad8   :  { %v970_v11 = vpop.f32.mrf.mxu3 }
 0xad9   :  { %v973_v12 = vmul.f32 0.35355338, %v970_v11 }
 0xadb   :  { %v974_v14 = vsel %vm147_vm1, %v973_v12, -inf }
 0xadc   :  { %975 = vmax.xlane.f32.xlu1 %v974_v14 }
 0xae0   :  { %v1071_v7 = vpop.f32.mrf.mxu3 }
 0xb4f   :  { %v976_v20 = vpop.xlane.xlu1 %975 }
 0xb50   :  { %v977_v27 = vsub.f32 %v973_v12, %v976_v20  ;;  %v1415_v20 = vld [vmem:[%s4917_s11] sm:$0xff] }
 0xb52   :  { %v978_v49 = vmul.f32 1.442695, %v977_v27  ;;  %v4147_v27 = vld [vmem:[%s4915_s9] ss:$0 sm:$0xff] }
 0xb54   :  { %3388 = vpow2.f32 %v978_v49  ;;  %v4115_v15 = vpop.f32.mrf.mxu2 }
 0xb5a   :  { %v3389_v19 = vpop.eup %3388 }
 0xb5b   :  { %v980_v22 = vsel %vm147_vm1, %v3389_v19, 0.0 }
 0xb5c   :  { %981 = vadd.xlane.f32.xlu2 %v980_v22 }
 0xb64   :  { %1355 = vadd.xlane.f32.xlu2 %v1354_v3 }
 0xbcf   :  { %v982_v5 = vpop.xlane.xlu2 %981 }
 0xbd0   :  { %3390 = vrcp.f32 %v982_v5  ;;  %v1461_v5 = vld [vmem:[%s4919_s13 + $0x38] sm:$0xff] }
 0xbd6   :  { %v3391_v8 = vpop.eup %3390 }
 0xbd7   :  { %v984_v51 = vmul.f32 %v3391_v8, %v3389_v19  ;;  %v1356_v17 = vpop.xlane.xlu2 %1355 }
 0xbd9   :  { %3162 = vmatmul.msk.f32.vlgmr.msrb.gmra.mxu0 %vm147_vm1, %v984_v51  ;;  %v1460_v51 = vld [vmem:[%s4919_s13 + $0x30] sm:$0xff] }
 0xbda   :  { %1193 = vmatpush.msrb.mxu0 %v3930_v55  ;;  %v1072_v55 = vadd.f32 %v3851_v42, %v1071_v7  ;;  %v1459_v7 = vld [vmem:[%s4919_s13 + $0x28] sm:$0xff] }
 0xbe1   :  { %3166 = vmatmul.msk.f32.vlgmr.msra.gmra.mxu0 %vm67_vm0, %v4017_v23 }
 0xc56   :  { %v1005_v30 = vpop.f32.mrf.mxu0 }
 0xc57   :  { %3163 = vmatmul.msk.f32.vlgmr.msrb.gmra.mxu1 %vm147_vm1, %v1005_v30 }
 0xc58   :  { %1211 = vmatpush.msrb.mxu1 %v3919_v52  ;;  %v4948_v52 = vld [vmem:[#allocation6_spill] sm:$0xff] }
 0xc5a   :  { %1212 = vmatpush.msrb.mxu1 %v3924_v54  ;;  %v4949_v54 = vld [vmem:[#allocation7_spill] sm:$0xff] }
 0xc5c   :  { %1213 = vmatpush.msrb.mxu1 %v3936_v59 }
 0xc5e   :  { %v1091_v31 = vpop.f32.mrf.mxu0  ;;  %1214 = vmatpush.msrb.mxu1 %v3945_v60 }
 0xc5f   :  { %v1092_v35 = vadd.f32 %v3846_v29, %v1091_v31  ;;  %3167 = vmatmul.msk.f32.vlgmr.msra.gmra.mxu1 %vm67_vm0, %v4017_v23  ;;  %v3476_v29 = vmov 32.0   ;;  %v1458_v31 = vld [vmem:[%s4919_s13 + $0x20] sm:$0xff] }
 0xc60   :  { %3392 = vrcp.f32 %v3476_v29  ;;  %v4189_v29 = vld [vmem:[%s4918_s12] ss:$0 sm:$0xff] }
 0xc61   :  { %3168 = vmatpush.xpose.msk.msra.mxu2 %vm147_vm1, %v1092_v35  ;;  %v1457_v35 = vld [vmem:[%s4919_s13 + $0x18] sm:$0xff] }
 0xc64   :  { %3169 = vmatmul.msk.f32.vlgmr.msra.gmra.mxu2 %vm147_vm1, %v1072_v55 }
 0xc65   :  { %1231 = vmatpush.msrb.mxu2 %v3895_v25 }
 0xc66   :  { %v3393_v42 = vpop.eup %3392 }
 0xc67   :  { %1232 = vmatpush.msrb.mxu2 %v3902_v44  ;;  %3172 = vmatmul.msk.f32.vlgmr.msrb.gmra.mxu1 %vm67_vm0, %v4017_v23  ;;  %v1361_v25 = vmul.f32 32.0, %v3393_v42  ;;  %vm1365_vm2 = vweird.f32 %v3393_v42 }
 0xc69   :  { %1233 = vmatpush.msrb.mxu2 %v4948_v52  ;;  %v1362_v59 = vsub.f32 1.0, %v1361_v25 }
 0xc6b   :  { %1234 = vmatpush.msrb.mxu2 %v4949_v54  ;;  %v1363_v60 = vmul.f32 %v3393_v42, %v1362_v59  ;;  %v1456_v54 = vld [vmem:[%s4919_s13 + $0x10] sm:$0xff] }
 0xc6c   :  { %3173 = vmatmul.msk.f32.vlgmr.msrb.gmra.mxu2 %vm67_vm0, %v4017_v23 }
 0xc6d   :  { %1338 = vmatpush.msra.mxu2 %v4026_v63  ;;  %v1364_v44 = vadd.f32 %v3393_v42, %v1363_v60 }
 0xc6f   :  { %v4117_v16 = vsel %vm1365_vm2, %v3393_v42, %v1364_v44 }
 0xc70   :  { %v1367_v18 = vmul.f32 %v4117_v16, %v1356_v17 }
 0xc72   :  { %v1369_v9 = vsub.f32 %v1350_v62, %v1367_v18 }
 0xc74   :  { %v1371_v36 = vmul.f32 %v1369_v9, %v1369_v9 }
 0xc76   :  { %v1373_v37 = vsel %vm67_vm0, %v1371_v36, 0.0 }
 0xcd4   :  { %v4123_v41 = vpop.f32.mrf.mxu1 }
 0xcd5   :  { %v1052_v60 = vadd.f32 %v4115_v15, %v4123_v41 }
 0xcdc   :  { %v1111_v45 = vpop.f32.mrf.mxu1 }
 0xcdd   :  { %v1112_v57 = vadd.f32 %v4950_v56, %v1111_v45 }
 0xcdf   :  { %1170 = vmatpush.msrb.mxu3 %v1112_v57 }
 0xce1   :  { %1251 = vmatpush.msra.mxu3 %v3978_v0  ;;  %v1418_v0 = vld [vmem:[%s4917_s11 + $0x18] sm:$0xff] }
 0xce3   :  { %1252 = vmatpush.msra.mxu3 %v3983_v1  ;;  %v1417_v1 = vld [vmem:[%s4917_s11 + $0x10] sm:$0xff] }
 0xce4   :  { %v1216_v30 = vpop.f32.mrf.mxu1 }
 0xce5   :  { %1253 = vmatpush.msra.mxu3 %v3989_v2  ;;  %v1416_v2 = vld [vmem:[%s4917_s11 + $0x8] sm:$0xff] }
 0xce7   :  { %v1137_v32 = vpop.f32.mrf.mxu2  ;;  %1254 = vmatpush.msra.mxu3 %v3995_v4 }
 0xce8   :  { %v1140_v63 = vmul.f32 0.35355338, %v1137_v32 }
 0xcea   :  { %v1141_v33 = vsel %vm147_vm1, %v1140_v63, -inf }
 0xceb   :  { %1142 = vmax.xlane.f32.xlu0 %v1141_v33 }
 0xcef   :  { %v1236_v62 = vpop.f32.mrf.mxu2 }
 0xcf0   :  { %v1237_v3 = vadd.f32 %v3955_v43, %v1236_v62  ;;  %v1217_v43 = vadd.f32 %v3963_v61, %v1216_v30  ;;  %v1455_v61 = vld [vmem:[%s4919_s13 + $0x8] sm:$0xff] }
 0xcf2   :  { %3175 = vmatpush.xpose.msk.msra.mxu0 %vm147_vm1, %v1237_v3  ;;  %v4264_v3 = vld [vmem:[%s4921_s15] ss:$0 sm:$0xff] }
 0xcf3   :  { %1374 = vadd.xlane.f32.xlu0 %v1373_v37 }
 0xd5e   :  { %v1143_v38 = vpop.xlane.xlu0 %1142 }
 0xd5f   :  { %v1144_v39 = vsub.f32 %v1140_v63, %v1143_v38 }
 0xd61   :  { %v1145_v10 = vmul.f32 1.442695, %v1144_v39 }
 0xd63   :  { %3394 = vpow2.f32 %v1145_v10 }
 0xd66   :  { %v1375_v50 = vpop.xlane.xlu0 %1374 }
 0xd67   :  { %v1379_v58 = vmul.f32 %v1375_v50, %v4117_v16 }
 0xd69   :  { %v3395_v26 = vpop.eup %3394  ;;  %v1381_v34 = vadd.f32 1e-05, %v1379_v58  ;;  %v4214_v58 = vld [vmem:[%s4943_s18 + $0x98] sm:$0xff] }
 0xd6a   :  { %v1147_v40 = vsel %vm147_vm1, %v3395_v26, 0.0 }
 0xd6b   :  { %1148 = vadd.xlane.f32.xlu1 %v1147_v40  ;;  %3396 = vrsqrt.f32 %v1381_v34  ;;  %vm1389_vm4 = vweird.f32 %v1381_v34 }
 0xd71   :  { %v3397_v24 = vpop.eup %3396 }
 0xd72   :  { %v1384_v47 = vmul.f32 %v3397_v24, %v1381_v34  ;;  %vm1390_vm3 = vweird.f32 %v3397_v24 }
 0xd73   :  { %vm1391_vm5 = vmor %vm1389_vm4, %vm1390_vm3 }
 0xd74   :  { %v1385_v48 = vmul.f32 %v3397_v24, %v1384_v47  ;;  %v4226_v47 = vld [vmem:[%s4943_s18 + $0x88] sm:$0xff] }
 0xd76   :  { %v1386_v46 = vmul.f32 0.5, %v1385_v48  ;;  %v4232_v48 = vld [vmem:[%s4943_s18 + $0x80] sm:$0xff] }
 0xd78   :  { %v1387_v53 = vsub.f32 1.5, %v1386_v46 }
 0xd7a   :  { %v1388_v14 = vmul.f32 %v3397_v24, %v1387_v53  ;;  %v4238_v53 = vld [vmem:[%s4909_s3 + $0x98] sm:$0xff] }
 0xd7c   :  { %v1392_v4 = vsel %vm1391_vm5, %v3397_v24, %v1388_v14  ;;  %v4220_v24 = vld [vmem:[%s4943_s18 + $0x90] sm:$0xff] }
 0xd7d   :  { %v1403_v49 = vmul.f32 %v1392_v4, %v1369_v9  ;;  %v4204_v9 = vld [vmem:[%s4920_s14] ss:$0 sm:$0xff] }
 0xd7f   :  { %v1408_v19 = vmul.f32 %v4147_v27, %v1403_v49 }
 0xd81   :  { %v1413_v22 = vadd.f32 %v4155_v21, %v1408_v19 }
 0xdde   :  { %v1149_v28 = vpop.xlane.xlu1 %1148 }
 0xddf   :  { %3398 = vrcp.f32 %v1149_v28 }
 0xde5   :  { %v3399_v11 = vpop.eup %3398 }
 0xde6   :  { %v1151_v12 = vmul.f32 %v3399_v11, %v3395_v26 }
 0xde8   :  { %3170 = vmatmul.msk.f32.vlgmr.msrb.gmra.mxu3 %vm147_vm1, %v1151_v12 }
 0xde9   :  { %1441 = vmatpush.msrb.mxu3 %v1418_v0  ;;  %v4245_v0 = vld [vmem:[%s4909_s3 + $0x90] sm:$0xff] }
 0xdeb   :  { %1442 = vmatpush.msrb.mxu3 %v1417_v1  ;;  %v4251_v1 = vld [vmem:[%s4909_s3 + $0x88] sm:$0xff] }
 0xded   :  { %1443 = vmatpush.msrb.mxu3 %v1416_v2  ;;  %v4257_v2 = vld [vmem:[%s4909_s3 + $0x80] sm:$0xff] }
 0xdef   :  { %1444 = vmatpush.msrb.mxu3 %v1415_v20 }
 0xdf0   :  { %3174 = vmatmul.msk.f32.vlgmr.msra.gmra.mxu3 %vm67_vm0, %v4017_v23 }
 0xdf8   :  { %3179 = vmatmul.msk.f32.vlgmr.msrb.gmra.mxu3 %vm67_vm0, %v1413_v22 }
 0xe6b   :  { %v1172_v8 = vpop.f32.mrf.mxu3 }
 0xe6c   :  { %3171 = vmatmul.msk.f32.vlgmr.msrb.gmra.mxu0 %vm147_vm1, %v1172_v8  ;;  %v4269_v8 = vld [vmem:[%s4922_s16] ss:$0 sm:$0xff] }
 0xe6d   :  { %1481 = vmatpush.msrb.mxu0 %v1461_v5 }
 0xe6f   :  { %1482 = vmatpush.msrb.mxu0 %v1460_v51 }
 0xe71   :  { %1483 = vmatpush.msrb.mxu0 %v1459_v7 }
 0xe73   :  { %v1256_v55 = vpop.f32.mrf.mxu3  ;;  %1484 = vmatpush.msrb.mxu0 %v1458_v31  ;;  %v4285_v31 = vld [vmem:[%s4943_s18 + $0xb0] sm:$0xff] }
 0xe74   :  { %v1257_v52 = vadd.f32 %v4011_v6, %v1256_v55  ;;  %3176 = vmatmul.msk.f32.vlgmr.msra.gmra.mxu0 %vm147_vm1, %v1217_v43  ;;  %v1454_v6 = vld [vmem:[%s4919_s13] sm:$0xff]  ;;  %v4278_v43 = vld [vmem:[%s4943_s18 + $0xb8] sm:$0xff] }
 0xe75   :  { %1485 = vmatpush.msrb.mxu0 %v1457_v35  ;;  %v4291_v35 = vld [vmem:[%s4943_s18 + $0xa8] sm:$0xff]  ;;  %v4297_v55 = vld [vmem:[%s4943_s18 + $0xa0] sm:$0xff] }
 0xe76   :  { %1315 = vmatpush.msra.mxu1 %v1257_v52  ;;  %v4308_v52 = vld [vmem:[%s4908_s2 + $0x98] sm:$0xff] }
 0xe77   :  { %1486 = vmatpush.msrb.mxu0 %v1456_v54  ;;  %v4313_v54 = vld [vmem:[%s4908_s2 + $0x90] sm:$0xff]  ;;  %1609 = vmatpush.msrb.mxu2 %v4308_v52 }
 0xe78   :  { %1579 = vmatpush.msrb.mxu1 %v4214_v58 }
 0xe79   :  { %1487 = vmatpush.msrb.mxu0 %v1455_v61  ;;  %v4319_v61 = vld [vmem:[%s4908_s2 + $0x88] sm:$0xff]  ;;  %1610 = vmatpush.msrb.mxu2 %v4313_v54 }
 0xe7a   :  { %1580 = vmatpush.msrb.mxu1 %v4220_v24 }
 0xe7b   :  { %v1446_v42 = vpop.f32.mrf.mxu3  ;;  %1488 = vmatpush.msrb.mxu0 %v1454_v6  ;;  %v4325_v6 = vld [vmem:[%s4908_s2 + $0x80] sm:$0xff]  ;;  %1611 = vmatpush.msrb.mxu2 %v4319_v61 }
 0xe7c   :  { %v1447_v25 = vadd.f32 %v4189_v29, %v1446_v42  ;;  %1581 = vmatpush.msrb.mxu1 %v4226_v47 }
 0xe7d   :  { %1612 = vmatpush.msrb.mxu2 %v4325_v6 }
 0xe7e   :  { %v1452_v59 = vmax.f32 %v1447_v25, 0.0  ;;  %1582 = vmatpush.msrb.mxu1 %v4232_v48 }
 0xe80   :  { %3181 = vmatmul.msk.f32.vlgmr.msrb.gmra.mxu0 %vm1466_vm6, %v1452_v59  ;;  %v4335_v59 = vld [vmem:[%s4912_s6 + $0x4] ss:$0 sm:$0xff] }
 0xee9   :  { %v1195_v44 = vpop.f32.mrf.mxu0 }
 0xeea   :  { %v4198_v17 = vadd.f32 %v1195_v44, %v1052_v60 }
 0xef1   :  { %v1282_v18 = vpop.f32.mrf.mxu0 }
 0xef2   :  { %v1285_v32 = vmul.f32 0.35355338, %v1282_v18 }
 0xef4   :  { %v1286_v63 = vsel %vm147_vm1, %v1285_v32, -inf }
 0xef5   :  { %1287 = vmax.xlane.f32.xlu1 %v1286_v63 }
 0xefd   :  { %v1490_v33 = vpop.f32.mrf.mxu0 }
 0xefe   :  { %v1491_v36 = vadd.f32 %v4204_v9, %v1490_v33  ;;  %v4343_v33 = vld [vmem:[%s4911_s5 + $0x4] ss:$0 sm:$0xff] }
 0xf00   :  { %v1496_v37 = vadd.f32 %v1491_v36, %v1413_v22 }
 0xf02   :  { %v1500_v38 = vsel %vm67_vm0, %v1496_v37, 0.0 }
 0xf03   :  { %1501 = vadd.xlane.f32.xlu0 %v1500_v38  ;;  %v4350_v38 = vld [vmem:[%s4910_s4 + $0x4] ss:$0 sm:$0xff] }
 0xf68   :  { %v1288_v15 = vpop.xlane.xlu1 %1287 }
 0xf69   :  { %v1289_v39 = vsub.f32 %v1285_v32, %v1288_v15 }
 0xf6b   :  { %v1290_v10 = vmul.f32 1.442695, %v1289_v39  ;;  %v4364_v39 = vld [vmem:[%s4908_s2 + $0xb0] sm:$0xff] }
 0xf6d   :  { %3400 = vpow2.f32 %v1290_v10  ;;  %v4370_v10 = vld [vmem:[%s4908_s2 + $0xa8] sm:$0xff] }
 0xf73   :  { %v3401_v26 = vpop.eup %3400 }
 0xf74   :  { %v1292_v40 = vsel %vm147_vm1, %v3401_v26, 0.0 }
 0xf75   :  { %1293 = vadd.xlane.f32.xlu2 %v1292_v40 }
 0xf76   :  { %v1502_v41 = vpop.xlane.xlu0 %1501 }
 0xf77   :  { %v1506_v50 = vmul.f32 %v1502_v41, %v4117_v16 }
 0xf79   :  { %v1508_v45 = vsub.f32 %v1496_v37, %v1506_v50 }
 0xf7b   :  { %v1510_v56 = vmul.f32 %v1508_v45, %v1508_v45 }
 0xf7d   :  { %v1512_v57 = vsel %vm67_vm0, %v1510_v56, 0.0 }
 0xf7e   :  { %1513 = vadd.xlane.f32.xlu1 %v1512_v57 }
 0xfe8   :  { %v1294_v34 = vpop.xlane.xlu2 %1293 }
 0xfe9   :  { %3402 = vrcp.f32 %v1294_v34 }
 0xfef   :  { %v3403_v28 = vpop.eup %3402 }
 0xff0   :  { %v1296_v46 = vmul.f32 %v3403_v28, %v3401_v26  ;;  %v4376_v26 = vld [vmem:[%s4908_s2 + $0xa0] sm:$0xff] }
 0xff1   :  { %v1514_v11 = vpop.xlane.xlu1 %1513 }
 0xff2   :  { %v1518_v12 = vmul.f32 %v1514_v11, %v4117_v16  ;;  %3177 = vmatmul.msk.f32.vlgmr.msra.gmra.mxu1 %vm147_vm1, %v1296_v46  ;;  %v4388_v46 = vld [vmem:[%s4911_s5 + $0x5] ss:$0 sm:$0xff] }
 0xff3   :  { %1639 = vmatpush.msra.mxu1 %v4238_v53 }
 0xff4   :  { %v1520_v14 = vadd.f32 1e-05, %v1518_v12 }
 0xff5   :  { %1640 = vmatpush.msra.mxu1 %v4245_v0 }
 0xff6   :  { %3404 = vrsqrt.f32 %v1520_v14  ;;  %vm1528_vm8 = vweird.f32 %v1520_v14 }
 0xff7   :  { %1641 = vmatpush.msra.mxu1 %v4251_v1 }
 0xff9   :  { %1642 = vmatpush.msra.mxu1 %v4257_v2 }
 0xffc   :  { %v3405_v4 = vpop.eup %3404 }
 0xffd   :  { %v1523_v20 = vmul.f32 %v3405_v4, %v1520_v14  ;;  %vm1529_vm7 = vweird.f32 %v3405_v4 }
 0xffe   :  { %vm1530_vm9 = vmor %vm1528_vm8, %vm1529_vm7 }
 0xfff   :  { %v1524_v49 = vmul.f32 %v3405_v4, %v1523_v20 }
0x1001   :  { %v1525_v19 = vmul.f32 0.5, %v1524_v49 }
0x1003   :  { %v1526_v22 = vsub.f32 1.5, %v1525_v19 }
0x1005   :  { %v1527_v62 = vmul.f32 %v3405_v4, %v1526_v22 }
0x1007   :  { %v1531_v5 = vsel %vm1530_vm9, %v3405_v4, %v1527_v62 }
0x1008   :  { %v1542_v51 = vmul.f32 %v1531_v5, %v1508_v45 }
0x100a   :  { %v1547_v30 = vmul.f32 %v4264_v3, %v1542_v51 }
0x100c   :  { %v4273_v7 = vadd.f32 %v4269_v8, %v1547_v30 }
0x100e   :  { %3188 = vmatmul.msk.f32.vlgmr.msrb.gmra.mxu1 %vm67_vm0, %v4273_v7 }
0x100f   :  { %1732 = vmatpush.msrb.mxu1 %v4278_v43 }
0x1011   :  { %1733 = vmatpush.msrb.mxu1 %v4285_v31 }
0x1013   :  { %1734 = vmatpush.msrb.mxu1 %v4291_v35 }
0x1015   :  { %1735 = vmatpush.msrb.mxu1 %v4297_v55 }
0x1016   :  { %3200 = vmatmul.msk.f32.vlgmr.msra.gmra.mxu1 %vm67_vm0, %v4273_v7 }
0x101e   :  { %3210 = vmatmul.msk.f32.vlgmr.msrb.gmra.mxu1 %vm67_vm0, %v4273_v7 }
0x106f   :  { %v1317_v42 = vpop.f32.mrf.mxu1 }
0x1070   :  { %3178 = vmatmul.msk.f32.vlgmr.msra.gmra.mxu2 %vm147_vm1, %v1317_v42 }
0x1078   :  { %3194 = vmatmul.msk.f32.vlgmr.msrb.gmra.mxu2 %vm67_vm0, %v4273_v7 }
0x108b   :  { %v1584_v25 = vpop.f32.mrf.mxu1 }
0x1093   :  { %v1644_v60 = vpop.f32.mrf.mxu1 }
0x1094   :  { %v1645_v44 = vadd.f32 %v4335_v59, %v1644_v60 }
0x1096   :  { %1703 = vmatpush.msra.mxu3 %v1645_v44 }
0x10f3   :  { %v1340_v18 = vpop.f32.mrf.mxu2 }
0x10f4   :  { %v1343_v32 = vadd.f32 %v1340_v18, %v4198_v17 }
0x10f6   :  { %v1349_v63 = vadd.f32 %v4085_v13, %v1343_v32  ;;  %v4356_v13 = vld [vmem:[%s4908_s2 + $0xb8] sm:$0xff] }
0x10f8   :  { %v1351_v36 = vadd.f32 %v1349_v63, %v4017_v23  ;;  %v1585_v23 = vadd.f32 %v4350_v38, %v1584_v25 }
0x10fa   :  { %v1357_v37 = vsel %vm67_vm0, %v1351_v36, 0.0 }
0x10fb   :  { %v1614_v15 = vpop.f32.mrf.mxu2  ;;  %1358 = vadd.xlane.f32.xlu2 %v1357_v37  ;;  %v4400_v37 = vld [vmem:[%s4909_s3 + $0xb8] sm:$0xff] }
0x10fc   :  { %v1615_v17 = vadd.f32 %v4343_v33, %v1614_v15  ;;  %v4405_v15 = vld [vmem:[%s4909_s3 + $0xb0] sm:$0xff]  ;;  %1792 = vmatpush.msrb.mxu3 %v4400_v37 }
0x10fe   :  { %3201 = vmatpush.xpose.msk.msra.mxu2 %vm147_vm1, %v1615_v17  ;;  %1793 = vmatpush.msrb.mxu3 %v4405_v15  ;;  %v4424_v17 = vld [vmem:[%s4943_s18 + $0xd8] sm:$0xff] }
0x1101   :  { %3202 = vmatmul.msk.f32.vlgmr.msra.gmra.mxu2 %vm147_vm1, %v1585_v23  ;;  %v4429_v23 = vld [vmem:[%s4943_s18 + $0xd0] sm:$0xff] }
0x1102   :  { %1762 = vmatpush.msrb.mxu2 %v4356_v13 }
0x1104   :  { %1763 = vmatpush.msrb.mxu2 %v4364_v39 }
0x1106   :  { %1764 = vmatpush.msrb.mxu2 %v4370_v10 }
0x1108   :  { %1765 = vmatpush.msrb.mxu2 %v4376_v26 }
0x1109   :  { %3216 = vmatmul.msk.f32.vlgmr.msrb.gmra.mxu2 %vm67_vm0, %v4273_v7 }
0x116e   :  { %v1359_v40 = vpop.xlane.xlu2 %1358 }
0x116f   :  { %v1368_v41 = vmul.f32 %v4117_v16, %v1359_v40  ;;  %v4435_v40 = vld [vmem:[%s4943_s18 + $0xc8] sm:$0xff] }
0x1171   :  { %v1370_v50 = vsub.f32 %v1351_v36, %v1368_v41  ;;  %v4441_v41 = vld [vmem:[%s4943_s18 + $0xc0] sm:$0xff] }
0x1173   :  { %v1372_v45 = vmul.f32 %v1370_v50, %v1370_v50 }
0x1175   :  { %v1376_v56 = vsel %vm67_vm0, %v1372_v45, 0.0 }
0x1176   :  { %1377 = vadd.xlane.f32.xlu0 %v1376_v56 }
0x1184   :  { %v1670_v57 = vpop.f32.mrf.mxu2 }
0x1185   :  { %v1673_v34 = vmul.f32 0.35355338, %v1670_v57 }
0x1187   :  { %v1674_v28 = vsel %vm147_vm1, %v1673_v34, -inf }
0x1188   :  { %1675 = vmax.xlane.f32.xlu1 %v1674_v28 }
0x118c   :  { %v1767_v11 = vpop.f32.mrf.mxu2 }
0x118d   :  { %v1768_v12 = vadd.f32 %v4388_v46, %v1767_v11  ;;  %v4453_v11 = vld [vmem:[%s4910_s4 + $0x5] ss:$0 sm:$0xff] }
0x118f   :  { %3223 = vmatpush.xpose.msk.msra.mxu0 %vm147_vm1, %v1768_v12  ;;  %v1737_v12 = vpop.f32.mrf.mxu1 }
0x1193   :  { %1931 = vmatpush.msrb.mxu0 %v4424_v17 }
0x1195   :  { %1932 = vmatpush.msrb.mxu0 %v4429_v23 }
0x1197   :  { %1933 = vmatpush.msrb.mxu0 %v4435_v40 }
0x1199   :  { %1934 = vmatpush.msrb.mxu0 %v4441_v41 }
0x11e9   :  { %v1378_v14 = vpop.xlane.xlu0 %1377 }
0x11ea   :  { %v1380_v4 = vmul.f32 %v1378_v14, %v4117_v16  ;;  %v1738_v14 = vadd.f32 %v4453_v11, %v1737_v12  ;;  %v4515_v12 = vld [vmem:[%s4909_s3 + $0xd8] sm:$0xff] }
0x11ec   :  { %v1382_v20 = vadd.f32 1e-05, %v1380_v4 }
0x11ee   :  { %3406 = vrsqrt.f32 %v1382_v20  ;;  %vm1399_vm11 = vweird.f32 %v1382_v20 }
0x11f4   :  { %v3407_v49 = vpop.eup %3406 }
0x11f5   :  { %v1394_v19 = vmul.f32 %v3407_v49, %v1382_v20  ;;  %vm1400_vm10 = vweird.f32 %v3407_v49 }
0x11f6   :  { %vm1401_vm12 = vmor %vm1399_vm11, %vm1400_vm10 }
0x11f7   :  { %v1395_v22 = vmul.f32 %v3407_v49, %v1394_v19 }
0x11f9   :  { %v1396_v62 = vmul.f32 0.5, %v1395_v22 }
0x11fb   :  { %v1397_v5 = vsub.f32 1.5, %v1396_v62  ;;  %v1676_v51 = vpop.xlane.xlu1 %1675 }
0x11fc   :  { %v1677_v30 = vsub.f32 %v1673_v34, %v1676_v51 }
0x11fd   :  { %v1398_v42 = vmul.f32 %v3407_v49, %v1397_v5 }
0x11fe   :  { %v1678_v25 = vmul.f32 1.442695, %v1677_v30 }
0x11ff   :  { %v1402_v60 = vsel %vm1401_vm12, %v3407_v49, %v1398_v42  ;;  %v4469_v49 = vld [vmem:[%s4912_s6 + $0x5] ss:$0 sm:$0xff] }
0x1200   :  { %3408 = vpow2.f32 %v1678_v25  ;;  %v1404_v44 = vmul.f32 %v1402_v60, %v1370_v50 }
0x1202   :  { %v1409_v18 = vmul.f32 %v4147_v27, %v1404_v44  ;;  %v4412_v27 = vld [vmem:[%s4909_s3 + $0xa8] sm:$0xff] }
0x1203   :  { %1794 = vmatpush.msrb.mxu3 %v4412_v27 }
0x1204   :  { %v1414_v32 = vadd.f32 %v4155_v21, %v1409_v18  ;;  %v4418_v21 = vld [vmem:[%s4909_s3 + $0xa0] sm:$0xff] }
0x1205   :  { %1795 = vmatpush.msrb.mxu3 %v4418_v21 }
0x1206   :  { %v3409_v63 = vpop.eup %3408  ;;  %3180 = vmatmul.msk.f32.gmra.mxu3 %vm67_vm0, %v1414_v32 }
0x1207   :  { %v1680_v36 = vsel %vm147_vm1, %v3409_v63, 0.0 }
0x1208   :  { %1681 = vadd.xlane.f32.xlu2 %v1680_v36 }
0x127b   :  { %v1682_v50 = vpop.xlane.xlu2 %1681 }
0x127c   :  { %3410 = vrcp.f32 %v1682_v50  ;;  %v4482_v50 = vld [vmem:[%s4908_s2 + $0xd8] sm:$0xff] }
0x1282   :  { %v3411_v45 = vpop.eup %3410 }
0x1283   :  { %v1684_v56 = vmul.f32 %v3411_v45, %v3409_v63  ;;  %v4499_v45 = vld [vmem:[%s4908_s2 + $0xc0] sm:$0xff] }
0x1285   :  { %3203 = vmatmul.msk.f32.vlgmr.msra.gmra.mxu3 %vm147_vm1, %v1684_v56 }
0x1289   :  { %v1449_v57 = vpop.f32.mrf.mxu3 }
0x128a   :  { %v1450_v34 = vadd.f32 %v4189_v29, %v1449_v57  ;;  %v4462_v29 = vld [vmem:[%s4913_s7 + $0x20] sm:$0xff] }
0x128b   :  { %1904 = vmatpush.msra.mxu3 %v4462_v29 }
0x128c   :  { %v1453_v28 = vmax.f32 %v1450_v34, 0.0 }
0x128d   :  { %3222 = vmatmul.msk.f32.vlgmr.msrb.gmra.mxu3 %vm67_vm0, %v4273_v7 }
0x128e   :  { %3182 = vmatmul.msk.f32.gmra.mxu0 %vm1466_vm6, %v1453_v28  ;;  %v4509_v28 = vld [vmem:[%s4913_s7 + $0x28] sm:$0xff] }
0x128f   :  { %1881 = vmatpush.msra.mxu2 %v4509_v28 }
0x1291   :  { %1991 = vmatpush.msrb.mxu2 %v4515_v12 }
0x1296   :  { %3224 = vmatmul.msk.f32.vlgmr.msra.gmra.mxu0 %vm147_vm1, %v1738_v14  ;;  %v4520_v14 = vld [vmem:[%s4909_s3 + $0xd0] sm:$0xff] }
0x1297   :  { %1992 = vmatpush.msrb.mxu2 %v4520_v14 }
0x129e   :  { %3234 = vmatmul.msk.f32.vlgmr.msrb.gmra.mxu0 %vm67_vm0, %v4273_v7 }
0x1308   :  { %v1705_v4 = vpop.f32.mrf.mxu3 }
0x1309   :  { %3228 = vmatmul.msk.f32.vlgmr.msra.gmra.mxu3 %vm147_vm1, %v1705_v4  ;;  %v4526_v4 = vld [vmem:[%s4909_s3 + $0xc8] sm:$0xff] }
0x130a   :  { %1993 = vmatpush.msrb.mxu2 %v4526_v4 }
0x130b   :  { %v1493_v20 = vpop.f32.mrf.mxu0 }
0x130c   :  { %v1494_v44 = vadd.f32 %v4204_v9, %v1493_v20  ;;  %v4488_v9 = vld [vmem:[%s4908_s2 + $0xd0] sm:$0xff]  ;;  %v4533_v20 = vld [vmem:[%s4909_s3 + $0xc0] sm:$0xff] }
0x130d   :  { %1994 = vmatpush.msrb.mxu2 %v4533_v20 }
0x130e   :  { %v4475_v63 = vadd.f32 %v1494_v44, %v1414_v32  ;;  %v4493_v32 = vld [vmem:[%s4908_s2 + $0xc8] sm:$0xff] }
0x1310   :  { %v1797_v19 = vpop.f32.mrf.mxu3  ;;  %v1503_v36 = vsel %vm67_vm0, %v4475_v63, 0.0 }
0x1311   :  { %v1798_v22 = vadd.f32 %v4469_v49, %v1797_v19  ;;  %v4539_v19 = vld [vmem:[%s4943_s18 + $0xf8] sm:$0xff] }
0x1312   :  { %4951 = vst [vmem:[#allocation6_spill] sm:$0xff] %v4539_v19 }
0x1313   :  { %v1823_v62 = vpop.f32.mrf.mxu0  ;;  %1856 = vmatpush.msra.mxu1 %v1798_v22 }
0x1314   :  { %v1826_v5 = vmul.f32 0.35355338, %v1823_v62  ;;  %v4545_v62 = vld [vmem:[%s4943_s18 + $0xf0] sm:$0xff] }
0x1315   :  { %1961 = vmatpush.msrb.mxu1 %v4482_v50  ;;  %4952 = vst [vmem:[#allocation7_spill] sm:$0xff] %v4545_v62 }
0x1316   :  { %v1827_v51 = vsel %vm147_vm1, %v1826_v5, -inf }
0x1317   :  { %1828 = vmax.xlane.f32.xlu0 %v1827_v51  ;;  %1962 = vmatpush.msrb.mxu1 %v4488_v9  ;;  %v4557_v51 = vld [vmem:[%s4911_s5 + $0x6] ss:$0 sm:$0xff] }
0x1318   :  { %4954 = vst [vmem:[#allocation8_spill] sm:$0xff] %v4557_v51 }
0x1319   :  { %1963 = vmatpush.msrb.mxu1 %v4493_v32 }
0x131b   :  { %1964 = vmatpush.msrb.mxu1 %v4499_v45 }
0x138a   :  { %v1829_v30 = vpop.xlane.xlu0 %1828 }
0x138b   :  { %v1830_v42 = vsub.f32 %v1826_v5, %v1829_v30  ;;  %v4551_v5 = vld [vmem:[%s4943_s18 + $0xe8] sm:$0xff]  ;;  %v4562_v30 = vld [vmem:[%s4943_s18 + $0xe0] sm:$0xff]  ;;  %s3479_s18 = smov 8  }
0x138c   :  { %4953 = vst [vmem:[#allocation5_spill] sm:$0xff] %v4551_v5 }
0x138d   :  { %v1831_v25 = vmul.f32 1.442695, %v1830_v42  ;;  %4955 = vst [vmem:[#allocation9_spill] sm:$0xff] %v4562_v30  ;;  %v4568_v42 = vld [vmem:[%s4910_s4 + $0x6] ss:$0 sm:$0xff] }
0x138e   :  { %4956 = vst [vmem:[#allocation10_spill] sm:$0xff] %v4568_v42 }
0x138f   :  { %3412 = vpow2.f32 %v1831_v25 }
0x1395   :  { %v3413_v60 = vpop.eup %3412 }
0x1396   :  { %v1833_v18 = vsel %vm147_vm1, %v3413_v60, 0.0 }
0x1397   :  { %1834 = vadd.xlane.f32.xlu1 %v1833_v18  ;;  %v4577_v18 = vld [vmem:[%s4908_s2 + $0xf8] sm:$0xff] }
0x1398   :  { %4957 = vst [vmem:[#allocation11_spill] sm:$0xff] %v4577_v18 }
0x139f   :  { %1504 = vadd.xlane.f32.xlu1 %v1503_v36 }
0x140a   :  { %v1835_v56 = vpop.xlane.xlu1 %1834 }
0x140b   :  { %3414 = vrcp.f32 %v1835_v56  ;;  %v4585_v56 = vld [vmem:[%s4908_s2 + $0xf0] sm:$0xff] }
0x140c   :  { %4958 = vst [vmem:[#allocation12_spill] sm:$0xff] %v4585_v56 }
0x1411   :  { %v3415_v57 = vpop.eup %3414 }
0x1412   :  { %v1837_v34 = vmul.f32 %v3415_v57, %v3413_v60  ;;  %v1936_v60 = vpop.f32.mrf.mxu0  ;;  %v4591_v57 = vld [vmem:[%s4908_s2 + $0xe8] sm:$0xff] }
0x1413   :  { %v1937_v36 = vadd.f32 %v4568_v42, %v1936_v60  ;;  %4959 = vst [vmem:[#allocation13_spill] sm:$0xff] %v4591_v57 }
0x1414   :  { %3225 = vmatmul.msk.f32.vlgmr.msra.gmra.mxu1 %vm147_vm1, %v1837_v34  ;;  %v4597_v34 = vld [vmem:[%s4908_s2 + $0xe0] sm:$0xff] }
0x1415   :  { %4960 = vst [vmem:[#allocation14_spill] sm:$0xff] %v4597_v34 }
0x141c   :  { %3240 = vmatmul.msk.f32.vlgmr.msrb.gmra.mxu1 %vm67_vm0, %v4273_v7 }
0x1491   :  { %v1858_v22 = vpop.f32.mrf.mxu1 }
0x1492   :  { %3227 = vmatmul.msk.f32.vlgmr.msra.gmra.mxu2 %vm147_vm1, %v1858_v22  ;;  %v4608_v22 = vld [vmem:[%s4913_s7 + $0x30] sm:$0xff] }
0x1493   :  { %2108 = vmatpush.msra.mxu2 %v4539_v19  ;;  %4961 = vst [vmem:[#allocation15_spill] sm:$0xff] %v4608_v22  ;;  %2080 = vmatpush.msra.mxu1 %v4608_v22 }
0x1495   :  { %2109 = vmatpush.msra.mxu2 %v4545_v62 }
0x1497   :  { %2110 = vmatpush.msra.mxu2 %v4551_v5 }
0x1499   :  { %v1966_v25 = vpop.f32.mrf.mxu1  ;;  %2111 = vmatpush.msra.mxu2 %v4562_v30 }
0x149a   :  { %v1967_v44 = vadd.f32 %v4557_v51, %v1966_v25  ;;  %3246 = vmatmul.msk.f32.vlgmr.msrb.gmra.mxu2 %vm67_vm0, %v4273_v7  ;;  %v1906_v25 = vpop.f32.mrf.mxu3  ;;  %v4623_v51 = vld [vmem:[%s4911_s5 + $0x7] ss:$0 sm:$0xff] }
0x149c   :  { %3247 = vmatpush.xpose.msk.msrb.mxu3 %vm147_vm1, %v1967_v44 }
0x149f   :  { %3248 = vmatmul.msk.f32.vlgmr.msrb.gmra.mxu3 %vm147_vm1, %v1937_v36  ;;  %v4616_v36 = vld [vmem:[%s4912_s6 + $0x6] ss:$0 sm:$0xff] }
0x14a0   :  { %2138 = vmatpush.msra.mxu3 %v4577_v18  ;;  %4962 = vst [vmem:[#allocation16_spill] sm:$0xff] %v4616_v36 }
0x14a2   :  { %2139 = vmatpush.msra.mxu3 %v4585_v56  ;;  %3257 = vmatmul.msk.f32.vlgmr.msra.gmra.mxu2 %vm67_vm0, %v4273_v7 }
0x14a4   :  { %2140 = vmatpush.msra.mxu3 %v4591_v57 }
0x14a6   :  { %2141 = vmatpush.msra.mxu3 %v4597_v34 }
0x14a7   :  { %3263 = vmatmul.msk.f32.vlgmr.msra.gmra.mxu3 %vm67_vm0, %v4273_v7 }
0x1515   :  { %v1883_v60 = vpop.f32.mrf.mxu2 }
0x1516   :  { %v4611_v44 = vadd.f32 %v1906_v25, %v1883_v60 }
0x151d   :  { %v1996_v34 = vpop.f32.mrf.mxu2 }
0x151e   :  { %v1997_v57 = vadd.f32 %v4616_v36, %v1996_v34  ;;  %v1505_v34 = vpop.xlane.xlu1 %1504 }
0x1520   :  { %2055 = vmatpush.msra.mxu0 %v1997_v57 }
0x1522   :  { %v2022_v56 = vpop.f32.mrf.mxu3 }
0x1523   :  { %v2025_v18 = vmul.f32 0.35355338, %v2022_v56  ;;  %v1507_v56 = vmul.f32 %v1505_v34, %v4117_v16 }
0x1525   :  { %v2026_v42 = vsel %vm147_vm1, %v2025_v18, -inf }
0x1526   :  { %2027 = vmax.xlane.f32.xlu2 %v2026_v42  ;;  %v1509_v42 = vsub.f32 %v4475_v63, %v1507_v56  ;;  %v4646_v63 = vld [vmem:[%s4909_s3 + $0xe8] sm:$0xff] }
0x1528   :  { %v1511_v19 = vmul.f32 %v1509_v42, %v1509_v42 }
0x152a   :  { %v2143_v25 = vpop.f32.mrf.mxu3  ;;  %v1515_v22 = vsel %vm67_vm0, %v1511_v19, 0.0  ;;  %v4652_v19 = vld [vmem:[%s4909_s3 + $0xe0] sm:$0xff] }
0x152b   :  { %v2144_v60 = vadd.f32 %v4623_v51, %v2143_v25  ;;  %v4634_v25 = vld [vmem:[%s4909_s3 + $0xf8] sm:$0xff] }
0x152c   :  { %2168 = vmatpush.msrb.mxu0 %v4634_v25 }
0x152d   :  { %3270 = vmatpush.xpose.msk.msrb.mxu1 %vm147_vm1, %v2144_v60 }
0x1599   :  { %v2028_v30 = vpop.xlane.xlu2 %2027 }
0x159a   :  { %v2029_v5 = vsub.f32 %v2025_v18, %v2028_v30 }
0x159c   :  { %v2030_v62 = vmul.f32 1.442695, %v2029_v5 }
0x159e   :  { %3416 = vpow2.f32 %v2030_v62  ;;  %v4640_v62 = vld [vmem:[%s4909_s3 + $0xf0] sm:$0xff] }
0x159f   :  { %2169 = vmatpush.msrb.mxu0 %v4640_v62 }
0x15a1   :  { %2170 = vmatpush.msrb.mxu0 %v4646_v63 }
0x15a3   :  { %2171 = vmatpush.msrb.mxu0 %v4652_v19 }
0x15a4   :  { %v3417_v57 = vpop.eup %3416 }
0x15a5   :  { %v2032_v36 = vsel %vm147_vm1, %v3417_v57, 0.0 }
0x15a6   :  { %2033 = vadd.xlane.f32.xlu0 %v2032_v36 }
0x15ae   :  { %1516 = vadd.xlane.f32.xlu0 %v1515_v22 }
0x1619   :  { %v2034_v5 = vpop.xlane.xlu0 %2033 }
0x161a   :  { %3418 = vrcp.f32 %v2034_v5 }
0x1620   :  { %v3419_v30 = vpop.eup %3418 }
0x1621   :  { %v2036_v18 = vmul.f32 %v3419_v30, %v3417_v57  ;;  %v1517_v22 = vpop.xlane.xlu0 %1516 }
0x1622   :  { %v1519_v36 = vmul.f32 %v1517_v22, %v4117_v16 }
0x1623   :  { %3249 = vmatmul.msk.f32.vlgmr.msra.gmra.mxu0 %vm147_vm1, %v2036_v18 }
0x1624   :  { %v1521_v60 = vadd.f32 1e-05, %v1519_v36  ;;  %2278 = vmatpush.msra.mxu0 %v4214_v58  ;;  %v4674_v36 = vld [vmem:[%s4910_s4 + $0x7] ss:$0 sm:$0xff] }
0x1626   :  { %3420 = vrsqrt.f32 %v1521_v60  ;;  %2279 = vmatpush.msra.mxu0 %v4220_v24  ;;  %vm1538_vm14 = vweird.f32 %v1521_v60 }
0x1628   :  { %2280 = vmatpush.msra.mxu0 %v4226_v47 }
0x162a   :  { %2281 = vmatpush.msra.mxu0 %v4232_v48 }
0x162b   :  { %3269 = vmatmul.msk.f32.vlgmr.msrb.gmra.mxu0 %vm67_vm0, %v4273_v7 }
0x162c   :  { %v3421_v34 = vpop.eup %3420 }
0x162d   :  { %v1533_v56 = vmul.f32 %v3421_v34, %v1521_v60  ;;  %vm1539_vm13 = vweird.f32 %v3421_v34  ;;  %v2113_v60 = vpop.f32.mrf.mxu2 }
0x162e   :  { %vm1540_vm15 = vmor %vm1538_vm14, %vm1539_vm13 }
0x162f   :  { %v1534_v57 = vmul.f32 %v3421_v34, %v1533_v56 }
0x1631   :  { %v1535_v5 = vmul.f32 0.5, %v1534_v57 }
0x1633   :  { %v1536_v30 = vsub.f32 1.5, %v1535_v5 }
0x1635   :  { %v1537_v18 = vmul.f32 %v3421_v34, %v1536_v30 }
0x1637   :  { %v1541_v58 = vsel %vm1540_vm15, %v3421_v34, %v1537_v18 }
0x1638   :  { %v1543_v22 = vmul.f32 %v1541_v58, %v1509_v42 }
0x163a   :  { %v1548_v24 = vmul.f32 %v4264_v3, %v1543_v22  ;;  %v4680_v3 = vld [vmem:[%s4912_s6 + $0x7] ss:$0 sm:$0xff] }
0x163c   :  { %v4665_v47 = vadd.f32 %v4269_v8, %v1548_v24  ;;  %v2114_v8 = vadd.f32 %v4674_v36, %v2113_v60 }
0x163e   :  { %3275 = vmatmul.msk.f32.vlgmr.msra.gmra.mxu0 %vm67_vm0, %v4665_v47 }
0x16a0   :  { %v2057_v48 = vpop.f32.mrf.mxu0 }
0x16a1   :  { %3251 = vmatmul.msk.f32.vlgmr.msra.gmra.mxu1 %vm147_vm1, %v2057_v48 }
0x16a2   :  { %2298 = vmatpush.msra.mxu1 %v4308_v52 }
0x16a4   :  { %2299 = vmatpush.msra.mxu1 %v4313_v54 }
0x16a6   :  { %2300 = vmatpush.msra.mxu1 %v4319_v61 }
0x16a8   :  { %v2173_v42 = vpop.f32.mrf.mxu0  ;;  %2301 = vmatpush.msra.mxu1 %v4325_v6 }
0x16a9   :  { %v2174_v52 = vadd.f32 %v4680_v3, %v2173_v42  ;;  %3271 = vmatmul.msk.f32.vlgmr.msrb.gmra.mxu1 %vm147_vm1, %v2114_v8  ;;  %v4963_v42 = vld [vmem:[#allocation15_spill] sm:$0xff] }
0x16aa   :  { %2399 = vmatpush.msrb.mxu1 %v4278_v43 }
0x16ab   :  { %2232 = vmatpush.msrb.mxu2 %v2174_v52 }
0x16ac   :  { %2400 = vmatpush.msrb.mxu1 %v4285_v31 }
0x16ad   :  { %2318 = vmatpush.msra.mxu2 %v4238_v53  ;;  %v4702_v53 = vld [vmem:[%s4913_s7 + $0x38] sm:$0xff] }
0x16ae   :  { %2401 = vmatpush.msrb.mxu1 %v4291_v35  ;;  %2257 = vmatpush.msrb.mxu3 %v4702_v53 }
0x16af   :  { %2319 = vmatpush.msra.mxu2 %v4245_v0 }
0x16b0   :  { %2402 = vmatpush.msrb.mxu1 %v4297_v55 }
0x16b1   :  { %2320 = vmatpush.msra.mxu2 %v4251_v1  ;;  %3276 = vmatmul.msk.f32.vlgmr.msra.gmra.mxu1 %vm67_vm0, %v4665_v47 }
0x16b3   :  { %2321 = vmatpush.msra.mxu2 %v4257_v2 }
0x16b9   :  { %3281 = vmatmul.msk.f32.vlgmr.msrb.gmra.mxu1 %vm67_vm0, %v4665_v47 }
0x171e   :  { %v2082_v0 = vpop.f32.mrf.mxu1 }
0x171f   :  { %v2085_v43 = vadd.f32 %v2082_v0, %v4611_v44  ;;  %v4964_v0 = vld [vmem:[#allocation6_spill] sm:$0xff] }
0x1726   :  { %v2199_v31 = vpop.f32.mrf.mxu1 }
0x1727   :  { %v2202_v1 = vmul.f32 0.35355338, %v2199_v31  ;;  %v4966_v31 = vld [vmem:[#allocation5_spill] sm:$0xff] }
0x1729   :  { %v2203_v35 = vsel %vm147_vm1, %v2202_v1, -inf }
0x172a   :  { %2204 = vmax.xlane.f32.xlu2 %v2203_v35  ;;  %v4967_v35 = vld [vmem:[#allocation9_spill] sm:$0xff] }
0x172e   :  { %v2303_v55 = vpop.f32.mrf.mxu1 }
0x172f   :  { %v2304_v2 = vadd.f32 %v4343_v33, %v2303_v55 }
0x1731   :  { %3278 = vmatpush.xpose.msk.msra.mxu3 %vm147_vm1, %v2304_v2  ;;  %v4968_v2 = vld [vmem:[#allocation8_spill] sm:$0xff] }
0x179d   :  { %v2205_v54 = vpop.xlane.xlu2 %2204 }
0x179e   :  { %v2206_v61 = vsub.f32 %v2202_v1, %v2205_v54 }
0x17a0   :  { %v2207_v6 = vmul.f32 1.442695, %v2206_v61  ;;  %v4969_v61 = vld [vmem:[#allocation10_spill] sm:$0xff] }
0x17a2   :  { %3422 = vpow2.f32 %v2207_v6 }
0x17a8   :  { %v3423_v34 = vpop.eup %3422 }
0x17a9   :  { %v2209_v56 = vsel %vm147_vm1, %v3423_v34, 0.0 }
0x17aa   :  { %2210 = vadd.xlane.f32.xlu1 %v2209_v56  ;;  %v4971_v56 = vld [vmem:[#allocation12_spill] sm:$0xff] }
0x181d   :  { %v2211_v57 = vpop.xlane.xlu1 %2210 }
0x181e   :  { %3424 = vrcp.f32 %v2211_v57  ;;  %v4972_v57 = vld [vmem:[#allocation13_spill] sm:$0xff] }
0x1824   :  { %v3425_v44 = vpop.eup %3424 }
0x1825   :  { %v2213_v5 = vmul.f32 %v3425_v44, %v3423_v34  ;;  %v4970_v34 = vld [vmem:[#allocation11_spill] sm:$0xff]  ;;  %v4973_v44 = vld [vmem:[#allocation14_spill] sm:$0xff] }
0x1827   :  { %3272 = vmatmul.msk.f32.vlgmr.msrb.gmra.mxu2 %vm147_vm1, %v2213_v5 }
0x1828   :  { %2419 = vmatpush.msrb.mxu2 %v4356_v13  ;;  %v2283_v13 = vpop.f32.mrf.mxu0 }
0x182a   :  { %2420 = vmatpush.msrb.mxu2 %v4364_v39  ;;  %v2284_v39 = vadd.f32 %v4350_v38, %v2283_v13 }
0x182c   :  { %2421 = vmatpush.msrb.mxu2 %v4370_v10 }
0x182e   :  { %2422 = vmatpush.msrb.mxu2 %v4376_v26 }
0x182f   :  { %3277 = vmatmul.msk.f32.vlgmr.msra.gmra.mxu2 %vm67_vm0, %v4665_v47 }
0x1830   :  { %2526 = vmatpush.msra.mxu2 %v4509_v28 }
0x1837   :  { %3282 = vmatmul.msk.f32.vlgmr.msrb.gmra.mxu2 %vm67_vm0, %v4665_v47 }
0x1838   :  { %2606 = vmatpush.msrb.mxu2 %v4515_v12 }
0x183a   :  { %2607 = vmatpush.msrb.mxu2 %v4520_v14 }
0x183c   :  { %2608 = vmatpush.msrb.mxu2 %v4526_v4 }
0x183e   :  { %2609 = vmatpush.msrb.mxu2 %v4533_v20 }
0x18aa   :  { %v2234_v33 = vpop.f32.mrf.mxu2 }
0x18ab   :  { %3274 = vmatmul.msk.f32.vlgmr.msrb.gmra.mxu3 %vm147_vm1, %v2234_v33 }
0x18ac   :  { %2439 = vmatpush.msrb.mxu3 %v4400_v37 }
0x18ae   :  { %2440 = vmatpush.msrb.mxu3 %v4405_v15 }
0x18b0   :  { %2441 = vmatpush.msrb.mxu3 %v4412_v27 }
0x18b2   :  { %v2323_v10 = vpop.f32.mrf.mxu2  ;;  %2442 = vmatpush.msrb.mxu3 %v4418_v21 }
0x18b3   :  { %v2324_v26 = vadd.f32 %v4335_v59, %v2323_v10  ;;  %3279 = vmatmul.msk.f32.vlgmr.msra.gmra.mxu3 %vm147_vm1, %v2284_v39  ;;  %v4974_v10 = vld [vmem:[#allocation16_spill] sm:$0xff] }
0x18b4   :  { %2549 = vmatpush.msra.mxu3 %v4462_v29 }
0x18b5   :  { %2382 = vmatpush.msrb.mxu0 %v2324_v26 }
0x18ba   :  { %v2424_v28 = vpop.f32.mrf.mxu2 }
0x18bb   :  { %v2425_v37 = vadd.f32 %v4388_v46, %v2424_v28  ;;  %3283 = vmatmul.msk.f32.vlgmr.msrb.gmra.mxu3 %vm67_vm0, %v4665_v47 }
0x18bd   :  { %3284 = vmatpush.xpose.msk.msra.mxu0 %vm147_vm1, %v2425_v37 }
0x192e   :  { %v2259_v15 = vpop.f32.mrf.mxu3 }
0x192f   :  { %v4737_v38 = vadd.f32 %v2259_v15, %v2085_v43  ;;  %v4965_v43 = vld [vmem:[#allocation7_spill] sm:$0xff] }
0x1936   :  { %v2349_v27 = vpop.f32.mrf.mxu3 }
0x1937   :  { %v2352_v21 = vmul.f32 0.35355338, %v2349_v27 }
0x1939   :  { %v2353_v59 = vsel %vm147_vm1, %v2352_v21, -inf }
0x193a   :  { %2354 = vmax.xlane.f32.xlu2 %v2353_v59 }
0x193e   :  { %v2444_v12 = vpop.f32.mrf.mxu3 }
0x193f   :  { %v2445_v29 = vadd.f32 %v4469_v49, %v2444_v12 }
0x1941   :  { %2503 = vmatpush.msra.mxu1 %v2445_v29 }
0x1943   :  { %2586 = vmatpush.msrb.mxu1 %v4482_v50  ;;  %v2404_v50 = vpop.f32.mrf.mxu1 }
0x1945   :  { %2587 = vmatpush.msrb.mxu1 %v4488_v9  ;;  %v2405_v9 = vadd.f32 %v4453_v11, %v2404_v50 }
0x1947   :  { %2588 = vmatpush.msrb.mxu1 %v4493_v32 }
0x1949   :  { %2589 = vmatpush.msrb.mxu1 %v4499_v45 }
0x19ad   :  { %v2355_v46 = vpop.xlane.xlu2 %2354 }
0x19ae   :  { %v2356_v14 = vsub.f32 %v2352_v21, %v2355_v46 }
0x19b0   :  { %v2357_v4 = vmul.f32 1.442695, %v2356_v14 }
0x19b2   :  { %3426 = vpow2.f32 %v2357_v4 }
0x19b8   :  { %v3427_v20 = vpop.eup %3426 }
0x19b9   :  { %v2359_v30 = vsel %vm147_vm1, %v3427_v20, 0.0 }
0x19ba   :  { %2360 = vadd.xlane.f32.xlu0 %v2359_v30 }
0x1a2d   :  { %v2361_v18 = vpop.xlane.xlu0 %2360 }
0x1a2e   :  { %3428 = vrcp.f32 %v2361_v18 }
0x1a34   :  { %v3429_v49 = vpop.eup %3428 }
0x1a35   :  { %v2363_v58 = vmul.f32 %v3429_v49, %v3427_v20 }
0x1a37   :  { %3280 = vmatmul.msk.f32.vlgmr.msrb.gmra.mxu0 %vm147_vm1, %v2363_v58 }
0x1a38   :  { %2566 = vmatpush.msrb.mxu0 %v4424_v17 }
0x1a3a   :  { %2567 = vmatpush.msrb.mxu0 %v4429_v23 }
0x1a3c   :  { %2568 = vmatpush.msrb.mxu0 %v4435_v40 }
0x1a3e   :  { %2569 = vmatpush.msrb.mxu0 %v4441_v41 }
0x1a3f   :  { %3285 = vmatmul.msk.f32.vlgmr.msra.gmra.mxu0 %vm147_vm1, %v2405_v9 }
0x1a47   :  { %3289 = vmatmul.msk.f32.vlgmr.msrb.gmra.mxu0 %vm67_vm0, %v4665_v47 }
0x1ab4   :  { %v2384_v32 = vpop.f32.mrf.mxu0 }
0x1ab5   :  { %3288 = vmatmul.msk.f32.vlgmr.msra.gmra.mxu3 %vm147_vm1, %v2384_v32 }
0x1abc   :  { %v2470_v45 = vpop.f32.mrf.mxu0 }
0x1abd   :  { %v2473_v22 = vmul.f32 0.35355338, %v2470_v45 }
0x1abf   :  { %v2474_v17 = vsel %vm147_vm1, %v2473_v22, -inf }
0x1ac0   :  { %2475 = vmax.xlane.f32.xlu1 %v2474_v17 }
0x1ac4   :  { %v2571_v55 = vpop.f32.mrf.mxu0 }
0x1ac5   :  { %v2572_v6 = vadd.f32 %v4969_v61, %v2571_v55 }
0x1b33   :  { %v2476_v23 = vpop.xlane.xlu1 %2475 }
0x1b34   :  { %v2477_v24 = vsub.f32 %v2473_v22, %v2476_v23 }
0x1b36   :  { %v2478_v40 = vmul.f32 1.442695, %v2477_v24 }
0x1b38   :  { %3430 = vpow2.f32 %v2478_v40  ;;  %v2551_v5 = vpop.f32.mrf.mxu3 }
0x1b3e   :  { %v3431_v11 = vpop.eup %3430 }
0x1b3f   :  { %v2480_v41 = vsel %vm147_vm1, %v3431_v11, 0.0 }
0x1b40   :  { %2481 = vadd.xlane.f32.xlu2 %v2480_v41 }
0x1bb3   :  { %v2482_v48 = vpop.xlane.xlu2 %2481 }
0x1bb4   :  { %3432 = vrcp.f32 %v2482_v48  ;;  %v3309_v48 = vld [vmem:[%s4917_s11 + $0x38] sm:$0xff] }
0x1bba   :  { %v3433_v60 = vpop.eup %3432 }
0x1bbb   :  { %v2484_v8 = vmul.f32 %v3433_v60, %v3431_v11  ;;  %v3308_v60 = vld [vmem:[%s4917_s11 + $0x30] sm:$0xff] }
0x1bbd   :  { %3286 = vmatmul.msk.f32.vlgmr.msra.gmra.mxu1 %vm147_vm1, %v2484_v8 }
0x1bbe   :  { %2693 = vmatpush.msra.mxu1 %v4963_v42  ;;  %v3307_v42 = vld [vmem:[%s4917_s11 + $0x28] sm:$0xff] }
0x1bc5   :  { %3290 = vmatmul.msk.f32.vlgmr.msrb.gmra.mxu1 %vm67_vm0, %v4665_v47 }
0x1c3a   :  { %v2505_v52 = vpop.f32.mrf.mxu1 }
0x1c3b   :  { %3287 = vmatmul.msk.f32.vlgmr.msra.gmra.mxu2 %vm147_vm1, %v2505_v52  ;;  %v3306_v52 = vld [vmem:[%s4917_s11 + $0x20] sm:$0xff] }
0x1c3c   :  { %2711 = vmatpush.msra.mxu2 %v4964_v0 }
0x1c3e   :  { %2712 = vmatpush.msra.mxu2 %v4965_v43 }
0x1c40   :  { %2713 = vmatpush.msra.mxu2 %v4966_v31 }
0x1c42   :  { %v2591_v1 = vpop.f32.mrf.mxu1  ;;  %2714 = vmatpush.msra.mxu2 %v4967_v35 }
0x1c43   :  { %v2592_v54 = vadd.f32 %v4968_v2, %v2591_v1  ;;  %3291 = vmatmul.msk.f32.vlgmr.msrb.gmra.mxu2 %vm67_vm0, %v4665_v47 }
0x1c45   :  { %3292 = vmatpush.xpose.msk.msrb.mxu3 %vm147_vm1, %v2592_v54 }
0x1c48   :  { %3293 = vmatmul.msk.f32.vlgmr.msrb.gmra.mxu3 %vm147_vm1, %v2572_v6 }
0x1c49   :  { %2731 = vmatpush.msra.mxu3 %v4970_v34 }
0x1c4b   :  { %2732 = vmatpush.msra.mxu3 %v4971_v56  ;;  %3296 = vmatmul.msk.f32.vlgmr.msra.gmra.mxu2 %vm67_vm0, %v4665_v47  ;;  %v4830_v56 = vld [vmem:[%s4915_s9 + $0x1] ss:$0 sm:$0xff] }
0x1c4d   :  { %2733 = vmatpush.msra.mxu3 %v4972_v57 }
0x1c4f   :  { %2734 = vmatpush.msra.mxu3 %v4973_v44 }
0x1c50   :  { %3297 = vmatmul.msk.f32.vlgmr.msra.gmra.mxu3 %vm67_vm0, %v4665_v47 }
0x1c51   :  { %2838 = vmatpush.msrb.mxu3 %v4702_v53 }
0x1cbe   :  { %v2528_v33 = vpop.f32.mrf.mxu2 }
0x1cbf   :  { %v2552_v13 = vadd.f32 %v2551_v5, %v2528_v33  ;;  %v4835_v5 = vld [vmem:[%s4916_s10 + $0x1] ss:$0 sm:$0xff] }
0x1cc6   :  { %v2611_v39 = vpop.f32.mrf.mxu2 }
0x1cc7   :  { %v2612_v26 = vadd.f32 %v4974_v10, %v2611_v39  ;;  %v3320_v39 = vld [vmem:[%s4919_s13 + $0x78] sm:$0xff]  ;;  %v3319_v10 = vld [vmem:[%s4919_s13 + $0x70] sm:$0xff] }
0x1cc9   :  { %2670 = vmatpush.msra.mxu0 %v2612_v26  ;;  %v3318_v26 = vld [vmem:[%s4919_s13 + $0x68] sm:$0xff] }
0x1ccb   :  { %2751 = vmatpush.msrb.mxu0 %v4634_v25  ;;  %v2637_v28 = vpop.f32.mrf.mxu3  ;;  %v4793_v25 = vld [vmem:[%s4914_s8 + $0x1] ss:$0 sm:$0xff] }
0x1ccc   :  { %v2640_v37 = vmul.f32 0.35355338, %v2637_v28  ;;  %v3317_v28 = vld [vmem:[%s4919_s13 + $0x60] sm:$0xff] }
0x1ccd   :  { %2752 = vmatpush.msrb.mxu0 %v4640_v62 }
0x1cce   :  { %v2641_v15 = vsel %vm147_vm1, %v2640_v37, -inf }
0x1ccf   :  { %2753 = vmatpush.msrb.mxu0 %v4646_v63  ;;  %2642 = vmax.xlane.f32.xlu0 %v2641_v15  ;;  %v2849_v63 = vadd.f32 %v4793_v25, %v4737_v38  ;;  %v2716_v38 = vpop.f32.mrf.mxu2  ;;  %v3315_v15 = vld [vmem:[%s4919_s13 + $0x50] sm:$0xff] }
0x1cd0   :  { %v2717_v30 = vadd.f32 %v4674_v36, %v2716_v38 }
0x1cd1   :  { %2754 = vmatpush.msrb.mxu0 %v4652_v19 }
0x1cd3   :  { %v2736_v53 = vpop.f32.mrf.mxu3 }
0x1cd4   :  { %v2737_v27 = vadd.f32 %v4623_v51, %v2736_v53  ;;  %v2851_v51 = vadd.f32 %v2849_v63, %v4273_v7  ;;  %v3314_v53 = vld [vmem:[%s4919_s13 + $0x48] sm:$0xff] }
0x1cd6   :  { %3299 = vmatpush.xpose.msk.msrb.mxu1 %vm147_vm1, %v2737_v27  ;;  %v2857_v29 = vsel %vm67_vm0, %v2851_v51, 0.0  ;;  %v3313_v27 = vld [vmem:[%s4919_s13 + $0x40] sm:$0xff] }
0x1d42   :  { %v2643_v21 = vpop.xlane.xlu0 %2642 }
0x1d43   :  { %v2644_v59 = vsub.f32 %v2640_v37, %v2643_v21  ;;  %v3316_v37 = vld [vmem:[%s4919_s13 + $0x58] sm:$0xff] }
0x1d45   :  { %v2645_v12 = vmul.f32 1.442695, %v2644_v59  ;;  %v4868_v59 = vld [vmem:[%s4918_s12 + $0x1] ss:$0 sm:$0xff] }
0x1d47   :  { %3434 = vpow2.f32 %v2645_v12 }
0x1d4d   :  { %v3435_v62 = vpop.eup %3434 }
0x1d4e   :  { %v2647_v19 = vsel %vm147_vm1, %v3435_v62, 0.0 }
0x1d4f   :  { %2648 = vadd.xlane.f32.xlu1 %v2647_v19 }
0x1d57   :  { %2858 = vadd.xlane.f32.xlu1 %v2857_v29 }
0x1dc2   :  { %v2649_v46 = vpop.xlane.xlu1 %2648 }
0x1dc3   :  { %3436 = vrcp.f32 %v2649_v46 }
0x1dc9   :  { %v3437_v14 = vpop.eup %3436 }
0x1dca   :  { %v2651_v4 = vmul.f32 %v3437_v14, %v3435_v62  ;;  %v2859_v23 = vpop.xlane.xlu1 %2858 }
0x1dcb   :  { %v2863_v36 = vmul.f32 %v2859_v23, %v4117_v16 }
0x1dcc   :  { %3294 = vmatmul.msk.f32.vlgmr.msra.gmra.mxu0 %vm147_vm1, %v2651_v4  ;;  %v3365_v4 = vld [vmem:[%s4920_s14 + $0x1] ss:$0 sm:$0xff] }
0x1dcd   :  { %2939 = vmatpush.msra.mxu0 %v3309_v48 }
0x1dcf   :  { %2940 = vmatpush.msra.mxu0 %v3308_v60 }
0x1dd1   :  { %2941 = vmatpush.msra.mxu0 %v3307_v42 }
0x1dd3   :  { %2942 = vmatpush.msra.mxu0 %v3306_v52 }
0x1dd4   :  { %3298 = vmatmul.msk.f32.vlgmr.msrb.gmra.mxu0 %vm67_vm0, %v4665_v47 }
0x1e49   :  { %v2672_v20 = vpop.f32.mrf.mxu0 }
0x1e4a   :  { %3295 = vmatmul.msk.f32.vlgmr.msra.gmra.mxu1 %vm147_vm1, %v2672_v20 }
0x1e4b   :  { %2980 = vmatpush.msra.mxu1 %v3320_v39 }
0x1e4d   :  { %2981 = vmatpush.msra.mxu1 %v3319_v10 }
0x1e4f   :  { %2982 = vmatpush.msra.mxu1 %v3318_v26 }
0x1e51   :  { %v2756_v18 = vpop.f32.mrf.mxu0  ;;  %2983 = vmatpush.msra.mxu1 %v3317_v28 }
0x1e52   :  { %v2757_v7 = vadd.f32 %v4680_v3, %v2756_v18  ;;  %3300 = vmatmul.msk.f32.vlgmr.msrb.gmra.mxu1 %vm147_vm1, %v2717_v30  ;;  %v2865_v3 = vsub.f32 %v2851_v51, %v2863_v36 }
0x1e53   :  { %2984 = vmatpush.msra.mxu1 %v3316_v37 }
0x1e54   :  { %2815 = vmatpush.msrb.mxu2 %v2757_v7  ;;  %v2867_v11 = vmul.f32 %v2865_v3, %v2865_v3 }
0x1e55   :  { %2985 = vmatpush.msra.mxu1 %v3315_v15 }
0x1e56   :  { %v2869_v41 = vsel %vm67_vm0, %v2867_v11, 0.0 }
0x1e57   :  { %2986 = vmatpush.msra.mxu1 %v3314_v53 }
0x1e59   :  { %2987 = vmatpush.msra.mxu1 %v3313_v27 }
0x1ec7   :  { %v2695_v49 = vpop.f32.mrf.mxu1 }
0x1ec8   :  { %v4807_v58 = vadd.f32 %v2695_v49, %v2552_v13 }
0x1ecf   :  { %v2782_v50 = vpop.f32.mrf.mxu1 }
0x1ed0   :  { %v2785_v9 = vmul.f32 0.35355338, %v2782_v50 }
0x1ed2   :  { %v2786_v32 = vsel %vm147_vm1, %v2785_v9, -inf }
0x1ed3   :  { %2787 = vmax.xlane.f32.xlu2 %v2786_v32 }
0x1f46   :  { %v2788_v45 = vpop.xlane.xlu2 %2787 }
0x1f47   :  { %v2789_v22 = vsub.f32 %v2785_v9, %v2788_v45 }
0x1f49   :  { %v2790_v17 = vmul.f32 1.442695, %v2789_v22 }
0x1f4b   :  { %3438 = vpow2.f32 %v2790_v17 }
0x1f51   :  { %v3439_v24 = vpop.eup %3438 }
0x1f52   :  { %v2792_v40 = vsel %vm147_vm1, %v3439_v24, 0.0 }
0x1f53   :  { %2793 = vadd.xlane.f32.xlu0 %v2792_v40 }
0x1f5b   :  { %2870 = vadd.xlane.f32.xlu0 %v2869_v41 }
0x1fc6   :  { %v2794_v8 = vpop.xlane.xlu0 %2793 }
0x1fc7   :  { %3440 = vrcp.f32 %v2794_v8 }
0x1fcd   :  { %v3441_v0 = vpop.eup %3440 }
0x1fce   :  { %v2796_v43 = vmul.f32 %v3441_v0, %v3439_v24  ;;  %v2871_v31 = vpop.xlane.xlu0 %2870 }
0x1fcf   :  { %v2875_v1 = vmul.f32 %v2871_v31, %v4117_v16 }
0x1fd0   :  { %3301 = vmatmul.msk.f32.vlgmr.msrb.gmra.mxu2 %vm147_vm1, %v2796_v43 }
0x1fd1   :  { %v2877_v35 = vadd.f32 1e-05, %v2875_v1 }
0x1fd3   :  { %3442 = vrsqrt.f32 %v2877_v35  ;;  %vm2885_vm3 = vweird.f32 %v2877_v35 }
0x1fd9   :  { %v3443_v55 = vpop.eup %3442 }
0x1fda   :  { %v2880_v2 = vmul.f32 %v3443_v55, %v2877_v35  ;;  %vm2886_vm2 = vweird.f32 %v3443_v55 }
0x1fdb   :  { %vm2887_vm4 = vmor %vm2885_vm3, %vm2886_vm2 }
0x1fdc   :  { %v2881_v54 = vmul.f32 %v3443_v55, %v2880_v2 }
0x1fde   :  { %v2882_v61 = vmul.f32 0.5, %v2881_v54 }
0x1fe0   :  { %v2883_v6 = vsub.f32 1.5, %v2882_v61 }
0x1fe2   :  { %v2884_v34 = vmul.f32 %v3443_v55, %v2883_v6  ;;  %v3366_v6 = vld [vmem:[%s4921_s15 + $0x1] ss:$0 sm:$0xff]  ;;  %s3477_s15 = smov [#allocation2]  }
0x1fe4   :  { %v2888_v57 = vsel %vm2887_vm4, %v3443_v55, %v2884_v34 }
0x1fe5   :  { %v2899_v44 = vmul.f32 %v2888_v57, %v2865_v3 }
0x1fe7   :  { %v2904_v33 = vmul.f32 %v4830_v56, %v2899_v44 }
0x1fe9   :  { %v2909_v13 = vadd.f32 %v4835_v5, %v2904_v33 }
0x1feb   :  { %3311 = vmatmul.msk.f32.vlgmr.msra.gmra.mxu0 %vm67_vm0, %v2909_v13 }
0x2053   :  { %v2817_v21 = vpop.f32.mrf.mxu2 }
0x2054   :  { %3302 = vmatmul.msk.f32.vlgmr.msrb.gmra.mxu3 %vm147_vm1, %v2817_v21 }
0x2068   :  { %v2944_v12 = vpop.f32.mrf.mxu0 }
0x2069   :  { %v2945_v62 = vadd.f32 %v4868_v59, %v2944_v12 }
0x206b   :  { %v2950_v63 = vmax.f32 %v2945_v62, 0.0 }
0x206d   :  { %3322 = vmatmul.msk.f32.vlgmr.msra.gmra.mxu1 %vm1466_vm6, %v2950_v63 }
0x20d7   :  { %v2840_v19 = vpop.f32.mrf.mxu3 }
0x20d8   :  { %v2843_v51 = vadd.f32 %v2840_v19, %v4807_v58 }
0x20da   :  { %v2850_v29 = vadd.f32 %v4793_v25, %v2843_v51 }
0x20dc   :  { %v2852_v46 = vadd.f32 %v2850_v29, %v4665_v47 }
0x20de   :  { %v2860_v14 = vsel %vm67_vm0, %v2852_v46, 0.0 }
0x20df   :  { %2861 = vadd.xlane.f32.xlu2 %v2860_v14 }
0x20ea   :  { %v2989_v20 = vpop.f32.mrf.mxu1 }
0x20eb   :  { %v2990_v38 = vadd.f32 %v3365_v4, %v2989_v20 }
0x20ed   :  { %v2995_v30 = vadd.f32 %v2990_v38, %v2909_v13 }
0x20ef   :  { %v3001_v18 = vsel %vm67_vm0, %v2995_v30, 0.0 }
0x20f0   :  { %3002 = vadd.xlane.f32.xlu2 %v3001_v18 }
0x2152   :  { %v2862_v7 = vpop.xlane.xlu2 %2861 }
0x2153   :  { %v2864_v49 = vmul.f32 %v2862_v7, %v4117_v16 }
0x2155   :  { %v2866_v58 = vsub.f32 %v2852_v46, %v2864_v49 }
0x2157   :  { %v2868_v25 = vmul.f32 %v2866_v58, %v2866_v58 }
0x2159   :  { %v2872_v47 = vsel %vm67_vm0, %v2868_v25, 0.0 }
0x215a   :  { %2873 = vadd.xlane.f32.xlu1 %v2872_v47 }
0x2163   :  { %v3003_v50 = vpop.xlane.xlu2 %3002 }
0x2164   :  { %v3007_v9 = vmul.f32 %v3003_v50, %v4117_v16 }
0x2166   :  { %v3009_v32 = vsub.f32 %v2995_v30, %v3007_v9 }
0x2168   :  { %v3011_v45 = vmul.f32 %v3009_v32, %v3009_v32 }
0x216a   :  { %v3013_v22 = vsel %vm67_vm0, %v3011_v45, 0.0 }
0x216b   :  { %3014 = vadd.xlane.f32.xlu1 %v3013_v22 }
0x21cd   :  { %v2874_v17 = vpop.xlane.xlu1 %2873 }
0x21ce   :  { %v2876_v23 = vmul.f32 %v2874_v17, %v4117_v16 }
0x21d0   :  { %v2878_v36 = vadd.f32 1e-05, %v2876_v23 }
0x21d2   :  { %3444 = vrsqrt.f32 %v2878_v36  ;;  %vm2895_vm5 = vweird.f32 %v2878_v36 }
0x21d8   :  { %v3445_v24 = vpop.eup %3444 }
0x21d9   :  { %v2890_v3 = vmul.f32 %v3445_v24, %v2878_v36  ;;  %vm2896_vm1 = vweird.f32 %v3445_v24 }
0x21da   :  { %vm2897_vm7 = vmor %vm2895_vm5, %vm2896_vm1 }
0x21db   :  { %v2891_v40 = vmul.f32 %v3445_v24, %v2890_v3 }
0x21dd   :  { %v2892_v11 = vmul.f32 0.5, %v2891_v40 }
0x21de   :  { %v3015_v41 = vpop.xlane.xlu1 %3014 }
0x21df   :  { %v2893_v48 = vsub.f32 1.5, %v2892_v11  ;;  %v3019_v60 = vmul.f32 %v3015_v41, %v4117_v16 }
0x21e1   :  { %v2894_v8 = vmul.f32 %v3445_v24, %v2893_v48  ;;  %v3021_v42 = vadd.f32 1e-05, %v3019_v60 }
0x21e3   :  { %v2898_v52 = vsel %vm2897_vm7, %v3445_v24, %v2894_v8  ;;  %3446 = vrsqrt.f32 %v3021_v42  ;;  %vm3029_vm9 = vweird.f32 %v3021_v42 }
0x21e4   :  { %v2900_v0 = vmul.f32 %v2898_v52, %v2866_v58 }
0x21e6   :  { %v2905_v43 = vmul.f32 %v4830_v56, %v2900_v0  ;;  %v3367_v56 = vld [vmem:[%s4922_s16 + $0x1] ss:$0 sm:$0xff]  ;;  %s3061_s16 = sshll.u32 %s3477_s15, 4  ;;  %s3062_s16 = int_to_ptr.vmem [resolvable:$true] %s3061_s16 }
0x21e8   :  { %v2910_v31 = vadd.f32 %v4835_v5, %v2905_v43 }
0x21e9   :  { %v3447_v1 = vpop.eup %3446 }
0x21ea   :  { %v3024_v35 = vmul.f32 %v3447_v1, %v3021_v42  ;;  %3312 = vmatmul.msk.f32.gmra.mxu0 %vm67_vm0, %v2910_v31  ;;  %vm3030_vm8 = vweird.f32 %v3447_v1 }
0x21eb   :  { %vm3031_vm10 = vmor %vm3029_vm9, %vm3030_vm8 }
0x21ec   :  { %v3025_v55 = vmul.f32 %v3447_v1, %v3024_v35 }
0x21ee   :  { %v3026_v2 = vmul.f32 0.5, %v3025_v55 }
0x21f0   :  { %v3027_v54 = vsub.f32 1.5, %v3026_v2 }
0x21f2   :  { %v3028_v61 = vmul.f32 %v3447_v1, %v3027_v54 }
0x21f4   :  { %v3032_v34 = vsel %vm3031_vm10, %v3447_v1, %v3028_v61 }
0x21f5   :  { %v3043_v57 = vmul.f32 %v3032_v34, %v3009_v32 }
0x21f7   :  { %v3048_v44 = vmul.f32 %v3366_v6, %v3043_v57 }
0x21f9   :  { %v3053_v5 = vadd.f32 %v3367_v56, %v3048_v44 }
0x21fb   :  { %3055 = vst.msk [vmem:[#allocation2] sm:$0xff] %vm67_vm0, %v3053_v5 }
0x2267   :  { %v2947_v33 = vpop.f32.mrf.mxu0 }
0x2268   :  { %v2948_v13 = vadd.f32 %v4868_v59, %v2947_v33 }
0x226a   :  { %v2951_v39 = vmax.f32 %v2948_v13, 0.0 }
0x226c   :  { %3323 = vmatmul.msk.f32.gmra.mxu1 %vm1466_vm6, %v2951_v39 }
0x22e9   :  { %v2992_v10 = vpop.f32.mrf.mxu1 }
0x22ea   :  { %v2993_v26 = vadd.f32 %v3365_v4, %v2992_v10 }
0x22ec   :  { %v2996_v28 = vadd.f32 %v2993_v26, %v2910_v31 }
0x22ee   :  { %v3004_v37 = vsel %vm67_vm0, %v2996_v28, 0.0 }
0x22ef   :  { %3005 = vadd.xlane.f32.xlu0 %v3004_v37 }
0x2362   :  { %v3006_v15 = vpop.xlane.xlu0 %3005 }
0x2363   :  { %v3008_v53 = vmul.f32 %v3006_v15, %v4117_v16 }
0x2365   :  { %v3010_v27 = vsub.f32 %v2996_v28, %v3008_v53 }
0x2367   :  { %v3012_v21 = vmul.f32 %v3010_v27, %v3010_v27 }
0x2369   :  { %v3016_v12 = vsel %vm67_vm0, %v3012_v21, 0.0 }
0x236a   :  { %3017 = vadd.xlane.f32.xlu2 %v3016_v12 }
0x23dd   :  { %v3018_v62 = vpop.xlane.xlu2 %3017 }
0x23de   :  { %v3020_v59 = vmul.f32 %v3018_v62, %v4117_v16 }
0x23e0   :  { %v3022_v63 = vadd.f32 1e-05, %v3020_v59 }
0x23e2   :  { %3448 = vrsqrt.f32 %v3022_v63  ;;  %vm3039_vm11 = vweird.f32 %v3022_v63 }
0x23e8   :  { %v3449_v19 = vpop.eup %3448 }
0x23e9   :  { %v3034_v51 = vmul.f32 %v3449_v19, %v3022_v63  ;;  %vm3040_vm6 = vweird.f32 %v3449_v19 }
0x23ea   :  { %vm3041_vm12 = vmor %vm3039_vm11, %vm3040_vm6 }
0x23eb   :  { %v3035_v29 = vmul.f32 %v3449_v19, %v3034_v51 }
0x23ed   :  { %v3036_v46 = vmul.f32 0.5, %v3035_v29 }
0x23ef   :  { %v3037_v14 = vsub.f32 1.5, %v3036_v46 }
0x23f1   :  { %v3038_v4 = vmul.f32 %v3449_v19, %v3037_v14 }
0x23f3   :  { %v3042_v20 = vsel %vm3041_vm12, %v3449_v19, %v3038_v4 }
0x23f4   :  { %v3044_v38 = vmul.f32 %v3042_v20, %v3010_v27 }
0x23f6   :  { %v3049_v16 = vmul.f32 %v3366_v6, %v3044_v38 }
0x23f8   :  { %v3054_v30 = vadd.f32 %v3367_v56, %v3049_v16 }
0x23fa   :  { %3056 = vst.msk [vmem:[#allocation2 + $0x8] sm:$0xff] %vm67_vm0, %v3054_v30 }
0x23fb   :  { %3069 = dma.vmem_to_hbm [thread:$0]  %s3062_s16, 256, %s3064_s23, [#allocation3], %s3478_s24, %s3478_s24, %s3479_s18  }
0x23fc   :  { %3474 = dma.done.wait [#allocation3], 256  }
0x23fd   :  { %3475 = vsyncadd [#allocation3], 4294967040 }
0x23fe   :  { %3074 = vsyncpa [#allocation3], 1 }

</bundles_post_ra>
